<compile_context>
chip_gen: v7x
topology: tpu7x:2x2x1
jax: 0.10.0
libtpu: 0.0.40
codegen_flags: <defaults>
</compile_context>

<pallas_src>
import math

import jax
import jax.numpy as jnp
from jax.experimental import pallas as pl
from jax.experimental.pallas import tpu as pltpu


# ------------------------- module hyper-parameters -------------------------
Q = 2.0
ITH_OSC = 10.0
ICLAMP = 40.0
R_OSC = 1000.0
SCALING = 1e-06
AMP_FACTOR = 1.25
# is_with_nonidealities=False -> factor is a scalar Parameter = scaling * amp_factor
FACTOR = SCALING * AMP_FACTOR
# Folded output scale: p * I^2 * R_osc * factor -> p * I^2 * C_OUT
C_OUT = R_OSC * FACTOR          # 1.25e-3

# Below this many elements, skip Pallas entirely (fused XLA is faster).
SMALL_INPUT_ELEMS = 128 * 1024


# ------------------------------ kernel body ---------------------------------
def _stno_power_f32(i_dc):
    """Elementwise STNO power on an f32 array (shared by kernel & fallback)."""
    i_dc = jnp.minimum(jnp.maximum(i_dc, ITH_OSC), ICLAMP)   # clamp -> xi >= 1
    xi = i_dc / ITH_OSC
    # Exact divide: the kernel is HBM-bound, the extra VALU ops hide under the
    # DMA, and we keep parity with the PyTorch division.
    p = (xi - 1.0) / (xi + Q)
    return p * (i_dc * i_dc) * C_OUT


def _oscillators_kernel(x_ref, o_ref):
    # In-register upcast (free on the VPU); avoids a wrapper-side cast pass and
    # halves HBM read traffic for 16-bit inputs.
    o_ref[...] = _stno_power_f32(x_ref[...].astype(jnp.float32))


# ---------------------------- tiling heuristics ------------------------------
def _chip_tuning():
    """Return (target_output_tile_bytes, num_tensorcores) per TPU generation."""
    kind = ""
    try:
        kind = jax.devices()[0].device_kind.lower()
    except Exception:
        pass
    if "v7" in kind or "tpu7" in kind:
        # v7x: 3.2 TB/s HBM wants bigger tiles to amortize ~0.35us/step; 2 TCs.
        return 6 * 1024 * 1024, 2
    # v6e / v5e / unknown: single TensorCore -> no grid-shrinking cap; ~4 MiB
    # tiles (vmem_limit_bytes is set explicitly so v5e's 16 MiB scoped default
    # is not a cap).
    return 4 * 1024 * 1024, 1


def _choose_block_rows(n_rows, lane_width, in_itemsize, target_tile_bytes, num_tc):
    """Sublane-aligned block-row count targeting ~target_tile_bytes (f32 out)."""
    # Sublane packing of the (narrower) input dtype: 8 rows/vreg for f32,
    # 16 for bf16/f16, 32 for int8.
    row_mult = 8 * max(1, 4 // max(1, in_itemsize))
    target = max(row_mult,
                 (target_tile_bytes // (lane_width * 4)) // row_mult * row_mult)
    block = min(target, (n_rows // row_mult) * row_mult)
    if num_tc > 1:
        # Keep >= 2 grid steps per TensorCore so "parallel" feeds both cores,
        # without shrinking tiles more than necessary (v7x only).
        cap = (n_rows // (2 * num_tc)) // row_mult * row_mult
        if cap >= row_mult:
            block = min(block, cap)
    return max(row_mult, block)


# -------------------------------- wrapper ------------------------------------
def layer_oscillators(input_currents):
    """LayerOscillators forward pass. Any input shape; returns f32, same shape."""
    x = jnp.asarray(input_currents)
    orig_shape = x.shape
    n = math.prod(orig_shape)

    if n == 0:
        return jnp.zeros(orig_shape, jnp.float32)

    # Small inputs: one fused XLA elementwise pass beats pallas_call + plumbing.
    if n < SMALL_INPUT_ELEMS:
        return _stno_power_f32(x.astype(jnp.float32))

    in_itemsize = x.dtype.itemsize
    x_flat = x.reshape(-1)                         # zero-copy (row-major)

    # Lane-dense 2-D view. Prefer a width that divides n exactly (zero-copy);
    # otherwise pad only the sub-128-element ragged tail (value irrelevant:
    # padded lanes are sliced off after the kernel).
    lane_width = None
    for w in (512, 256, 128):
        if n % w == 0:
            lane_width = w
            break
    n_padded = n
    if lane_width is None:
        lane_width = 128
        n_padded = pl.cdiv(n, 128) * 128
        x_flat = jnp.pad(x_flat, (0, n_padded - n))
    n_rows = n_padded // lane_width
    x2 = x_flat.reshape(n_rows, lane_width)

    target_tile_bytes, num_tc = _chip_tuning()
    block_rows = _choose_block_rows(n_rows, lane_width, in_itemsize,
                                    target_tile_bytes, num_tc)
    grid = (pl.cdiv(n_rows, block_rows),)          # partial last block is masked
    spec = pl.BlockSpec((block_rows, lane_width), lambda i: (i, 0))

    in_tile = block_rows * lane_width * in_itemsize
    out_tile = block_rows * lane_width * 4
    # Explicit limit: default 2-deep pipeline on input + output plus headroom.
    # Well under v7x's 64 MiB physical VMEM; overrides v5e's 16 MiB scoped default.
    vmem_limit = max(16 * 1024 * 1024,
                     2 * (in_tile + out_tile) + 4 * 1024 * 1024)

    out = pl.pallas_call(
        _oscillators_kernel,
        out_shape=jax.ShapeDtypeStruct((n_rows, lane_width), jnp.float32),
        grid_spec=pltpu.PrefetchScalarGridSpec(
            num_scalar_prefetch=0,
            grid=grid,
            in_specs=[spec],
            out_specs=spec,
        ),
        compiler_params=pltpu.CompilerParams(
            dimension_semantics=("parallel",),
            vmem_limit_bytes=vmem_limit,
        ),
    )(x2)

    if n_padded != n:
        return out.reshape(-1)[:n].reshape(orig_shape)
    return out.reshape(orig_shape)


# ------------------------------- reference -----------------------------------
def layer_oscillators_ref(x):
    """Pure-JAX reference (mirrors the PyTorch forward exactly)."""
    x = jnp.clip(jnp.asarray(x, jnp.float32), ITH_OSC, ICLAMP)
    xi = x / ITH_OSC
    p = (xi - 1.0) / (xi + Q)
    return p * x ** 2 * R_OSC * FACTOR


# TODO(synk): is_with_nonidealities=True (per-chain randomized amp factor) is an
# init-time modification of `factor`; only the default scalar-factor forward is
# implemented here.

if __name__ == "__main__":
    key = jax.random.PRNGKey(0)

    # Shapes consistent with the module's (batch, nb_chains) usage, covering:
    # the small-input fused fallback, the zero-copy lane-aligned Pallas path,
    # the ragged-tail (pad + masked partial block) path, and a bf16 input that
    # exercises the in-kernel upcast. Currents span below-threshold, active,
    # and above-clamp regimes.
    cases = [
        ((16, 96), jnp.float32),     # small -> fused XLA fallback
        ((512, 512), jnp.float32),   # Pallas, zero-copy aligned path
        ((301, 515), jnp.float32),   # Pallas, ragged tail + masked last block
        ((512, 640), jnp.bfloat16),  # Pallas, bf16 input, in-register upcast
    ]
    for idx, (shape, dtype) in enumerate(cases):
        k = jax.random.fold_in(key, idx)
        x = jax.random.uniform(k, shape, dtype=jnp.float32,
                               minval=-20.0, maxval=60.0).astype(dtype)

        out = jax.block_until_ready(layer_oscillators(x))
        ref = layer_oscillators_ref(x)

        assert out.shape == ref.shape and out.dtype == ref.dtype, \
            f"shape/dtype mismatch for {shape} {dtype}"
        assert jnp.allclose(out, ref, rtol=1e-5, atol=1e-6), \
            f"mismatch vs reference for shape {shape} dtype {dtype}"

    print("KERNEL_OK")
</pallas_src>

<mosaic_0001>
module attributes {stable_mosaic.version = 11 : i64} {
  func.func @_oscillators_kernel(%arg0: i32, %arg1: memref<512x512xf32, #tpu.memory_space<vmem>>, %arg2: memref<512x512xf32, #tpu.memory_space<vmem>>) attributes {dimension_semantics = [#tpu.dimension_semantics<parallel>], iteration_bounds = array<i64: 1>, scalar_prefetch = 0 : i64, scratch_operands = 0 : i64, tpu.core_type = #tpu.core_type<tc>, window_params = [{transform_indices = @transform_0, window_bounds = array<i64: 512, 512>}, {transform_indices = @transform_1, window_bounds = array<i64: 512, 512>}]} {
    %c0 = arith.constant 0 : index
    %c0_0 = arith.constant 0 : index
    %0 = vector.load %arg1[%c0, %c0_0] : memref<512x512xf32, #tpu.memory_space<vmem>>, vector<512x512xf32>
    %cst = arith.constant 1.000000e+01 : f32
    %1 = vector.broadcast %cst : f32 to vector<512x512xf32>
    %2 = arith.maximumf %0, %1 : vector<512x512xf32>
    %cst_1 = arith.constant 4.000000e+01 : f32
    %3 = vector.broadcast %cst_1 : f32 to vector<512x512xf32>
    %4 = arith.minimumf %2, %3 : vector<512x512xf32>
    %cst_2 = arith.constant 1.000000e+01 : f32
    %5 = vector.broadcast %cst_2 : f32 to vector<512x512xf32>
    %6 = arith.divf %4, %5 : vector<512x512xf32>
    %cst_3 = arith.constant 1.000000e+00 : f32
    %7 = vector.broadcast %cst_3 : f32 to vector<512x512xf32>
    %8 = arith.subf %6, %7 : vector<512x512xf32>
    %cst_4 = arith.constant 2.000000e+00 : f32
    %9 = vector.broadcast %cst_4 : f32 to vector<512x512xf32>
    %10 = arith.addf %6, %9 : vector<512x512xf32>
    %11 = arith.divf %8, %10 : vector<512x512xf32>
    %12 = arith.mulf %4, %4 : vector<512x512xf32>
    %13 = arith.mulf %11, %12 : vector<512x512xf32>
    %cst_5 = arith.constant 1.250000e-03 : f32
    %14 = vector.broadcast %cst_5 : f32 to vector<512x512xf32>
    %15 = arith.mulf %13, %14 : vector<512x512xf32>
    %c0_6 = arith.constant 0 : index
    %c0_7 = arith.constant 0 : index
    %16 = vector.load %arg2[%c0_6, %c0_7] : memref<512x512xf32, #tpu.memory_space<vmem>>, vector<512x512xf32>
    tpu.vector_store %arg2[%c0_6, %c0_7], %15 {strides = array<i32>} : memref<512x512xf32, #tpu.memory_space<vmem>>, vector<512x512xf32>,
    return
  }
  func.func @transform_0(%arg0: i32) -> (i32, i32) {
    %c0_i32 = arith.constant 0 : i32
    %c0_i32_0 = arith.constant 0 : i32
    return %arg0, %c0_i32 : i32, i32
  }
  func.func @transform_1(%arg0: i32) -> (i32, i32) {
    %c0_i32 = arith.constant 0 : i32
    %c0_i32_0 = arith.constant 0 : i32
    return %arg0, %c0_i32 : i32, i32
  }
}

</mosaic_0001>

<bundles_post_ra>
// kernel: tpu_custom_call.1
= control target key start
LH: loop header
LB: loop body
LE: loop exit
PB: predicated region body
PF: predicated region fallthrough
CT: control target
= control target key end

     0   :  { %6 = vsyncpa [#allocation3], 0  ;;  %s4399_s0 = inlined_call_operand.hbm [shape: f32[512,512], index: 0, kind: input, shape index: {}]   ;;  %s4400_s1 = inlined_call_operand.hbm [shape: f32[512,512], index: 1, kind: output, shape index: {}]  }
   0x1   :  { %7 = vsyncpa [#allocation4], 0  ;;  %s3933_s6 = smov [#allocation2]   ;;  %s3885_s10 = scalar_lea.hbm %s4399_s0, 32768 }
   0x2   :  { %s13_s7 = sshll.u32 %s3933_s6, 4  ;;  %p3886_p0 = scmp.ne.s32.totalorder %s4399_s0, %s3885_s10  ;;  %s14_s7 = int_to_ptr.vmem [resolvable:$true] %s13_s7 }
   0x3   :  { %p3889_p1 = scmp.lt.u32.totalorder %s3885_s10, %s4399_s0 }
   0x5   :  { %p3891_p2 = pnand %p3889_p1, %p3886_p0 }
   0x7   :  { %3894 = shalt.err (!%p3891_p2)
}
   0x8   :  { %s3895_s15 = scalar_lea.vmem %s14_s7, 32768  ;;  %p3900_p4 = scmp.lt.s32.totalorder %s14_s7, %s14_s7 }
   0x9   :  { %p3896_p3 = scmp.ne.s32.totalorder %s14_s7, %s3895_s15  ;;  %p3901_p5 = scmp.lt.s32.totalorder %s3895_s15, %s3895_s15 }
   0xb   :  { %p3902_p6 = por %p3901_p5, %p3900_p4 }
   0xd   :  { %p3903_p7 = pnand %p3902_p6, %p3896_p3 }
   0xf   :  { %3906 = shalt.err (!%p3903_p7)
}
  0x10   :  { %s3934_s16 = smov 512   ;;  %s3935_s17 = smov 32  }
  0x11   :  { %19 = dma.hbm_to_vmem [thread:$0]  %s4399_s0, 32768, %s14_s7, [#allocation3], %s3934_s16, %s3934_s16, %s3935_s17  }
  0x12   :  { %3929 = dma.done.wait [#allocation3], 32768  }
  0x13   :  { %3930 = vsyncadd [#allocation3], 4294934528  ;;  %v23_v0 = vld [vmem:[#allocation2] sm:$0xff]  ;;  %v24_v1 = vld [vmem:[#allocation2 + $0x8] sm:$0xff]  ;;  %s3936_s0 = smov [#allocation5]  }
  0x14   :  { %v25_v2 = vld [vmem:[#allocation2 + $0x10] sm:$0xff]  ;;  %v279_v3 = vmax.f32 %v23_v0, 10.0  ;;  %v280_v4 = vmax.f32 %v24_v1, 10.0  ;;  %v26_v6 = vld [vmem:[#allocation2 + $0x18] sm:$0xff]  ;;  %v27_v7 = vld [vmem:[#allocation2 + $0x20] sm:$0xff]  ;;  %s3101_s20 = sshll.u32 %s3936_s0, 4  ;;  %s3102_s20 = int_to_ptr.vmem [resolvable:$true] %s3101_s20 }
  0x15   :  { %v281_v5 = vmax.f32 %v25_v2, 10.0  ;;  %v28_v8 = vld [vmem:[#allocation2 + $0x28] sm:$0xff]  ;;  %v282_v9 = vmax.f32 %v26_v6, 10.0  ;;  %v283_v10 = vmax.f32 %v27_v7, 10.0  ;;  %v29_v15 = vld [vmem:[#allocation2 + $0x30] sm:$0xff]  ;;  %v30_v16 = vld [vmem:[#allocation2 + $0x38] sm:$0xff]  ;;  %p3912_p9 = scmp.lt.s32.totalorder %s3102_s20, %s3102_s20 }
  0x16   :  { %v284_v11 = vmax.f32 %v28_v8, 10.0  ;;  %v535_v12 = vmin.f32 %v279_v3, 40.0  ;;  %v536_v13 = vmin.f32 %v280_v4, 40.0  ;;  %v285_v24 = vmax.f32 %v29_v15, 10.0  ;;  %v31_v39 = vld [vmem:[#allocation2 + $0x40] sm:$0xff]  ;;  %v32_v43 = vld [vmem:[#allocation2 + $0x48] sm:$0xff] }
  0x17   :  { %v537_v14 = vmin.f32 %v281_v5, 40.0  ;;  %v538_v17 = vmin.f32 %v282_v9, 40.0  ;;  %v539_v20 = vmin.f32 %v283_v10, 40.0  ;;  %v286_v25 = vmax.f32 %v30_v16, 10.0  ;;  %v33_v47 = vld [vmem:[#allocation2 + $0x50] sm:$0xff]  ;;  %v34_v51 = vld [vmem:[#allocation2 + $0x58] sm:$0xff] }
  0x18   :  { %v792_v18 = vmul.f32 0.1, %v535_v12  ;;  %v793_v19 = vmul.f32 0.1, %v536_v13  ;;  %v540_v21 = vmin.f32 %v284_v11, 40.0  ;;  %v3962_v27 = vmul.f32 %v535_v12, %v535_v12  ;;  %v35_v59 = vld [vmem:[#allocation2 + $0x60] sm:$0xff] }
  0x19   :  { %v794_v22 = vmul.f32 0.1, %v537_v14  ;;  %v795_v23 = vmul.f32 0.1, %v538_v17  ;;  %v3964_v29 = vmul.f32 %v536_v13, %v536_v13  ;;  %v3966_v31 = vmul.f32 %v537_v14, %v537_v14  ;;  %s3907_s21 = scalar_lea.vmem %s3102_s20, 32768 }
  0x1a   :  { %v1304_v26 = vadd.f32 2.0, %v792_v18  ;;  %v1305_v28 = vadd.f32 2.0, %v793_v19  ;;  %v3968_v33 = vmul.f32 %v538_v17, %v538_v17  ;;  %v796_v34 = vmul.f32 0.1, %v539_v20  ;;  %p3908_p8 = scmp.ne.s32.totalorder %s3102_s20, %s3907_s21  ;;  %p3913_p10 = scmp.lt.s32.totalorder %s3907_s21, %s3907_s21 }
  0x1b   :  { %v1306_v30 = vadd.f32 2.0, %v794_v22  ;;  %v1307_v32 = vadd.f32 2.0, %v795_v23  ;;  %v797_v35 = vmul.f32 0.1, %v540_v21  ;;  %v3113_v36 = vadd.f32 -1.0, %v792_v18 }
  0x1c   :  { %3373 = vrcp.f32 %v1304_v26  ;;  %v541_v37 = vmin.f32 %v285_v24, 40.0  ;;  %v542_v38 = vmin.f32 %v286_v25, 40.0  ;;  %v3114_v40 = vadd.f32 -1.0, %v793_v19  ;;  %p3914_p11 = por %p3913_p10, %p3912_p9 }
  0x1d   :  { %3375 = vrcp.f32 %v1305_v28  ;;  %v3115_v41 = vadd.f32 -1.0, %v794_v22  ;;  %v1308_v42 = vadd.f32 2.0, %v796_v34  ;;  %v3116_v44 = vadd.f32 -1.0, %v795_v23 }
  0x1e   :  { %3377 = vrcp.f32 %v1306_v30  ;;  %v1309_v45 = vadd.f32 2.0, %v797_v35  ;;  %v798_v46 = vmul.f32 0.1, %v541_v37  ;;  %v3970_v48 = vmul.f32 %v539_v20, %v539_v20  ;;  %p3915_p12 = pnand %p3914_p11, %p3908_p8 }
  0x1f   :  { %3379 = vrcp.f32 %v1307_v32  ;;  %v799_v49 = vmul.f32 0.1, %v542_v38  ;;  %v287_v50 = vmax.f32 %v31_v39, 10.0  ;;  %v3972_v52 = vmul.f32 %v540_v21, %v540_v21 }
  0x20   :  { %3381 = vrcp.f32 %v1308_v42  ;;  %v1310_v53 = vadd.f32 2.0, %v798_v46  ;;  %v288_v54 = vmax.f32 %v32_v43, 10.0  ;;  %v3117_v55 = vadd.f32 -1.0, %v796_v34 }
  0x21   :  { %3383 = vrcp.f32 %v1309_v45  ;;  %v1311_v56 = vadd.f32 2.0, %v799_v49  ;;  %v543_v57 = vmin.f32 %v287_v50, 40.0  ;;  %v289_v58 = vmax.f32 %v33_v47, 10.0  ;;  %v38_v50 = vld [vmem:[#allocation2 + $0x78] sm:$0xff] }
  0x22   :  { %v3118_v60 = vadd.f32 -1.0, %v797_v35  ;;  %3385 = vrcp.f32 %v1310_v53  ;;  %v544_v61 = vmin.f32 %v288_v54, 40.0  ;;  %v290_v62 = vmax.f32 %v34_v51, 10.0 }
  0x23   :  { %v3974_v63 = vmul.f32 %v541_v37, %v541_v37  ;;  %3387 = vrcp.f32 %v1311_v56  ;;  %v800_v0 = vmul.f32 0.1, %v543_v57  ;;  %v3976_v1 = vmin.f32 %v289_v58, 40.0  ;;  %v36_v37 = vld [vmem:[#allocation2 + $0x68] sm:$0xff] }
  0x24   :  { %v3978_v2 = vmul.f32 %v542_v38, %v542_v38  ;;  %v801_v3 = vmul.f32 0.1, %v544_v61  ;;  %v3980_v4 = vmin.f32 %v290_v62, 40.0  ;;  %v291_v5 = vmax.f32 %v35_v59, 10.0 }
  0x25   :  { %v3119_v7 = vadd.f32 -1.0, %v798_v46  ;;  %v3120_v8 = vadd.f32 -1.0, %v799_v49  ;;  %v1312_v9 = vadd.f32 2.0, %v800_v0  ;;  %v802_v10 = vmul.f32 0.1, %v3976_v1 }
  0x26   :  { %v3374_v6 = vpop.eup %3373  ;;  %v3983_v13 = vmul.f32 %v543_v57, %v543_v57  ;;  %v1313_v14 = vadd.f32 2.0, %v801_v3  ;;  %v3986_v15 = vmul.f32 0.1, %v3980_v4  ;;  %v3988_v18 = vmul.f32 %v544_v61, %v544_v61 }
  0x27   :  { %v3376_v11 = vpop.eup %3375  ;;  %v1561_v12 = vmul.f32 %v3374_v6, %v3113_v36  ;;  %3389 = vrcp.f32 %v1312_v9  ;;  %v1314_v19 = vadd.f32 2.0, %v802_v10  ;;  %v3991_v23 = vmin.f32 %v291_v5, 40.0 }
  0x28   :  { %v3378_v16 = vpop.eup %3377  ;;  %v1563_v17 = vmul.f32 %v3376_v11, %v3114_v40  ;;  %3391 = vrcp.f32 %v1313_v14  ;;  %v1315_v28 = vadd.f32 2.0, %v3986_v15  ;;  %v3121_v36 = vadd.f32 -1.0, %v800_v0 }
  0x29   :  { %v3380_v20 = vpop.eup %3379  ;;  %v2328_v21 = vmul.f32 %v3962_v27, %v1561_v12  ;;  %v1565_v22 = vmul.f32 %v3378_v16, %v3115_v41  ;;  %3393 = vrcp.f32 %v1314_v19  ;;  %v3122_v42 = vadd.f32 -1.0, %v801_v3 }
  0x2a   :  { %v3382_v24 = vpop.eup %3381  ;;  %v2329_v25 = vmul.f32 %v3964_v29, %v1563_v17  ;;  %v1567_v26 = vmul.f32 %v3380_v20, %v3116_v44  ;;  %3395 = vrcp.f32 %v1315_v28  ;;  %v804_v43 = vmul.f32 0.1, %v3991_v23  ;;  %v37_v44 = vld [vmem:[#allocation2 + $0x70] sm:$0xff] }
  0x2b   :  { %v3384_v30 = vpop.eup %3383  ;;  %v2584_v32 = vmul.f32 0.00125, %v2328_v21  ;;  %v2330_v34 = vmul.f32 %v3966_v31, %v1565_v22  ;;  %v1569_v35 = vmul.f32 %v3382_v24, %v3117_v55  ;;  %v292_v49 = vmax.f32 %v36_v37, 10.0  ;;  %v41_v28 = vld [vmem:[#allocation2 + $0x90] sm:$0xff] }
  0x2c   :  { %v2585_v38 = vmul.f32 0.00125, %v2329_v25  ;;  %v2331_v27 = vmul.f32 %v3968_v33, %v1567_v26  ;;  %v1571_v39 = vmul.f32 %v3384_v30, %v3118_v60  ;;  %v3386_v40 = vpop.eup %3385  ;;  %v39_v33 = vld [vmem:[#allocation2 + $0x80] sm:$0xff]  ;;  %v3123_v54 = vadd.f32 -1.0, %v802_v10  ;;  %v40_v26 = vld [vmem:[#allocation2 + $0x88] sm:$0xff] }
  0x2d   :  { %2840 = vst [vmem:[#allocation5] sm:$0xff] %v2584_v32  ;;  %v2586_v41 = vmul.f32 0.00125, %v2330_v34  ;;  %v2332_v29 = vmul.f32 %v3970_v48, %v1569_v35  ;;  %v3388_v45 = vpop.eup %3387  ;;  %v1573_v47 = vmul.f32 %v3386_v40, %v3119_v7  ;;  %v1316_v55 = vadd.f32 2.0, %v804_v43 }
  0x2e   :  { %2841 = vst [vmem:[#allocation5 + $0x8] sm:$0xff] %v2585_v38  ;;  %v2587_v31 = vmul.f32 0.00125, %v2331_v27  ;;  %v2333_v46 = vmul.f32 %v3972_v52, %v1571_v39  ;;  %v1575_v53 = vmul.f32 %v3388_v45, %v3120_v8  ;;  %v548_v57 = vmin.f32 %v292_v49, 40.0 }
  0x2f   :  { %2842 = vst [vmem:[#allocation5 + $0x10] sm:$0xff] %v2586_v41  ;;  %v2588_v51 = vmul.f32 0.00125, %v2332_v29  ;;  %v2334_v56 = vmul.f32 %v3974_v63, %v1573_v47  ;;  %v293_v58 = vmax.f32 %v37_v44, 10.0  ;;  %3397 = vrcp.f32 %v1316_v55  ;;  %v44_v47 = vld [vmem:[#allocation2 + $0xa8] sm:$0xff] }
  0x30   :  { %2843 = vst [vmem:[#allocation5 + $0x18] sm:$0xff] %v2587_v31  ;;  %v2589_v48 = vmul.f32 0.00125, %v2333_v46  ;;  %v2335_v59 = vmul.f32 %v3978_v2, %v1575_v53  ;;  %v294_v52 = vmax.f32 %v38_v50, 10.0  ;;  %v295_v60 = vmax.f32 %v39_v33, 10.0  ;;  %v45_v33 = vld [vmem:[#allocation2 + $0xb0] sm:$0xff] }
  0x31   :  { %2844 = vst [vmem:[#allocation5 + $0x20] sm:$0xff] %v2588_v51  ;;  %v3390_v61 = vpop.eup %3389  ;;  %v2590_v62 = vmul.f32 0.00125, %v2334_v56  ;;  %v2082_v0 = vmul.f32 %v3976_v1, %v3976_v1  ;;  %v805_v3 = vmul.f32 0.1, %v548_v57  ;;  %v549_v5 = vmin.f32 %v293_v58, 40.0 }
  0x32   :  { %2845 = vst [vmem:[#allocation5 + $0x28] sm:$0xff] %v2589_v48  ;;  %v3392_v6 = vpop.eup %3391  ;;  %v2591_v7 = vmul.f32 0.00125, %v2335_v59  ;;  %v1577_v8 = vmul.f32 %v3390_v61, %v3121_v36  ;;  %v3124_v63 = vadd.f32 -1.0, %v3986_v15  ;;  %v4005_v9 = vmin.f32 %v294_v52, 40.0 }
  0x33   :  { %v3394_v10 = vpop.eup %3393  ;;  %2846 = vst [vmem:[#allocation5 + $0x30] sm:$0xff] %v2590_v62  ;;  %v1579_v2 = vmul.f32 %v3392_v6, %v3122_v42  ;;  %v2083_v11 = vmul.f32 %v3980_v4, %v3980_v4  ;;  %v1317_v12 = vadd.f32 2.0, %v805_v3  ;;  %v806_v14 = vmul.f32 0.1, %v549_v5  ;;  %v42_v4 = vld [vmem:[#allocation2 + $0x98] sm:$0xff] }
  0x34   :  { %2847 = vst [vmem:[#allocation5 + $0x38] sm:$0xff] %v2591_v7  ;;  %v2336_v1 = vmul.f32 %v3983_v13, %v1577_v8  ;;  %v1581_v16 = vmul.f32 %v3394_v10, %v3123_v54  ;;  %v807_v17 = vmul.f32 0.1, %v4005_v9  ;;  %v551_v19 = vmin.f32 %v295_v60, 40.0  ;;  %v3396_v20 = vpop.eup %3395  ;;  %v43_v13 = vld [vmem:[#allocation2 + $0xa0] sm:$0xff]  ;;  %v46_v7 = vld [vmem:[#allocation2 + $0xb8] sm:$0xff] }
  0x35   :  { %v2337_v15 = vmul.f32 %v3988_v18, %v1579_v2  ;;  %3399 = vrcp.f32 %v1317_v12  ;;  %v1318_v21 = vadd.f32 2.0, %v806_v14  ;;  %v1583_v25 = vmul.f32 %v3396_v20, %v3124_v63  ;;  %v47_v8 = vld [vmem:[#allocation2 + $0xc0] sm:$0xff] }
  0x36   :  { %v2592_v22 = vmul.f32 0.00125, %v2336_v1  ;;  %v2338_v24 = vmul.f32 %v2082_v0, %v1581_v16  ;;  %v3125_v32 = vadd.f32 -1.0, %v804_v43  ;;  %v1319_v34 = vadd.f32 2.0, %v807_v17 }
  0x37   :  { %v2593_v30 = vmul.f32 0.00125, %v2337_v15  ;;  %3401 = vrcp.f32 %v1318_v21  ;;  %v2339_v36 = vmul.f32 %v2083_v11, %v1583_v25  ;;  %v2084_v37 = vmul.f32 %v3991_v23, %v3991_v23 }
  0x38   :  { %2848 = vst [vmem:[#allocation5 + $0x40] sm:$0xff] %v2592_v22  ;;  %v2594_v35 = vmul.f32 0.00125, %v2338_v24  ;;  %v808_v18 = vmul.f32 0.1, %v551_v19  ;;  %3403 = vrcp.f32 %v1319_v34  ;;  %v296_v38 = vmax.f32 %v40_v26, 10.0 }
  0x39   :  { %2849 = vst [vmem:[#allocation5 + $0x48] sm:$0xff] %v2593_v30  ;;  %v297_v27 = vmax.f32 %v41_v28, 10.0  ;;  %v298_v39 = vmax.f32 %v42_v4, 10.0  ;;  %v3398_v40 = vpop.eup %3397  ;;  %v2595_v41 = vmul.f32 0.00125, %v2339_v36  ;;  %v2085_v29 = vmul.f32 %v548_v57, %v548_v57 }
  0x3a   :  { %2850 = vst [vmem:[#allocation5 + $0x50] sm:$0xff] %v2594_v35  ;;  %v1320_v42 = vadd.f32 2.0, %v808_v18  ;;  %v299_v43 = vmax.f32 %v43_v13, 10.0  ;;  %v1585_v44 = vmul.f32 %v3398_v40, %v3125_v32  ;;  %v552_v45 = vmin.f32 %v296_v38, 40.0  ;;  %v49_v38 = vld [vmem:[#allocation2 + $0xd0] sm:$0xff] }
  0x3b   :  { %v553_v31 = vmin.f32 %v297_v27, 40.0  ;;  %v554_v46 = vmin.f32 %v298_v39, 40.0  ;;  %2851 = vst [vmem:[#allocation5 + $0x58] sm:$0xff] %v2595_v41  ;;  %v3126_v49 = vadd.f32 -1.0, %v805_v3  ;;  %v2086_v23 = vmul.f32 %v549_v5, %v549_v5 }
  0x3c   :  { %3405 = vrcp.f32 %v1320_v42  ;;  %v4014_v50 = vmin.f32 %v299_v43, 40.0  ;;  %v2340_v51 = vmul.f32 %v2084_v37, %v1585_v44  ;;  %v3127_v53 = vadd.f32 -1.0, %v806_v14 }
  0x3d   :  { %v809_v54 = vmul.f32 0.1, %v552_v45  ;;  %v810_v55 = vmul.f32 0.1, %v553_v31  ;;  %v3128_v48 = vadd.f32 -1.0, %v807_v17  ;;  %v300_v58 = vmax.f32 %v44_v47, 10.0 }
  0x3e   :  { %v811_v56 = vmul.f32 0.1, %v554_v46  ;;  %v812_v57 = vmul.f32 0.1, %v4014_v50  ;;  %v2596_v52 = vmul.f32 0.00125, %v2340_v51  ;;  %v2087_v60 = vmul.f32 %v4005_v9, %v4005_v9 }
  0x3f   :  { %v3400_v59 = vpop.eup %3399  ;;  %v1321_v61 = vadd.f32 2.0, %v809_v54  ;;  %v301_v62 = vmax.f32 %v45_v33, 10.0  ;;  %v2088_v3 = vmul.f32 %v551_v19, %v551_v19  ;;  %v1322_v5 = vadd.f32 2.0, %v810_v55 }
  0x40   :  { %v1587_v0 = vmul.f32 %v3400_v59, %v3126_v49  ;;  %v1323_v6 = vadd.f32 2.0, %v811_v56  ;;  %2852 = vst [vmem:[#allocation5 + $0x60] sm:$0xff] %v2596_v52  ;;  %v3129_v10 = vadd.f32 -1.0, %v808_v18  ;;  %v4019_v2 = vmul.f32 %v552_v45, %v552_v45  ;;  %v48_v18 = vld [vmem:[#allocation2 + $0xc8] sm:$0xff] }
  0x41   :  { %v3402_v63 = vpop.eup %3401  ;;  %3407 = vrcp.f32 %v1321_v61  ;;  %v1324_v11 = vadd.f32 2.0, %v812_v57  ;;  %v556_v1 = vmin.f32 %v300_v58, 40.0  ;;  %v557_v16 = vmin.f32 %v301_v62, 40.0 }
  0x42   :  { %v2341_v12 = vmul.f32 %v2085_v29, %v1587_v0  ;;  %v1589_v14 = vmul.f32 %v3402_v63, %v3127_v53  ;;  %3409 = vrcp.f32 %v1322_v5  ;;  %v3404_v9 = vpop.eup %3403  ;;  %v302_v17 = vmax.f32 %v46_v7, 10.0  ;;  %v51_v53 = vld [vmem:[#allocation2 + $0xe0] sm:$0xff] }
  0x43   :  { %3411 = vrcp.f32 %v1323_v6  ;;  %v303_v19 = vmax.f32 %v47_v8, 10.0  ;;  %v1591_v21 = vmul.f32 %v3404_v9, %v3128_v48  ;;  %v2090_v22 = vmul.f32 %v553_v31, %v553_v31 }
  0x44   :  { %v2597_v20 = vmul.f32 0.00125, %v2341_v12  ;;  %v2342_v15 = vmul.f32 %v2086_v23, %v1589_v14  ;;  %3413 = vrcp.f32 %v1324_v11  ;;  %v2091_v24 = vmul.f32 %v554_v46, %v554_v46  ;;  %v50_v46 = vld [vmem:[#allocation2 + $0xd8] sm:$0xff]  ;;  %v52_v12 = vld [vmem:[#allocation2 + $0xe8] sm:$0xff]  ;;  %v53_v14 = vld [vmem:[#allocation2 + $0xf0] sm:$0xff] }
  0x45   :  { %v813_v25 = vmul.f32 0.1, %v556_v1  ;;  %v814_v26 = vmul.f32 0.1, %v557_v16  ;;  %v2343_v30 = vmul.f32 %v2087_v60, %v1591_v21  ;;  %v4021_v32 = vmin.f32 %v302_v17, 40.0 }
  0x46   :  { %v3406_v28 = vpop.eup %3405  ;;  %2853 = vst [vmem:[#allocation5 + $0x68] sm:$0xff] %v2597_v20  ;;  %v2598_v4 = vmul.f32 0.00125, %v2342_v15  ;;  %v4023_v34 = vmin.f32 %v303_v19, 40.0  ;;  %v3130_v35 = vadd.f32 -1.0, %v809_v54  ;;  %v3131_v36 = vadd.f32 -1.0, %v810_v55 }
  0x47   :  { %v1593_v13 = vmul.f32 %v3406_v28, %v3129_v10  ;;  %v1325_v37 = vadd.f32 2.0, %v813_v25  ;;  %v2599_v27 = vmul.f32 0.00125, %v2343_v30  ;;  %v3132_v39 = vadd.f32 -1.0, %v811_v56 }
  0x48   :  { %2854 = vst [vmem:[#allocation5 + $0x70] sm:$0xff] %v2598_v4  ;;  %v1326_v40 = vadd.f32 2.0, %v814_v26  ;;  %v815_v41 = vmul.f32 0.1, %v4021_v32  ;;  %v3133_v42 = vadd.f32 -1.0, %v812_v57  ;;  %v2092_v44 = vmul.f32 %v4014_v50, %v4014_v50 }
  0x49   :  { %v2344_v29 = vmul.f32 %v2088_v3, %v1593_v13  ;;  %3415 = vrcp.f32 %v1325_v37  ;;  %v816_v43 = vmul.f32 0.1, %v4023_v34  ;;  %2855 = vst [vmem:[#allocation5 + $0x78] sm:$0xff] %v2599_v27  ;;  %v304_v31 = vmax.f32 %v48_v18, 10.0 }
  0x4a   :  { %3417 = vrcp.f32 %v1326_v40  ;;  %v1327_v45 = vadd.f32 2.0, %v815_v41  ;;  %v2093_v23 = vmul.f32 %v556_v1, %v556_v1  ;;  %v305_v51 = vmax.f32 %v49_v38, 10.0 }
  0x4b   :  { %v3408_v47 = vpop.eup %3407  ;;  %v2600_v49 = vmul.f32 0.00125, %v2344_v29  ;;  %v1328_v33 = vadd.f32 2.0, %v816_v43  ;;  %v2094_v48 = vmul.f32 %v557_v16, %v557_v16  ;;  %v560_v56 = vmin.f32 %v304_v31, 40.0 }
  0x4c   :  { %v3410_v54 = vpop.eup %3409  ;;  %v1595_v55 = vmul.f32 %v3408_v47, %v3130_v35  ;;  %3419 = vrcp.f32 %v1327_v45  ;;  %v561_v50 = vmin.f32 %v305_v51, 40.0  ;;  %v306_v59 = vmax.f32 %v50_v46, 10.0  ;;  %v54_v47 = vld [vmem:[#allocation2 + $0xf8] sm:$0xff] }
  0x4d   :  { %v3412_v57 = vpop.eup %3411  ;;  %2856 = vst [vmem:[#allocation5 + $0x80] sm:$0xff] %v2600_v49  ;;  %v1597_v58 = vmul.f32 %v3410_v54, %v3131_v36  ;;  %3421 = vrcp.f32 %v1328_v33  ;;  %v817_v62 = vmul.f32 0.1, %v560_v56  ;;  %v307_v0 = vmax.f32 %v51_v53, 10.0  ;;  %v56_v49 = vld [vmem:[#allocation2 + $0x108] sm:$0xff] }
  0x4e   :  { %v3414_v52 = vpop.eup %3413  ;;  %v2345_v60 = vmul.f32 %v4019_v2, %v1595_v55  ;;  %v1599_v61 = vmul.f32 %v3412_v57, %v3132_v39  ;;  %v3134_v6 = vadd.f32 -1.0, %v813_v25  ;;  %v818_v7 = vmul.f32 0.1, %v561_v50 }
  0x4f   :  { %v2346_v3 = vmul.f32 %v2090_v22, %v1597_v58  ;;  %v1601_v5 = vmul.f32 %v3414_v52, %v3133_v42  ;;  %v3135_v10 = vadd.f32 -1.0, %v814_v26  ;;  %v1329_v11 = vadd.f32 2.0, %v817_v62 }
  0x50   :  { %v2601_v8 = vmul.f32 0.00125, %v2345_v60  ;;  %v2347_v63 = vmul.f32 %v2091_v24, %v1599_v61  ;;  %v3136_v16 = vadd.f32 -1.0, %v815_v41  ;;  %v1330_v17 = vadd.f32 2.0, %v818_v7 }
  0x51   :  { %v2602_v1 = vmul.f32 0.00125, %v2346_v3  ;;  %v2348_v9 = vmul.f32 %v2092_v44, %v1601_v5  ;;  %3423 = vrcp.f32 %v1329_v11  ;;  %v562_v2 = vmin.f32 %v306_v59, 40.0  ;;  %v57_v59 = vld [vmem:[#allocation2 + $0x110] sm:$0xff] }
  0x52   :  { %2857 = vst [vmem:[#allocation5 + $0x88] sm:$0xff] %v2601_v8  ;;  %v2603_v19 = vmul.f32 0.00125, %v2347_v63  ;;  %v4030_v20 = vmin.f32 %v307_v0, 40.0  ;;  %3425 = vrcp.f32 %v1330_v17  ;;  %v308_v22 = vmax.f32 %v52_v12, 10.0  ;;  %v58_v0 = vld [vmem:[#allocation2 + $0x118] sm:$0xff] }
  0x53   :  { %v3416_v15 = vpop.eup %3415  ;;  %2858 = vst [vmem:[#allocation5 + $0x90] sm:$0xff] %v2602_v1  ;;  %v2604_v21 = vmul.f32 0.00125, %v2348_v9  ;;  %v309_v24 = vmax.f32 %v53_v14, 10.0  ;;  %v3137_v28 = vadd.f32 -1.0, %v816_v43  ;;  %v2095_v35 = vmul.f32 %v4021_v32, %v4021_v32  ;;  %v55_v32 = vld [vmem:[#allocation2 + $0x100] sm:$0xff] }
  0x54   :  { %v3418_v25 = vpop.eup %3417  ;;  %2859 = vst [vmem:[#allocation5 + $0x98] sm:$0xff] %v2603_v19  ;;  %v1603_v26 = vmul.f32 %v3416_v15, %v3134_v6  ;;  %v819_v4 = vmul.f32 0.1, %v562_v2  ;;  %v820_v30 = vmul.f32 0.1, %v4030_v20  ;;  %v2096_v36 = vmul.f32 %v4023_v34, %v4023_v34 }
  0x55   :  { %2860 = vst [vmem:[#allocation5 + $0xa0] sm:$0xff] %v2604_v21  ;;  %v1605_v13 = vmul.f32 %v3418_v25, %v3135_v10  ;;  %v564_v37 = vmin.f32 %v308_v22, 40.0  ;;  %v2097_v27 = vmul.f32 %v560_v56, %v560_v56  ;;  %v565_v40 = vmin.f32 %v309_v24, 40.0  ;;  %v59_v24 = vld [vmem:[#allocation2 + $0x120] sm:$0xff] }
  0x56   :  { %v3420_v18 = vpop.eup %3419  ;;  %v2349_v38 = vmul.f32 %v2093_v23, %v1603_v26  ;;  %v1331_v39 = vadd.f32 2.0, %v819_v4  ;;  %v1332_v43 = vadd.f32 2.0, %v820_v30  ;;  %v2098_v46 = vmul.f32 %v561_v50, %v561_v50 }
  0x57   :  { %v3422_v41 = vpop.eup %3421  ;;  %v2350_v29 = vmul.f32 %v2094_v48, %v1605_v13  ;;  %v1607_v42 = vmul.f32 %v3420_v18, %v3136_v16  ;;  %v821_v44 = vmul.f32 0.1, %v564_v37  ;;  %v3138_v51 = vadd.f32 -1.0, %v817_v62 }
  0x58   :  { %v2605_v45 = vmul.f32 0.00125, %v2349_v38  ;;  %v1609_v31 = vmul.f32 %v3422_v41, %v3137_v28  ;;  %3427 = vrcp.f32 %v1331_v39  ;;  %v3139_v53 = vadd.f32 -1.0, %v818_v7  ;;  %v60_v38 = vld [vmem:[#allocation2 + $0x128] sm:$0xff] }
  0x59   :  { %v2606_v33 = vmul.f32 0.00125, %v2350_v29  ;;  %v2351_v34 = vmul.f32 %v2095_v35, %v1607_v42  ;;  %3429 = vrcp.f32 %v1332_v43  ;;  %v1333_v54 = vadd.f32 2.0, %v821_v44 }
  0x5a   :  { %2861 = vst [vmem:[#allocation5 + $0xa8] sm:$0xff] %v2605_v45  ;;  %v2352_v23 = vmul.f32 %v2096_v36, %v1609_v31  ;;  %v822_v55 = vmul.f32 0.1, %v565_v40  ;;  %v310_v56 = vmax.f32 %v54_v47, 10.0  ;;  %v311_v57 = vmax.f32 %v55_v32, 10.0 }
  0x5b   :  { %2862 = vst [vmem:[#allocation5 + $0xb0] sm:$0xff] %v2606_v33  ;;  %v2607_v48 = vmul.f32 0.00125, %v2351_v34  ;;  %v312_v58 = vmax.f32 %v56_v49, 10.0  ;;  %v3424_v50 = vpop.eup %3423  ;;  %v2099_v60 = vmul.f32 %v562_v2, %v562_v2  ;;  %3431 = vrcp.f32 %v1333_v54  ;;  %v61_v49 = vld [vmem:[#allocation2 + $0x130] sm:$0xff]  ;;  %v62_v54 = vld [vmem:[#allocation2 + $0x138] sm:$0xff] }
  0x5c   :  { %v2608_v52 = vmul.f32 0.00125, %v2352_v23  ;;  %v1334_v61 = vadd.f32 2.0, %v822_v55  ;;  %v3426_v3 = vpop.eup %3425  ;;  %v1611_v62 = vmul.f32 %v3424_v50, %v3138_v51  ;;  %v566_v5 = vmin.f32 %v310_v56, 40.0 }
  0x5d   :  { %2863 = vst [vmem:[#allocation5 + $0xb8] sm:$0xff] %v2607_v48  ;;  %v567_v6 = vmin.f32 %v311_v57, 40.0  ;;  %v568_v7 = vmin.f32 %v312_v58, 40.0  ;;  %v1613_v8 = vmul.f32 %v3426_v3, %v3139_v53  ;;  %v3140_v63 = vadd.f32 -1.0, %v819_v4  ;;  %v63_v57 = vld [vmem:[#allocation2 + $0x140] sm:$0xff] }
  0x5e   :  { %2864 = vst [vmem:[#allocation5 + $0xc0] sm:$0xff] %v2608_v52  ;;  %3433 = vrcp.f32 %v1334_v61  ;;  %v313_v10 = vmax.f32 %v57_v59, 10.0  ;;  %v2353_v11 = vmul.f32 %v2097_v27, %v1611_v62  ;;  %v823_v12 = vmul.f32 0.1, %v566_v5 }
  0x5f   :  { %v824_v14 = vmul.f32 0.1, %v567_v6  ;;  %v314_v1 = vmax.f32 %v58_v0, 10.0  ;;  %v2354_v9 = vmul.f32 %v2098_v46, %v1613_v8  ;;  %v3141_v16 = vadd.f32 -1.0, %v820_v30 }
  0x60   :  { %v2100_v17 = vmul.f32 %v4030_v20, %v4030_v20  ;;  %v825_v19 = vmul.f32 0.1, %v568_v7  ;;  %v2609_v2 = vmul.f32 0.00125, %v2353_v11  ;;  %v3142_v15 = vadd.f32 -1.0, %v821_v44 }
  0x61   :  { %v2101_v21 = vmul.f32 %v564_v37, %v564_v37  ;;  %v1335_v22 = vadd.f32 2.0, %v823_v12  ;;  %v2610_v26 = vmul.f32 0.00125, %v2354_v9  ;;  %v2102_v28 = vmul.f32 %v565_v40, %v565_v40 }
  0x62   :  { %v3428_v25 = vpop.eup %3427  ;;  %v1336_v4 = vadd.f32 2.0, %v824_v14  ;;  %v1337_v13 = vadd.f32 2.0, %v825_v19  ;;  %2865 = vst [vmem:[#allocation5 + $0xc8] sm:$0xff] %v2609_v2  ;;  %v569_v18 = vmin.f32 %v313_v10, 40.0  ;;  %v570_v30 = vmin.f32 %v314_v1, 40.0 }
  0x63   :  { %v3430_v35 = vpop.eup %3429  ;;  %v1615_v36 = vmul.f32 %v3428_v25, %v3140_v63  ;;  %3435 = vrcp.f32 %v1335_v22  ;;  %2866 = vst [vmem:[#allocation5 + $0xd0] sm:$0xff] %v2610_v26  ;;  %v3143_v27 = vadd.f32 -1.0, %v822_v55  ;;  %v315_v39 = vmax.f32 %v59_v24, 10.0 }
  0x64   :  { %v1617_v20 = vmul.f32 %v3430_v35, %v3141_v16  ;;  %3437 = vrcp.f32 %v1336_v4  ;;  %v2103_v41 = vmul.f32 %v566_v5, %v566_v5  ;;  %v826_v29 = vmul.f32 0.1, %v569_v18 }
  0x65   :  { %v2355_v37 = vmul.f32 %v2099_v60, %v1615_v36  ;;  %3439 = vrcp.f32 %v1337_v13  ;;  %v3432_v42 = vpop.eup %3431  ;;  %v827_v43 = vmul.f32 0.1, %v570_v30  ;;  %v571_v44 = vmin.f32 %v315_v39, 40.0 }
  0x66   :  { %v2356_v40 = vmul.f32 %v2100_v17, %v1617_v20  ;;  %v316_v45 = vmax.f32 %v60_v38, 10.0  ;;  %v1619_v46 = vmul.f32 %v3432_v42, %v3142_v15  ;;  %v2104_v47 = vmul.f32 %v567_v6, %v567_v6  ;;  %v64_v6 = vld [vmem:[#allocation2 + $0x148] sm:$0xff]  ;;  %v65_v38 = vld [vmem:[#allocation2 + $0x150] sm:$0xff]  ;;  %v66_v42 = vld [vmem:[#allocation2 + $0x158] sm:$0xff] }
  0x67   :  { %v2611_v31 = vmul.f32 0.00125, %v2355_v37  ;;  %v1338_v32 = vadd.f32 2.0, %v826_v29  ;;  %v2105_v51 = vmul.f32 %v568_v7, %v568_v7  ;;  %v1339_v23 = vadd.f32 2.0, %v827_v43 }
  0x68   :  { %v3434_v33 = vpop.eup %3433  ;;  %v2612_v34 = vmul.f32 0.00125, %v2356_v40  ;;  %v828_v53 = vmul.f32 0.1, %v571_v44  ;;  %v2357_v55 = vmul.f32 %v2101_v21, %v1619_v46  ;;  %v3144_v56 = vadd.f32 -1.0, %v823_v12 }
  0x69   :  { %2867 = vst [vmem:[#allocation5 + $0xd8] sm:$0xff] %v2611_v31  ;;  %v1621_v48 = vmul.f32 %v3434_v33, %v3143_v27  ;;  %3441 = vrcp.f32 %v1338_v32  ;;  %v3145_v58 = vadd.f32 -1.0, %v824_v14  ;;  %v572_v50 = vmin.f32 %v316_v45, 40.0 }
  0x6a   :  { %2868 = vst [vmem:[#allocation5 + $0xe0] sm:$0xff] %v2612_v34  ;;  %3443 = vrcp.f32 %v1339_v23  ;;  %v1340_v59 = vadd.f32 2.0, %v828_v53  ;;  %v2613_v52 = vmul.f32 0.00125, %v2357_v55  ;;  %v317_v61 = vmax.f32 %v61_v49, 10.0  ;;  %v68_v55 = vld [vmem:[#allocation2 + $0x168] sm:$0xff] }
  0x6b   :  { %v2358_v60 = vmul.f32 %v2102_v28, %v1621_v48  ;;  %v318_v0 = vmax.f32 %v62_v54, 10.0  ;;  %v3146_v3 = vadd.f32 -1.0, %v825_v19  ;;  %v829_v62 = vmul.f32 0.1, %v572_v50 }
  0x6c   :  { %3445 = vrcp.f32 %v1340_v59  ;;  %v319_v5 = vmax.f32 %v63_v57, 10.0  ;;  %2869 = vst [vmem:[#allocation5 + $0xe8] sm:$0xff] %v2613_v52  ;;  %v2106_v63 = vmul.f32 %v569_v18, %v569_v18  ;;  %v573_v10 = vmin.f32 %v317_v61, 40.0 }
  0x6d   :  { %v3436_v7 = vpop.eup %3435  ;;  %v2614_v8 = vmul.f32 0.00125, %v2358_v60  ;;  %v4039_v11 = vmin.f32 %v318_v0, 40.0  ;;  %v2107_v1 = vmul.f32 %v570_v30, %v570_v30  ;;  %v1341_v9 = vadd.f32 2.0, %v829_v62 }
  0x6e   :  { %v3438_v12 = vpop.eup %3437  ;;  %v1623_v14 = vmul.f32 %v3436_v7, %v3144_v56  ;;  %v4041_v16 = vmin.f32 %v319_v5, 40.0  ;;  %v830_v2 = vmul.f32 0.1, %v573_v10  ;;  %v320_v21 = vmax.f32 %v64_v6, 10.0 }
  0x6f   :  { %v3440_v17 = vpop.eup %3439  ;;  %2870 = vst [vmem:[#allocation5 + $0xf0] sm:$0xff] %v2614_v8  ;;  %v1625_v19 = vmul.f32 %v3438_v12, %v3145_v58  ;;  %v831_v15 = vmul.f32 0.1, %v4039_v11  ;;  %v3147_v25 = vadd.f32 -1.0, %v826_v29  ;;  %3447 = vrcp.f32 %v1341_v9  ;;  %v70_v9 = vld [vmem:[#allocation2 + $0x178] sm:$0xff] }
  0x70   :  { %v2359_v22 = vmul.f32 %v2103_v41, %v1623_v14  ;;  %v1627_v24 = vmul.f32 %v3440_v17, %v3146_v3  ;;  %v3148_v28 = vadd.f32 -1.0, %v827_v43  ;;  %v2108_v4 = vmul.f32 %v571_v44, %v571_v44  ;;  %v67_v41 = vld [vmem:[#allocation2 + $0x160] sm:$0xff] }
  0x71   :  { %v2360_v26 = vmul.f32 %v2104_v47, %v1625_v19  ;;  %v1342_v13 = vadd.f32 2.0, %v830_v2  ;;  %v1343_v18 = vadd.f32 2.0, %v831_v15  ;;  %v832_v30 = vmul.f32 0.1, %v4041_v16 }
  0x72   :  { %v2615_v35 = vmul.f32 0.00125, %v2359_v22  ;;  %v2361_v36 = vmul.f32 %v2105_v51, %v1627_v24  ;;  %v3149_v39 = vadd.f32 -1.0, %v828_v53  ;;  %v576_v37 = vmin.f32 %v320_v21, 40.0 }
  0x73   :  { %v3442_v20 = vpop.eup %3441  ;;  %v2616_v27 = vmul.f32 0.00125, %v2360_v26  ;;  %3449 = vrcp.f32 %v1342_v13  ;;  %v2109_v43 = vmul.f32 %v572_v50, %v572_v50  ;;  %v3150_v31 = vadd.f32 -1.0, %v829_v62 }
  0x74   :  { %v3444_v40 = vpop.eup %3443  ;;  %2871 = vst [vmem:[#allocation5 + $0xf8] sm:$0xff] %v2615_v35  ;;  %v2617_v29 = vmul.f32 0.00125, %v2361_v36  ;;  %v1629_v45 = vmul.f32 %v3442_v20, %v3147_v25  ;;  %3451 = vrcp.f32 %v1343_v18  ;;  %v1344_v46 = vadd.f32 2.0, %v832_v30 }
  0x75   :  { %2872 = vst [vmem:[#allocation5 + $0x100] sm:$0xff] %v2616_v27  ;;  %v1631_v44 = vmul.f32 %v3444_v40, %v3148_v28  ;;  %v833_v47 = vmul.f32 0.1, %v576_v37  ;;  %v321_v33 = vmax.f32 %v65_v38, 10.0  ;;  %v322_v34 = vmax.f32 %v66_v42, 10.0  ;;  %v71_v28 = vld [vmem:[#allocation2 + $0x180] sm:$0xff] }
  0x76   :  { %v3446_v32 = vpop.eup %3445  ;;  %2873 = vst [vmem:[#allocation5 + $0x108] sm:$0xff] %v2617_v29  ;;  %v2362_v49 = vmul.f32 %v2106_v63, %v1629_v45  ;;  %v323_v51 = vmax.f32 %v67_v41, 10.0  ;;  %v2110_v54 = vmul.f32 %v573_v10, %v573_v10  ;;  %3453 = vrcp.f32 %v1344_v46  ;;  %v69_v63 = vld [vmem:[#allocation2 + $0x170] sm:$0xff] }
  0x77   :  { %v2363_v23 = vmul.f32 %v2107_v1, %v1631_v44  ;;  %v1633_v53 = vmul.f32 %v3446_v32, %v3149_v39  ;;  %v1345_v56 = vadd.f32 2.0, %v833_v47  ;;  %v577_v57 = vmin.f32 %v321_v33, 40.0  ;;  %v72_v32 = vld [vmem:[#allocation2 + $0x188] sm:$0xff] }
  0x78   :  { %v2618_v48 = vmul.f32 0.00125, %v2362_v49  ;;  %v578_v58 = vmin.f32 %v322_v34, 40.0  ;;  %v3151_v52 = vadd.f32 -1.0, %v830_v2  ;;  %v4045_v60 = vmin.f32 %v323_v51, 40.0  ;;  %v73_v49 = vld [vmem:[#allocation2 + $0x190] sm:$0xff] }
  0x79   :  { %v2619_v59 = vmul.f32 0.00125, %v2363_v23  ;;  %v2364_v50 = vmul.f32 %v2108_v4, %v1633_v53  ;;  %v3448_v61 = vpop.eup %3447  ;;  %3455 = vrcp.f32 %v1345_v56  ;;  %v834_v0 = vmul.f32 0.1, %v577_v57  ;;  %v74_v53 = vld [vmem:[#allocation2 + $0x198] sm:$0xff] }
  0x7a   :  { %2874 = vst [vmem:[#allocation5 + $0x110] sm:$0xff] %v2618_v48  ;;  %v835_v3 = vmul.f32 0.1, %v578_v58  ;;  %v324_v62 = vmax.f32 %v68_v55, 10.0  ;;  %v1635_v6 = vmul.f32 %v3448_v61, %v3150_v31  ;;  %v3152_v7 = vadd.f32 -1.0, %v831_v15 }
  0x7b   :  { %2875 = vst [vmem:[#allocation5 + $0x118] sm:$0xff] %v2619_v59  ;;  %v2620_v5 = vmul.f32 0.00125, %v2364_v50  ;;  %v836_v8 = vmul.f32 0.1, %v4045_v60  ;;  %v2111_v10 = vmul.f32 %v4039_v11, %v4039_v11  ;;  %v2112_v12 = vmul.f32 %v4041_v16, %v4041_v16 }
  0x7c   :  { %v1346_v14 = vadd.f32 2.0, %v834_v0  ;;  %v1347_v1 = vadd.f32 2.0, %v835_v3  ;;  %v2365_v19 = vmul.f32 %v2109_v43, %v1635_v6  ;;  %v3153_v2 = vadd.f32 -1.0, %v832_v30 }
  0x7d   :  { %v3450_v17 = vpop.eup %3449  ;;  %2876 = vst [vmem:[#allocation5 + $0x120] sm:$0xff] %v2620_v5  ;;  %v2113_v21 = vmul.f32 %v576_v37, %v576_v37  ;;  %v1348_v22 = vadd.f32 2.0, %v836_v8  ;;  %v580_v25 = vmin.f32 %v324_v62, 40.0  ;;  %v325_v26 = vmax.f32 %v69_v63, 10.0 }
  0x7e   :  { %v3452_v24 = vpop.eup %3451  ;;  %v1637_v15 = vmul.f32 %v3450_v17, %v3151_v52  ;;  %3457 = vrcp.f32 %v1346_v14  ;;  %v2621_v4 = vmul.f32 0.00125, %v2365_v19  ;;  %v326_v13 = vmax.f32 %v70_v9, 10.0 }
  0x7f   :  { %v1639_v11 = vmul.f32 %v3452_v24, %v3152_v7  ;;  %3459 = vrcp.f32 %v1347_v1  ;;  %v3154_v35 = vadd.f32 -1.0, %v833_v47  ;;  %v837_v36 = vmul.f32 0.1, %v580_v25 }
  0x80   :  { %v2366_v16 = vmul.f32 %v2110_v54, %v1637_v15  ;;  %3461 = vrcp.f32 %v1348_v22  ;;  %v3454_v18 = vpop.eup %3453  ;;  %2877 = vst [vmem:[#allocation5 + $0x128] sm:$0xff] %v2621_v4  ;;  %v581_v30 = vmin.f32 %v325_v26, 40.0  ;;  %v582_v20 = vmin.f32 %v326_v13, 40.0  ;;  %v77_v4 = vld [vmem:[#allocation2 + $0x1b0] sm:$0xff] }
  0x81   :  { %v2367_v38 = vmul.f32 %v2111_v10, %v1639_v11  ;;  %v327_v27 = vmax.f32 %v71_v28, 10.0  ;;  %v1641_v37 = vmul.f32 %v3454_v18, %v3153_v2  ;;  %v2114_v42 = vmul.f32 %v577_v57, %v577_v57  ;;  %v76_v28 = vld [vmem:[#allocation2 + $0x1a8] sm:$0xff]  ;;  %v78_v18 = vld [vmem:[#allocation2 + $0x1b8] sm:$0xff] }
  0x82   :  { %v2622_v39 = vmul.f32 0.00125, %v2366_v16  ;;  %v1349_v41 = vadd.f32 2.0, %v837_v36  ;;  %v2115_v29 = vmul.f32 %v578_v58, %v578_v58  ;;  %v838_v45 = vmul.f32 0.1, %v581_v30 }
  0x83   :  { %v2623_v40 = vmul.f32 0.00125, %v2367_v38  ;;  %v839_v43 = vmul.f32 0.1, %v582_v20  ;;  %v3456_v44 = vpop.eup %3455  ;;  %v2368_v31 = vmul.f32 %v2112_v12, %v1641_v37  ;;  %v3155_v46 = vadd.f32 -1.0, %v834_v0 }
  0x84   :  { %2878 = vst [vmem:[#allocation5 + $0x130] sm:$0xff] %v2622_v39  ;;  %3463 = vrcp.f32 %v1349_v41  ;;  %v4052_v47 = vmin.f32 %v327_v27, 40.0  ;;  %v1643_v33 = vmul.f32 %v3456_v44, %v3154_v35  ;;  %v3156_v34 = vadd.f32 -1.0, %v835_v3 }
  0x85   :  { %2879 = vst [vmem:[#allocation5 + $0x138] sm:$0xff] %v2623_v40  ;;  %v3157_v51 = vadd.f32 -1.0, %v836_v8  ;;  %v1350_v23 = vadd.f32 2.0, %v838_v45  ;;  %v2624_v54 = vmul.f32 0.00125, %v2368_v31  ;;  %v2116_v55 = vmul.f32 %v4045_v60, %v4045_v60  ;;  %v75_v8 = vld [vmem:[#allocation2 + $0x1a0] sm:$0xff] }
  0x86   :  { %v1351_v48 = vadd.f32 2.0, %v839_v43  ;;  %v840_v56 = vmul.f32 0.1, %v4052_v47  ;;  %v2369_v57 = vmul.f32 %v2113_v21, %v1643_v33  ;;  %v328_v58 = vmax.f32 %v72_v32, 10.0 }
  0x87   :  { %3465 = vrcp.f32 %v1350_v23  ;;  %v329_v59 = vmax.f32 %v73_v49, 10.0  ;;  %2880 = vst [vmem:[#allocation5 + $0x140] sm:$0xff] %v2624_v54  ;;  %v2117_v52 = vmul.f32 %v580_v25, %v580_v25  ;;  %v330_v0 = vmax.f32 %v74_v53, 10.0 }
  0x88   :  { %v3458_v50 = vpop.eup %3457  ;;  %3467 = vrcp.f32 %v1351_v48  ;;  %v1352_v61 = vadd.f32 2.0, %v840_v56  ;;  %v2625_v62 = vmul.f32 0.00125, %v2369_v57  ;;  %v584_v6 = vmin.f32 %v328_v58, 40.0 }
  0x89   :  { %v3460_v3 = vpop.eup %3459  ;;  %v1645_v5 = vmul.f32 %v3458_v50, %v3155_v46  ;;  %v585_v7 = vmin.f32 %v329_v59, 40.0  ;;  %v3158_v10 = vadd.f32 -1.0, %v837_v36  ;;  %v4057_v12 = vmin.f32 %v330_v0, 40.0 }
  0x8a   :  { %v3462_v60 = vpop.eup %3461  ;;  %v1647_v63 = vmul.f32 %v3460_v3, %v3156_v34  ;;  %3469 = vrcp.f32 %v1352_v61  ;;  %2881 = vst [vmem:[#allocation5 + $0x148] sm:$0xff] %v2625_v62  ;;  %v2118_v9 = vmul.f32 %v581_v30, %v581_v30  ;;  %v841_v17 = vmul.f32 0.1, %v584_v6  ;;  %v80_v61 = vld [vmem:[#allocation2 + $0x1c8] sm:$0xff] }
  0x8b   :  { %v2370_v14 = vmul.f32 %v2114_v42, %v1645_v5  ;;  %v1649_v1 = vmul.f32 %v3462_v60, %v3157_v51  ;;  %v842_v2 = vmul.f32 0.1, %v585_v7  ;;  %v843_v21 = vmul.f32 0.1, %v4057_v12 }
  0x8c   :  { %v2371_v19 = vmul.f32 %v2115_v29, %v1647_v63  ;;  %v331_v22 = vmax.f32 %v75_v8, 10.0  ;;  %v2119_v25 = vmul.f32 %v582_v20, %v582_v20  ;;  %v1353_v26 = vadd.f32 2.0, %v841_v17 }
  0x8d   :  { %v2626_v24 = vmul.f32 0.00125, %v2370_v14  ;;  %v2372_v15 = vmul.f32 %v2116_v55, %v1649_v1  ;;  %v3159_v16 = vadd.f32 -1.0, %v838_v45  ;;  %v3160_v35 = vadd.f32 -1.0, %v839_v43 }
  0x8e   :  { %v3464_v11 = vpop.eup %3463  ;;  %v2627_v13 = vmul.f32 0.00125, %v2371_v19  ;;  %v1354_v36 = vadd.f32 2.0, %v842_v2  ;;  %3471 = vrcp.f32 %v1353_v26  ;;  %v1355_v27 = vadd.f32 2.0, %v843_v21 }
  0x8f   :  { %2882 = vst [vmem:[#allocation5 + $0x150] sm:$0xff] %v2626_v24  ;;  %v2628_v38 = vmul.f32 0.00125, %v2372_v15  ;;  %v1651_v30 = vmul.f32 %v3464_v11, %v3158_v10  ;;  %v3161_v39 = vadd.f32 -1.0, %v840_v56  ;;  %v587_v37 = vmin.f32 %v331_v22, 40.0  ;;  %v82_v24 = vld [vmem:[#allocation2 + $0x1d8] sm:$0xff] }
  0x90   :  { %2883 = vst [vmem:[#allocation5 + $0x158] sm:$0xff] %v2627_v13  ;;  %3473 = vrcp.f32 %v1354_v36  ;;  %v332_v42 = vmax.f32 %v76_v28, 10.0  ;;  %v333_v40 = vmax.f32 %v77_v4, 10.0  ;;  %v334_v29 = vmax.f32 %v78_v18, 10.0 }
  0x91   :  { %v3466_v20 = vpop.eup %3465  ;;  %2884 = vst [vmem:[#allocation5 + $0x160] sm:$0xff] %v2628_v38  ;;  %v2373_v41 = vmul.f32 %v2117_v52, %v1651_v30  ;;  %3475 = vrcp.f32 %v1355_v27  ;;  %v2120_v44 = vmul.f32 %v4052_v47, %v4052_v47  ;;  %v844_v31 = vmul.f32 0.1, %v587_v37  ;;  %v79_v52 = vld [vmem:[#allocation2 + $0x1c0] sm:$0xff] }
  0x92   :  { %v3468_v45 = vpop.eup %3467  ;;  %v1653_v43 = vmul.f32 %v3466_v20, %v3159_v16  ;;  %v588_v46 = vmin.f32 %v332_v42, 40.0  ;;  %v2121_v33 = vmul.f32 %v584_v6, %v584_v6  ;;  %v4062_v34 = vmin.f32 %v333_v40, 40.0  ;;  %v81_v6 = vld [vmem:[#allocation2 + $0x1d0] sm:$0xff]  ;;  %v84_v40 = vld [vmem:[#allocation2 + $0x1e8] sm:$0xff] }
  0x93   :  { %v2629_v32 = vmul.f32 0.00125, %v2373_v41  ;;  %v1655_v49 = vmul.f32 %v3468_v45, %v3160_v35  ;;  %v1356_v53 = vadd.f32 2.0, %v844_v31  ;;  %v4064_v55 = vmin.f32 %v334_v29, 40.0 }
  0x94   :  { %v3470_v51 = vpop.eup %3469  ;;  %v2374_v23 = vmul.f32 %v2118_v9, %v1653_v43  ;;  %v845_v54 = vmul.f32 0.1, %v588_v46  ;;  %v2122_v57 = vmul.f32 %v585_v7, %v585_v7  ;;  %v846_v58 = vmul.f32 0.1, %v4062_v34 }
  0x95   :  { %2885 = vst [vmem:[#allocation5 + $0x168] sm:$0xff] %v2629_v32  ;;  %v2375_v48 = vmul.f32 %v2119_v25, %v1655_v49  ;;  %v1657_v56 = vmul.f32 %v3470_v51, %v3161_v39  ;;  %v3162_v59 = vadd.f32 -1.0, %v841_v17  ;;  %3477 = vrcp.f32 %v1356_v53  ;;  %v83_v39 = vld [vmem:[#allocation2 + $0x1e0] sm:$0xff] }
  0x96   :  { %v2630_v47 = vmul.f32 0.00125, %v2374_v23  ;;  %v1357_v50 = vadd.f32 2.0, %v845_v54  ;;  %v3163_v62 = vadd.f32 -1.0, %v842_v2  ;;  %v1358_v5 = vadd.f32 2.0, %v846_v58 }
  0x97   :  { %v2631_v0 = vmul.f32 0.00125, %v2375_v48  ;;  %v2376_v3 = vmul.f32 %v2120_v44, %v1657_v56  ;;  %v3164_v8 = vadd.f32 -1.0, %v843_v21  ;;  %v2123_v60 = vmul.f32 %v4057_v12, %v4057_v12 }
  0x98   :  { %2886 = vst [vmem:[#allocation5 + $0x170] sm:$0xff] %v2630_v47  ;;  %3479 = vrcp.f32 %v1357_v50  ;;  %v847_v7 = vmul.f32 0.1, %v4064_v55  ;;  %v3472_v63 = vpop.eup %3471  ;;  %v335_v14 = vmax.f32 %v79_v52, 10.0  ;;  %v336_v1 = vmax.f32 %v80_v61, 10.0 }
  0x99   :  { %2887 = vst [vmem:[#allocation5 + $0x178] sm:$0xff] %v2631_v0  ;;  %v2632_v10 = vmul.f32 0.00125, %v2376_v3  ;;  %3481 = vrcp.f32 %v1358_v5  ;;  %v1659_v17 = vmul.f32 %v3472_v63, %v3162_v59  ;;  %v2124_v19 = vmul.f32 %v587_v37, %v587_v37 }
  0x9a   :  { %v3474_v9 = vpop.eup %3473  ;;  %v1359_v2 = vadd.f32 2.0, %v847_v7  ;;  %v337_v22 = vmax.f32 %v81_v6, 10.0  ;;  %v3165_v25 = vadd.f32 -1.0, %v844_v31  ;;  %v591_v12 = vmin.f32 %v335_v14, 40.0  ;;  %v87_v14 = vld [vmem:[#allocation2 + $0x200] sm:$0xff] }
  0x9b   :  { %v3476_v15 = vpop.eup %3475  ;;  %2888 = vst [vmem:[#allocation5 + $0x180] sm:$0xff] %v2632_v10  ;;  %v1661_v21 = vmul.f32 %v3474_v9, %v3163_v62  ;;  %v592_v26 = vmin.f32 %v336_v1, 40.0  ;;  %v2377_v28 = vmul.f32 %v2121_v33, %v1659_v17  ;;  %v338_v36 = vmax.f32 %v82_v24, 10.0  ;;  %v88_v1 = vld [vmem:[#allocation2 + $0x208] sm:$0xff] }
  0x9c   :  { %v1663_v4 = vmul.f32 %v3476_v15, %v3164_v8  ;;  %3483 = vrcp.f32 %v1359_v2  ;;  %v4070_v11 = vmin.f32 %v337_v22, 40.0  ;;  %v848_v16 = vmul.f32 0.1, %v591_v12  ;;  %v89_v22 = vld [vmem:[#allocation2 + $0x210] sm:$0xff] }
  0x9d   :  { %v2378_v13 = vmul.f32 %v2122_v57, %v1661_v21  ;;  %v849_v35 = vmul.f32 0.1, %v592_v26  ;;  %v2633_v18 = vmul.f32 0.00125, %v2377_v28  ;;  %v2125_v30 = vmul.f32 %v588_v46, %v588_v46 }
  0x9e   :  { %v2379_v38 = vmul.f32 %v2123_v60, %v1663_v4  ;;  %v850_v27 = vmul.f32 0.1, %v4070_v11  ;;  %v3166_v42 = vadd.f32 -1.0, %v845_v54  ;;  %v3167_v20 = vadd.f32 -1.0, %v846_v58  ;;  %v85_v54 = vld [vmem:[#allocation2 + $0x1f0] sm:$0xff]  ;;  %v86_v60 = vld [vmem:[#allocation2 + $0x1f8] sm:$0xff] }
  0x9f   :  { %v2634_v37 = vmul.f32 0.00125, %v2378_v13  ;;  %v1360_v41 = vadd.f32 2.0, %v848_v16  ;;  %v3478_v29 = vpop.eup %3477  ;;  %2889 = vst [vmem:[#allocation5 + $0x188] sm:$0xff] %v2633_v18  ;;  %v2126_v43 = vmul.f32 %v4062_v34, %v4062_v34  ;;  %v1361_v44 = vadd.f32 2.0, %v849_v35 }
  0xa0   :  { %v2635_v45 = vmul.f32 0.00125, %v2379_v38  ;;  %v1362_v31 = vadd.f32 2.0, %v850_v27  ;;  %v1665_v32 = vmul.f32 %v3478_v29, %v3165_v25  ;;  %v2127_v46 = vmul.f32 %v4064_v55, %v4064_v55 }
  0xa1   :  { %2890 = vst [vmem:[#allocation5 + $0x190] sm:$0xff] %v2634_v37  ;;  %3485 = vrcp.f32 %v1360_v41  ;;  %v594_v49 = vmin.f32 %v338_v36, 40.0  ;;  %v3168_v51 = vadd.f32 -1.0, %v847_v7  ;;  %v339_v23 = vmax.f32 %v83_v39, 10.0 }
  0xa2   :  { %v3480_v33 = vpop.eup %3479  ;;  %2891 = vst [vmem:[#allocation5 + $0x198] sm:$0xff] %v2635_v45  ;;  %3487 = vrcp.f32 %v1361_v44  ;;  %v340_v53 = vmax.f32 %v84_v40, 10.0  ;;  %v2380_v56 = vmul.f32 %v2124_v19, %v1665_v32  ;;  %v2128_v47 = vmul.f32 %v591_v12, %v591_v12 }
  0xa3   :  { %v3482_v48 = vpop.eup %3481  ;;  %v1667_v57 = vmul.f32 %v3480_v33, %v3166_v42  ;;  %3489 = vrcp.f32 %v1362_v31  ;;  %v851_v34 = vmul.f32 0.1, %v594_v49  ;;  %v595_v59 = vmin.f32 %v339_v23, 40.0  ;;  %v91_v23 = vld [vmem:[#allocation2 + $0x220] sm:$0xff] }
  0xa4   :  { %v1669_v58 = vmul.f32 %v3482_v48, %v3167_v20  ;;  %v596_v50 = vmin.f32 %v340_v53, 40.0  ;;  %v2636_v52 = vmul.f32 0.00125, %v2380_v56  ;;  %v341_v0 = vmax.f32 %v85_v54, 10.0 }
  0xa5   :  { %v2381_v55 = vmul.f32 %v2125_v30, %v1667_v57  ;;  %v1363_v61 = vadd.f32 2.0, %v851_v34  ;;  %v2129_v5 = vmul.f32 %v592_v26, %v592_v26  ;;  %v852_v6 = vmul.f32 0.1, %v595_v59 }
  0xa6   :  { %v3484_v3 = vpop.eup %3483  ;;  %v2382_v62 = vmul.f32 %v2126_v43, %v1669_v58  ;;  %v853_v8 = vmul.f32 0.1, %v596_v50  ;;  %2892 = vst [vmem:[#allocation5 + $0x1a0] sm:$0xff] %v2636_v52  ;;  %v3169_v10 = vadd.f32 -1.0, %v848_v16  ;;  %v3170_v17 = vadd.f32 -1.0, %v849_v35 }
  0xa7   :  { %v2637_v7 = vmul.f32 0.00125, %v2381_v55  ;;  %v1671_v63 = vmul.f32 %v3484_v3, %v3168_v51  ;;  %3491 = vrcp.f32 %v1363_v61  ;;  %v3171_v19 = vadd.f32 -1.0, %v850_v27  ;;  %v90_v51 = vld [vmem:[#allocation2 + $0x218] sm:$0xff] }
  0xa8   :  { %v2638_v9 = vmul.f32 0.00125, %v2382_v62  ;;  %v1364_v2 = vadd.f32 2.0, %v852_v6  ;;  %v1365_v15 = vadd.f32 2.0, %v853_v8  ;;  %v597_v21 = vmin.f32 %v341_v0, 40.0 }
  0xa9   :  { %2893 = vst [vmem:[#allocation5 + $0x1a8] sm:$0xff] %v2637_v7  ;;  %v2383_v24 = vmul.f32 %v2127_v46, %v1671_v63  ;;  %v342_v25 = vmax.f32 %v86_v60, 10.0  ;;  %v2130_v12 = vmul.f32 %v4070_v11, %v4070_v11  ;;  %v343_v26 = vmax.f32 %v87_v14, 10.0 }
  0xaa   :  { %2894 = vst [vmem:[#allocation5 + $0x1b0] sm:$0xff] %v2638_v9  ;;  %3493 = vrcp.f32 %v1364_v2  ;;  %v344_v28 = vmax.f32 %v88_v1, 10.0  ;;  %v854_v16 = vmul.f32 0.1, %v597_v21  ;;  %v345_v35 = vmax.f32 %v89_v22, 10.0 }
  0xab   :  { %v3486_v4 = vpop.eup %3485  ;;  %v2639_v13 = vmul.f32 0.00125, %v2383_v24  ;;  %3495 = vrcp.f32 %v1365_v15  ;;  %v2131_v38 = vmul.f32 %v594_v49, %v594_v49  ;;  %v598_v30 = vmin.f32 %v342_v25, 40.0 }
  0xac   :  { %v3488_v36 = vpop.eup %3487  ;;  %v1673_v18 = vmul.f32 %v3486_v4, %v3169_v10  ;;  %v599_v27 = vmin.f32 %v343_v26, 40.0  ;;  %v3172_v42 = vadd.f32 -1.0, %v851_v34  ;;  %v1366_v20 = vadd.f32 2.0, %v854_v16 }
  0xad   :  { %v3490_v39 = vpop.eup %3489  ;;  %2895 = vst [vmem:[#allocation5 + $0x1b8] sm:$0xff] %v2639_v13  ;;  %v1675_v37 = vmul.f32 %v3488_v36, %v3170_v17  ;;  %v4079_v41 = vmin.f32 %v344_v28, 40.0  ;;  %v2132_v29 = vmul.f32 %v595_v59, %v595_v59  ;;  %v855_v45 = vmul.f32 0.1, %v598_v30 }
  0xae   :  { %v2384_v11 = vmul.f32 %v2128_v47, %v1673_v18  ;;  %v1677_v40 = vmul.f32 %v3490_v39, %v3171_v19  ;;  %3497 = vrcp.f32 %v1366_v20  ;;  %v856_v44 = vmul.f32 0.1, %v599_v27 }
  0xaf   :  { %v2385_v43 = vmul.f32 %v2129_v5, %v1675_v37  ;;  %v4081_v31 = vmin.f32 %v345_v35, 40.0  ;;  %v2133_v49 = vmul.f32 %v596_v50, %v596_v50  ;;  %v1367_v33 = vadd.f32 2.0, %v855_v45  ;;  %v92_v5 = vld [vmem:[#allocation2 + $0x228] sm:$0xff] }
  0xb0   :  { %v2640_v32 = vmul.f32 0.00125, %v2384_v11  ;;  %v2386_v46 = vmul.f32 %v2130_v12, %v1677_v40  ;;  %v3173_v48 = vadd.f32 -1.0, %v852_v6  ;;  %v1368_v56 = vadd.f32 2.0, %v856_v44  ;;  %v93_v6 = vld [vmem:[#allocation2 + $0x230] sm:$0xff]  ;;  %v94_v11 = vld [vmem:[#allocation2 + $0x238] sm:$0xff] }
  0xb1   :  { %v3492_v53 = vpop.eup %3491  ;;  %v2641_v54 = vmul.f32 0.00125, %v2385_v43  ;;  %v857_v57 = vmul.f32 0.1, %v4079_v41  ;;  %v3174_v47 = vadd.f32 -1.0, %v853_v8  ;;  %3499 = vrcp.f32 %v1367_v33  ;;  %v95_v40 = vld [vmem:[#allocation2 + $0x240] sm:$0xff] }
  0xb2   :  { %2896 = vst [vmem:[#allocation5 + $0x1c0] sm:$0xff] %v2640_v32  ;;  %v2642_v34 = vmul.f32 0.00125, %v2386_v46  ;;  %v1679_v58 = vmul.f32 %v3492_v53, %v3172_v42  ;;  %v2134_v59 = vmul.f32 %v597_v21, %v597_v21  ;;  %3501 = vrcp.f32 %v1368_v56  ;;  %v96_v32 = vld [vmem:[#allocation2 + $0x248] sm:$0xff] }
  0xb3   :  { %2897 = vst [vmem:[#allocation5 + $0x1c8] sm:$0xff] %v2641_v54  ;;  %v1369_v52 = vadd.f32 2.0, %v857_v57  ;;  %v858_v50 = vmul.f32 0.1, %v4081_v31  ;;  %v3175_v0 = vadd.f32 -1.0, %v854_v16  ;;  %v346_v3 = vmax.f32 %v90_v51, 10.0 }
  0xb4   :  { %v3494_v55 = vpop.eup %3493  ;;  %2898 = vst [vmem:[#allocation5 + $0x1d0] sm:$0xff] %v2642_v34  ;;  %v2387_v61 = vmul.f32 %v2131_v38, %v1679_v58  ;;  %v347_v62 = vmax.f32 %v91_v23, 10.0  ;;  %v2135_v63 = vmul.f32 %v598_v30, %v598_v30  ;;  %v348_v19 = vmax.f32 %v92_v5, 10.0  ;;  %v97_v51 = vld [vmem:[#allocation2 + $0x250] sm:$0xff] }
  0xb5   :  { %v3496_v60 = vpop.eup %3495  ;;  %v1681_v7 = vmul.f32 %v3494_v55, %v3173_v48  ;;  %3503 = vrcp.f32 %v1369_v52  ;;  %v1370_v8 = vadd.f32 2.0, %v858_v50  ;;  %v602_v1 = vmin.f32 %v346_v3, 40.0 }
  0xb6   :  { %v2643_v10 = vmul.f32 0.00125, %v2387_v61  ;;  %v1683_v14 = vmul.f32 %v3496_v60, %v3174_v47  ;;  %v4085_v9 = vmin.f32 %v347_v62, 40.0  ;;  %v349_v2 = vmax.f32 %v93_v6, 10.0  ;;  %v98_v60 = vld [vmem:[#allocation2 + $0x258] sm:$0xff] }
  0xb7   :  { %v2388_v17 = vmul.f32 %v2132_v29, %v1681_v7  ;;  %3505 = vrcp.f32 %v1370_v8  ;;  %v2136_v24 = vmul.f32 %v599_v27, %v599_v27  ;;  %v859_v15 = vmul.f32 0.1, %v602_v1 }
  0xb8   :  { %2899 = vst [vmem:[#allocation5 + $0x1d8] sm:$0xff] %v2643_v10  ;;  %v2389_v22 = vmul.f32 %v2133_v49, %v1683_v14  ;;  %v860_v21 = vmul.f32 0.1, %v4085_v9  ;;  %v3498_v25 = vpop.eup %3497  ;;  %v3176_v26 = vadd.f32 -1.0, %v855_v45  ;;  %v604_v28 = vmin.f32 %v348_v19, 40.0  ;;  %v99_v14 = vld [vmem:[#allocation2 + $0x260] sm:$0xff] }
  0xb9   :  { %v2644_v12 = vmul.f32 0.00125, %v2388_v17  ;;  %v4088_v4 = vmin.f32 %v349_v2, 40.0  ;;  %v1685_v16 = vmul.f32 %v3498_v25, %v3175_v0  ;;  %v3177_v35 = vadd.f32 -1.0, %v856_v44 }
  0xba   :  { %v2645_v13 = vmul.f32 0.00125, %v2389_v22  ;;  %v1371_v36 = vadd.f32 2.0, %v859_v15  ;;  %v3178_v18 = vadd.f32 -1.0, %v857_v57  ;;  %v2137_v38 = vmul.f32 %v4079_v41, %v4079_v41 }
  0xbb   :  { %2900 = vst [vmem:[#allocation5 + $0x1e0] sm:$0xff] %v2644_v12  ;;  %v1372_v30 = vadd.f32 2.0, %v860_v21  ;;  %v861_v27 = vmul.f32 0.1, %v604_v28  ;;  %v3500_v39 = vpop.eup %3499  ;;  %v2390_v37 = vmul.f32 %v2134_v59, %v1685_v16  ;;  %v2138_v42 = vmul.f32 %v4081_v31, %v4081_v31 }
  0xbc   :  { %2901 = vst [vmem:[#allocation5 + $0x1e8] sm:$0xff] %v2645_v13  ;;  %3507 = vrcp.f32 %v1371_v36  ;;  %v862_v20 = vmul.f32 0.1, %v4088_v4  ;;  %v3502_v29 = vpop.eup %3501  ;;  %v1687_v45 = vmul.f32 %v3500_v39, %v3176_v26  ;;  %v3179_v43 = vadd.f32 -1.0, %v858_v50 }
  0xbd   :  { %3509 = vrcp.f32 %v1372_v30  ;;  %v1373_v44 = vadd.f32 2.0, %v861_v27  ;;  %v2646_v41 = vmul.f32 0.00125, %v2390_v37  ;;  %v1689_v46 = vmul.f32 %v3502_v29, %v3177_v35 }
  0xbe   :  { %v2139_v49 = vmul.f32 %v602_v1, %v602_v1  ;;  %v1374_v33 = vadd.f32 2.0, %v862_v20  ;;  %v2391_v53 = vmul.f32 %v2135_v63, %v1687_v45  ;;  %v350_v31 = vmax.f32 %v94_v11, 10.0 }
  0xbf   :  { %v3504_v23 = vpop.eup %3503  ;;  %3511 = vrcp.f32 %v1373_v44  ;;  %v351_v54 = vmax.f32 %v95_v40, 10.0  ;;  %2902 = vst [vmem:[#allocation5 + $0x1f0] sm:$0xff] %v2646_v41  ;;  %v2392_v48 = vmul.f32 %v2136_v24, %v1689_v46  ;;  %v352_v57 = vmax.f32 %v96_v32, 10.0  ;;  %v101_v41 = vld [vmem:[#allocation2 + $0x270] sm:$0xff]  ;;  %v102_v46 = vld [vmem:[#allocation2 + $0x278] sm:$0xff] }
  0xc0   :  { %v1691_v56 = vmul.f32 %v3504_v23, %v3178_v18  ;;  %3513 = vrcp.f32 %v1374_v33  ;;  %v2647_v58 = vmul.f32 0.00125, %v2391_v53  ;;  %v606_v47 = vmin.f32 %v350_v31, 40.0  ;;  %v103_v53 = vld [vmem:[#allocation2 + $0x280] sm:$0xff] }
  0xc1   :  { %v3506_v34 = vpop.eup %3505  ;;  %v607_v59 = vmin.f32 %v351_v54, 40.0  ;;  %v353_v52 = vmax.f32 %v97_v51, 10.0  ;;  %v2648_v50 = vmul.f32 0.00125, %v2392_v48  ;;  %v608_v0 = vmin.f32 %v352_v57, 40.0 }
  0xc2   :  { %v2393_v55 = vmul.f32 %v2137_v38, %v1691_v56  ;;  %v1693_v61 = vmul.f32 %v3506_v34, %v3179_v43  ;;  %2903 = vst [vmem:[#allocation5 + $0x1f8] sm:$0xff] %v2647_v58  ;;  %v3180_v3 = vadd.f32 -1.0, %v859_v15  ;;  %v2140_v62 = vmul.f32 %v4085_v9, %v4085_v9  ;;  %v100_v43 = vld [vmem:[#allocation2 + $0x268] sm:$0xff] }
  0xc3   :  { %v863_v5 = vmul.f32 0.1, %v606_v47  ;;  %v864_v6 = vmul.f32 0.1, %v607_v59  ;;  %2904 = vst [vmem:[#allocation5 + $0x200] sm:$0xff] %v2648_v50  ;;  %v3181_v8 = vadd.f32 -1.0, %v860_v21  ;;  %v2141_v17 = vmul.f32 %v604_v28, %v604_v28 }
  0xc4   :  { %v2649_v7 = vmul.f32 0.00125, %v2393_v55  ;;  %v2394_v63 = vmul.f32 %v2138_v42, %v1693_v61  ;;  %v865_v10 = vmul.f32 0.1, %v608_v0  ;;  %v3182_v1 = vadd.f32 -1.0, %v861_v27  ;;  %v104_v50 = vld [vmem:[#allocation2 + $0x288] sm:$0xff] }
  0xc5   :  { %v1375_v19 = vadd.f32 2.0, %v863_v5  ;;  %v1376_v2 = vadd.f32 2.0, %v864_v6  ;;  %v3183_v15 = vadd.f32 -1.0, %v862_v20  ;;  %v609_v12 = vmin.f32 %v353_v52, 40.0 }
  0xc6   :  { %v3508_v22 = vpop.eup %3507  ;;  %2905 = vst [vmem:[#allocation5 + $0x208] sm:$0xff] %v2649_v7  ;;  %v2650_v24 = vmul.f32 0.00125, %v2394_v63  ;;  %v1377_v25 = vadd.f32 2.0, %v865_v10  ;;  %v354_v13 = vmax.f32 %v98_v60, 10.0  ;;  %v355_v16 = vmax.f32 %v99_v14, 10.0 }
  0xc7   :  { %v3510_v9 = vpop.eup %3509  ;;  %v1695_v26 = vmul.f32 %v3508_v22, %v3180_v3  ;;  %3515 = vrcp.f32 %v1375_v19  ;;  %v2142_v21 = vmul.f32 %v4088_v4, %v4088_v4  ;;  %v866_v28 = vmul.f32 0.1, %v609_v12  ;;  %v106_v14 = vld [vmem:[#allocation2 + $0x298] sm:$0xff] }
  0xc8   :  { %2906 = vst [vmem:[#allocation5 + $0x210] sm:$0xff] %v2650_v24  ;;  %v1697_v35 = vmul.f32 %v3510_v9, %v3181_v8  ;;  %3517 = vrcp.f32 %v1376_v2  ;;  %v610_v38 = vmin.f32 %v354_v13, 40.0  ;;  %v4099_v30 = vmin.f32 %v355_v16, 40.0  ;;  %v105_v8 = vld [vmem:[#allocation2 + $0x290] sm:$0xff] }
  0xc9   :  { %v3512_v36 = vpop.eup %3511  ;;  %v2395_v18 = vmul.f32 %v2139_v49, %v1695_v26  ;;  %3519 = vrcp.f32 %v1377_v25  ;;  %v2143_v42 = vmul.f32 %v606_v47, %v606_v47  ;;  %v1378_v20 = vadd.f32 2.0, %v866_v28 }
  0xca   :  { %v3514_v27 = vpop.eup %3513  ;;  %v2396_v39 = vmul.f32 %v2140_v62, %v1697_v35  ;;  %v1699_v37 = vmul.f32 %v3512_v36, %v3182_v1  ;;  %v2144_v29 = vmul.f32 %v607_v59, %v607_v59  ;;  %v867_v45 = vmul.f32 0.1, %v610_v38 }
  0xcb   :  { %v2651_v11 = vmul.f32 0.00125, %v2395_v18  ;;  %v1701_v40 = vmul.f32 %v3514_v27, %v3183_v15  ;;  %3521 = vrcp.f32 %v1378_v20  ;;  %v868_v32 = vmul.f32 0.1, %v4099_v30 }
  0xcc   :  { %v2652_v44 = vmul.f32 0.00125, %v2396_v39  ;;  %v2397_v4 = vmul.f32 %v2141_v17, %v1699_v37  ;;  %v3184_v33 = vadd.f32 -1.0, %v863_v5  ;;  %v2145_v51 = vmul.f32 %v608_v0, %v608_v0 }
  0xcd   :  { %2907 = vst [vmem:[#allocation5 + $0x218] sm:$0xff] %v2651_v11  ;;  %v2398_v49 = vmul.f32 %v2142_v21, %v1701_v40  ;;  %v1379_v23 = vadd.f32 2.0, %v867_v45  ;;  %v3185_v54 = vadd.f32 -1.0, %v864_v6  ;;  %v1380_v48 = vadd.f32 2.0, %v868_v32 }
  0xce   :  { %2908 = vst [vmem:[#allocation5 + $0x220] sm:$0xff] %v2652_v44  ;;  %v2653_v31 = vmul.f32 0.00125, %v2397_v4  ;;  %v356_v56 = vmax.f32 %v100_v43, 10.0  ;;  %v357_v34 = vmax.f32 %v101_v41, 10.0  ;;  %v358_v58 = vmax.f32 %v102_v46, 10.0 }
  0xcf   :  { %v2654_v57 = vmul.f32 0.00125, %v2398_v49  ;;  %3523 = vrcp.f32 %v1379_v23  ;;  %v3186_v47 = vadd.f32 -1.0, %v865_v10  ;;  %v359_v52 = vmax.f32 %v103_v53, 10.0 }
  0xd0   :  { %2909 = vst [vmem:[#allocation5 + $0x228] sm:$0xff] %v2653_v31  ;;  %3525 = vrcp.f32 %v1380_v48  ;;  %v612_v59 = vmin.f32 %v356_v56, 40.0  ;;  %v3187_v61 = vadd.f32 -1.0, %v866_v28  ;;  %v2146_v0 = vmul.f32 %v609_v12, %v609_v12 }
  0xd1   :  { %v3516_v55 = vpop.eup %3515  ;;  %2910 = vst [vmem:[#allocation5 + $0x230] sm:$0xff] %v2654_v57  ;;  %v613_v3 = vmin.f32 %v357_v34, 40.0  ;;  %v4102_v62 = vmin.f32 %v358_v58, 40.0  ;;  %v3188_v60 = vadd.f32 -1.0, %v867_v45  ;;  %v2147_v7 = vmul.f32 %v610_v38, %v610_v38  ;;  %v107_v45 = vld [vmem:[#allocation2 + $0x2a0] sm:$0xff]  ;;  %v108_v57 = vld [vmem:[#allocation2 + $0x2a8] sm:$0xff] }
  0xd2   :  { %v3518_v5 = vpop.eup %3517  ;;  %v1703_v6 = vmul.f32 %v3516_v55, %v3184_v33  ;;  %v869_v63 = vmul.f32 0.1, %v612_v59  ;;  %v360_v2 = vmax.f32 %v104_v50, 10.0  ;;  %v615_v25 = vmin.f32 %v359_v52, 40.0  ;;  %v109_v34 = vld [vmem:[#allocation2 + $0x2b0] sm:$0xff]  ;;  %v110_v50 = vld [vmem:[#allocation2 + $0x2b8] sm:$0xff] }
  0xd3   :  { %v3520_v1 = vpop.eup %3519  ;;  %v1705_v10 = vmul.f32 %v3518_v5, %v3185_v54  ;;  %v870_v17 = vmul.f32 0.1, %v613_v3  ;;  %v871_v19 = vmul.f32 0.1, %v4102_v62  ;;  %v361_v26 = vmax.f32 %v105_v8, 10.0 }
  0xd4   :  { %v2399_v22 = vmul.f32 %v2143_v42, %v1703_v6  ;;  %v1707_v24 = vmul.f32 %v3520_v1, %v3186_v47  ;;  %v1381_v15 = vadd.f32 2.0, %v869_v63  ;;  %v362_v13 = vmax.f32 %v106_v14, 10.0 }
  0xd5   :  { %v2400_v12 = vmul.f32 %v2144_v29, %v1705_v10  ;;  %v1382_v9 = vadd.f32 2.0, %v870_v17  ;;  %v3522_v16 = vpop.eup %3521  ;;  %v1383_v28 = vadd.f32 2.0, %v871_v19  ;;  %v3189_v38 = vadd.f32 -1.0, %v868_v32 }
  0xd6   :  { %v2655_v35 = vmul.f32 0.00125, %v2399_v22  ;;  %v2401_v21 = vmul.f32 %v2145_v51, %v1707_v24  ;;  %3527 = vrcp.f32 %v1381_v15  ;;  %v1709_v18 = vmul.f32 %v3522_v16, %v3187_v61 }
  0xd7   :  { %v2656_v36 = vmul.f32 0.00125, %v2400_v12  ;;  %3529 = vrcp.f32 %v1382_v9  ;;  %v2148_v39 = vmul.f32 %v4099_v30, %v4099_v30  ;;  %v872_v37 = vmul.f32 0.1, %v615_v25 }
  0xd8   :  { %2911 = vst [vmem:[#allocation5 + $0x238] sm:$0xff] %v2655_v35  ;;  %v2657_v27 = vmul.f32 0.00125, %v2401_v21  ;;  %3531 = vrcp.f32 %v1383_v28  ;;  %v2402_v20 = vmul.f32 %v2146_v0, %v1709_v18  ;;  %v616_v11 = vmin.f32 %v360_v2, 40.0  ;;  %v111_v2 = vld [vmem:[#allocation2 + $0x2c0] sm:$0xff] }
  0xd9   :  { %v3524_v42 = vpop.eup %3523  ;;  %2912 = vst [vmem:[#allocation5 + $0x240] sm:$0xff] %v2656_v36  ;;  %v617_v40 = vmin.f32 %v361_v26, 40.0  ;;  %v4107_v29 = vmin.f32 %v362_v13, 40.0  ;;  %v2149_v4 = vmul.f32 %v612_v59, %v612_v59  ;;  %v2150_v32 = vmul.f32 %v613_v3, %v613_v3 }
  0xda   :  { %v3526_v43 = vpop.eup %3525  ;;  %2913 = vst [vmem:[#allocation5 + $0x248] sm:$0xff] %v2657_v27  ;;  %v1711_v44 = vmul.f32 %v3524_v42, %v3188_v60  ;;  %v1384_v41 = vadd.f32 2.0, %v872_v37  ;;  %v2658_v46 = vmul.f32 0.00125, %v2402_v20  ;;  %v3190_v33 = vadd.f32 -1.0, %v869_v63 }
  0xdb   :  { %v1713_v49 = vmul.f32 %v3526_v43, %v3189_v38  ;;  %v873_v30 = vmul.f32 0.1, %v616_v11  ;;  %v874_v23 = vmul.f32 0.1, %v617_v40  ;;  %v363_v53 = vmax.f32 %v107_v45, 10.0 }
  0xdc   :  { %v2403_v51 = vmul.f32 %v2147_v7, %v1711_v44  ;;  %3533 = vrcp.f32 %v1384_v41  ;;  %2914 = vst [vmem:[#allocation5 + $0x250] sm:$0xff] %v2658_v46  ;;  %v3191_v54 = vadd.f32 -1.0, %v870_v17  ;;  %v875_v56 = vmul.f32 0.1, %v4107_v29 }
  0xdd   :  { %v2404_v31 = vmul.f32 %v2148_v39, %v1713_v49  ;;  %v1385_v48 = vadd.f32 2.0, %v873_v30  ;;  %v3192_v47 = vadd.f32 -1.0, %v871_v19  ;;  %v2151_v59 = vmul.f32 %v4102_v62, %v4102_v62  ;;  %v112_v39 = vld [vmem:[#allocation2 + $0x2c8] sm:$0xff] }
  0xde   :  { %v2659_v58 = vmul.f32 0.00125, %v2403_v51  ;;  %v1386_v52 = vadd.f32 2.0, %v874_v23  ;;  %v2152_v61 = vmul.f32 %v615_v25, %v615_v25  ;;  %v1387_v0 = vadd.f32 2.0, %v875_v56 }
  0xdf   :  { %v2660_v55 = vmul.f32 0.00125, %v2404_v31  ;;  %3535 = vrcp.f32 %v1385_v48  ;;  %v619_v5 = vmin.f32 %v363_v53, 40.0  ;;  %v364_v6 = vmax.f32 %v108_v57, 10.0 }
  0xe0   :  { %v3528_v3 = vpop.eup %3527  ;;  %2915 = vst [vmem:[#allocation5 + $0x258] sm:$0xff] %v2659_v58  ;;  %3537 = vrcp.f32 %v1386_v52  ;;  %v365_v60 = vmax.f32 %v109_v34, 10.0  ;;  %v3193_v8 = vadd.f32 -1.0, %v872_v37  ;;  %v366_v14 = vmax.f32 %v110_v50, 10.0  ;;  %v114_v50 = vld [vmem:[#allocation2 + $0x2d8] sm:$0xff] }
  0xe1   :  { %v3530_v7 = vpop.eup %3529  ;;  %2916 = vst [vmem:[#allocation5 + $0x260] sm:$0xff] %v2660_v55  ;;  %v1715_v63 = vmul.f32 %v3528_v3, %v3190_v33  ;;  %3539 = vrcp.f32 %v1387_v0  ;;  %v2153_v10 = vmul.f32 %v616_v11, %v616_v11  ;;  %v876_v17 = vmul.f32 0.1, %v619_v5 }
  0xe2   :  { %v3532_v1 = vpop.eup %3531  ;;  %v1717_v62 = vmul.f32 %v3530_v7, %v3191_v54  ;;  %v620_v19 = vmin.f32 %v364_v6, 40.0  ;;  %v2154_v15 = vmul.f32 %v617_v40, %v617_v40  ;;  %v4112_v25 = vmin.f32 %v365_v60, 40.0  ;;  %v113_v40 = vld [vmem:[#allocation2 + $0x2d0] sm:$0xff] }
  0xe3   :  { %v2405_v22 = vmul.f32 %v2149_v4, %v1715_v63  ;;  %v1719_v24 = vmul.f32 %v3532_v1, %v3192_v47  ;;  %v1388_v9 = vadd.f32 2.0, %v876_v17  ;;  %v4114_v13 = vmin.f32 %v366_v14, 40.0  ;;  %v116_v63 = vld [vmem:[#allocation2 + $0x2e8] sm:$0xff] }
  0xe4   :  { %v2406_v12 = vmul.f32 %v2150_v32, %v1717_v62  ;;  %v877_v26 = vmul.f32 0.1, %v620_v19  ;;  %v878_v21 = vmul.f32 0.1, %v4112_v25  ;;  %v367_v28 = vmax.f32 %v111_v2, 10.0 }
  0xe5   :  { %v2661_v16 = vmul.f32 0.00125, %v2405_v22  ;;  %v2407_v35 = vmul.f32 %v2151_v59, %v1719_v24  ;;  %v3194_v38 = vadd.f32 -1.0, %v873_v30  ;;  %3541 = vrcp.f32 %v1388_v9 }
  0xe6   :  { %v3534_v36 = vpop.eup %3533  ;;  %v2662_v18 = vmul.f32 0.00125, %v2406_v12  ;;  %v1389_v27 = vadd.f32 2.0, %v877_v26  ;;  %v3195_v20 = vadd.f32 -1.0, %v874_v23  ;;  %v1390_v11 = vadd.f32 2.0, %v878_v21 }
  0xe7   :  { %2917 = vst [vmem:[#allocation5 + $0x268] sm:$0xff] %v2661_v16  ;;  %v2663_v37 = vmul.f32 0.00125, %v2407_v35  ;;  %v1721_v42 = vmul.f32 %v3534_v36, %v3193_v8  ;;  %v3196_v45 = vadd.f32 -1.0, %v875_v56  ;;  %v2155_v43 = vmul.f32 %v4107_v29, %v4107_v29 }
  0xe8   :  { %2918 = vst [vmem:[#allocation5 + $0x270] sm:$0xff] %v2662_v18  ;;  %3543 = vrcp.f32 %v1389_v27  ;;  %v879_v44 = vmul.f32 0.1, %v4114_v13  ;;  %v623_v41 = vmin.f32 %v367_v28, 40.0  ;;  %v368_v46 = vmax.f32 %v112_v39, 10.0 }
  0xe9   :  { %v3536_v4 = vpop.eup %3535  ;;  %2919 = vst [vmem:[#allocation5 + $0x278] sm:$0xff] %v2663_v37  ;;  %v2408_v32 = vmul.f32 %v2152_v61, %v1721_v42  ;;  %3545 = vrcp.f32 %v1390_v11  ;;  %v2156_v30 = vmul.f32 %v619_v5, %v619_v5  ;;  %v369_v23 = vmax.f32 %v113_v40, 10.0  ;;  %v115_v5 = vld [vmem:[#allocation2 + $0x2e0] sm:$0xff] }
  0xea   :  { %v3538_v49 = vpop.eup %3537  ;;  %v1723_v33 = vmul.f32 %v3536_v4, %v3194_v38  ;;  %v1391_v51 = vadd.f32 2.0, %v879_v44  ;;  %v3197_v48 = vadd.f32 -1.0, %v876_v17  ;;  %v880_v56 = vmul.f32 0.1, %v623_v41 }
  0xeb   :  { %v3540_v53 = vpop.eup %3539  ;;  %v2664_v31 = vmul.f32 0.00125, %v2408_v32  ;;  %v1725_v54 = vmul.f32 %v3538_v49, %v3195_v20  ;;  %v624_v34 = vmin.f32 %v368_v46, 40.0  ;;  %v2157_v47 = vmul.f32 %v620_v19, %v620_v19  ;;  %v118_v46 = vld [vmem:[#allocation2 + $0x2f8] sm:$0xff] }
  0xec   :  { %v2409_v29 = vmul.f32 %v2153_v10, %v1723_v33  ;;  %v1727_v57 = vmul.f32 %v3540_v53, %v3196_v45  ;;  %3547 = vrcp.f32 %v1391_v51  ;;  %v1392_v59 = vadd.f32 2.0, %v880_v56  ;;  %v120_v51 = vld [vmem:[#allocation2 + $0x308] sm:$0xff] }
  0xed   :  { %2920 = vst [vmem:[#allocation5 + $0x280] sm:$0xff] %v2664_v31  ;;  %v2410_v58 = vmul.f32 %v2154_v15, %v1725_v54  ;;  %v4120_v52 = vmin.f32 %v369_v23, 40.0  ;;  %v3198_v0 = vadd.f32 -1.0, %v877_v26  ;;  %v881_v3 = vmul.f32 0.1, %v624_v34  ;;  %v117_v26 = vld [vmem:[#allocation2 + $0x2f0] sm:$0xff] }
  0xee   :  { %v2665_v55 = vmul.f32 0.00125, %v2409_v29  ;;  %v2411_v61 = vmul.f32 %v2155_v43, %v1727_v57  ;;  %v3199_v60 = vadd.f32 -1.0, %v878_v21  ;;  %3549 = vrcp.f32 %v1392_v59 }
  0xef   :  { %v2666_v6 = vmul.f32 0.00125, %v2410_v58  ;;  %v882_v7 = vmul.f32 0.1, %v4120_v52  ;;  %v3542_v8 = vpop.eup %3541  ;;  %v2158_v1 = vmul.f32 %v4112_v25, %v4112_v25  ;;  %v1393_v62 = vadd.f32 2.0, %v881_v3 }
  0xf0   :  { %2921 = vst [vmem:[#allocation5 + $0x288] sm:$0xff] %v2665_v55  ;;  %v2667_v14 = vmul.f32 0.00125, %v2411_v61  ;;  %v370_v10 = vmax.f32 %v114_v50, 10.0  ;;  %v1729_v17 = vmul.f32 %v3542_v8, %v3197_v48  ;;  %v2159_v19 = vmul.f32 %v4114_v13, %v4114_v13 }
  0xf1   :  { %2922 = vst [vmem:[#allocation5 + $0x290] sm:$0xff] %v2666_v6  ;;  %v1394_v2 = vadd.f32 2.0, %v882_v7  ;;  %v371_v22 = vmax.f32 %v115_v5, 10.0  ;;  %v3200_v15 = vadd.f32 -1.0, %v879_v44  ;;  %3551 = vrcp.f32 %v1393_v62 }
  0xf2   :  { %v3544_v24 = vpop.eup %3543  ;;  %2923 = vst [vmem:[#allocation5 + $0x298] sm:$0xff] %v2667_v14  ;;  %v626_v12 = vmin.f32 %v370_v10, 40.0  ;;  %v372_v9 = vmax.f32 %v116_v63, 10.0  ;;  %v2412_v35 = vmul.f32 %v2156_v30, %v1729_v17  ;;  %v2160_v36 = vmul.f32 %v623_v41, %v623_v41  ;;  %v119_v41 = vld [vmem:[#allocation2 + $0x300] sm:$0xff] }
  0xf3   :  { %v3546_v16 = vpop.eup %3545  ;;  %v1731_v21 = vmul.f32 %v3544_v24, %v3198_v0  ;;  %3553 = vrcp.f32 %v1394_v2  ;;  %v627_v25 = vmin.f32 %v371_v22, 40.0  ;;  %v373_v37 = vmax.f32 %v117_v26, 10.0 }
  0xf4   :  { %v1733_v28 = vmul.f32 %v3546_v16, %v3199_v60  ;;  %v883_v18 = vmul.f32 0.1, %v626_v12  ;;  %v4127_v38 = vmin.f32 %v372_v9, 40.0  ;;  %v2668_v13 = vmul.f32 0.00125, %v2412_v35  ;;  %v123_v35 = vld [vmem:[#allocation2 + $0x320] sm:$0xff] }
  0xf5   :  { %v2413_v27 = vmul.f32 %v2157_v47, %v1731_v21  ;;  %v884_v39 = vmul.f32 0.1, %v627_v25  ;;  %v3201_v11 = vadd.f32 -1.0, %v880_v56  ;;  %v2161_v4 = vmul.f32 %v624_v34, %v624_v34  ;;  %v124_v21 = vld [vmem:[#allocation2 + $0x328] sm:$0xff] }
  0xf6   :  { %v3548_v42 = vpop.eup %3547  ;;  %v2414_v20 = vmul.f32 %v2158_v1, %v1733_v28  ;;  %v1395_v40 = vadd.f32 2.0, %v883_v18  ;;  %v885_v45 = vmul.f32 0.1, %v4127_v38  ;;  %2924 = vst [vmem:[#allocation5 + $0x2a0] sm:$0xff] %v2668_v13  ;;  %v3202_v33 = vadd.f32 -1.0, %v881_v3  ;;  %v121_v3 = vld [vmem:[#allocation2 + $0x310] sm:$0xff] }
  0xf7   :  { %v2669_v43 = vmul.f32 0.00125, %v2413_v27  ;;  %v1735_v44 = vmul.f32 %v3548_v42, %v3200_v15  ;;  %v1396_v32 = vadd.f32 2.0, %v884_v39  ;;  %v3203_v31 = vadd.f32 -1.0, %v882_v7  ;;  %v122_v15 = vld [vmem:[#allocation2 + $0x318] sm:$0xff] }
  0xf8   :  { %v2670_v49 = vmul.f32 0.00125, %v2414_v20  ;;  %3555 = vrcp.f32 %v1395_v40  ;;  %v1397_v30 = vadd.f32 2.0, %v885_v45  ;;  %v3550_v23 = vpop.eup %3549  ;;  %v629_v54 = vmin.f32 %v373_v37, 40.0 }
  0xf9   :  { %2925 = vst [vmem:[#allocation5 + $0x2a8] sm:$0xff] %v2669_v43  ;;  %v2415_v53 = vmul.f32 %v2159_v19, %v1735_v44  ;;  %3557 = vrcp.f32 %v1396_v32  ;;  %v1737_v48 = vmul.f32 %v3550_v23, %v3201_v11  ;;  %v374_v56 = vmax.f32 %v118_v46, 10.0  ;;  %v125_v23 = vld [vmem:[#allocation2 + $0x330] sm:$0xff] }
  0xfa   :  { %2926 = vst [vmem:[#allocation5 + $0x2b0] sm:$0xff] %v2670_v49  ;;  %3559 = vrcp.f32 %v1397_v30  ;;  %v375_v29 = vmax.f32 %v119_v41, 10.0  ;;  %v2162_v34 = vmul.f32 %v4120_v52, %v4120_v52  ;;  %v886_v58 = vmul.f32 0.1, %v629_v54 }
  0xfb   :  { %v2671_v57 = vmul.f32 0.00125, %v2415_v53  ;;  %v376_v47 = vmax.f32 %v120_v51, 10.0  ;;  %v3552_v59 = vpop.eup %3551  ;;  %v2416_v50 = vmul.f32 %v2160_v36, %v1737_v48  ;;  %v2163_v55 = vmul.f32 %v626_v12, %v626_v12 }
  0xfc   :  { %v630_v61 = vmin.f32 %v374_v56, 40.0  ;;  %v631_v0 = vmin.f32 %v375_v29, 40.0  ;;  %v1739_v6 = vmul.f32 %v3552_v59, %v3202_v33  ;;  %v2164_v60 = vmul.f32 %v627_v25, %v627_v25 }
  0xfd   :  { %v3554_v5 = vpop.eup %3553  ;;  %2927 = vst [vmem:[#allocation5 + $0x2b8] sm:$0xff] %v2671_v57  ;;  %v1398_v7 = vadd.f32 2.0, %v886_v58  ;;  %v4132_v63 = vmin.f32 %v376_v47, 40.0  ;;  %v2672_v8 = vmul.f32 0.00125, %v2416_v50  ;;  %v3204_v1 = vadd.f32 -1.0, %v883_v18 }
  0xfe   :  { %v1741_v14 = vmul.f32 %v3554_v5, %v3203_v31  ;;  %v887_v62 = vmul.f32 0.1, %v630_v61  ;;  %v2417_v52 = vmul.f32 %v2161_v4, %v1739_v6  ;;  %v888_v10 = vmul.f32 0.1, %v631_v0 }
  0xff   :  { %3561 = vrcp.f32 %v1398_v7  ;;  %v377_v17 = vmax.f32 %v121_v3, 10.0  ;;  %2928 = vst [vmem:[#allocation5 + $0x2c0] sm:$0xff] %v2672_v8  ;;  %v3205_v2 = vadd.f32 -1.0, %v884_v39  ;;  %v889_v24 = vmul.f32 0.1, %v4132_v63  ;;  %v128_v3 = vld [vmem:[#allocation2 + $0x348] sm:$0xff] }
 0x100   :  { %v2418_v19 = vmul.f32 %v2162_v34, %v1741_v14  ;;  %v1399_v22 = vadd.f32 2.0, %v887_v62  ;;  %v2673_v12 = vmul.f32 0.00125, %v2417_v52  ;;  %v3206_v9 = vadd.f32 -1.0, %v885_v45 }
 0x101   :  { %v2165_v26 = vmul.f32 %v4127_v38, %v4127_v38  ;;  %v1400_v16 = vadd.f32 2.0, %v888_v10  ;;  %v2166_v36 = vmul.f32 %v629_v54, %v629_v54  ;;  %v1401_v18 = vadd.f32 2.0, %v889_v24 }
 0x102   :  { %v3556_v25 = vpop.eup %3555  ;;  %v2674_v28 = vmul.f32 0.00125, %v2418_v19  ;;  %3563 = vrcp.f32 %v1399_v22  ;;  %2929 = vst [vmem:[#allocation5 + $0x2c8] sm:$0xff] %v2673_v12  ;;  %v633_v39 = vmin.f32 %v377_v17, 40.0  ;;  %v378_v37 = vmax.f32 %v122_v15, 10.0 }
 0x103   :  { %v3558_v13 = vpop.eup %3557  ;;  %v1743_v27 = vmul.f32 %v3556_v25, %v3204_v1  ;;  %3565 = vrcp.f32 %v1400_v16  ;;  %v379_v11 = vmax.f32 %v123_v35, 10.0  ;;  %v380_v38 = vmax.f32 %v124_v21, 10.0 }
 0x104   :  { %v3560_v42 = vpop.eup %3559  ;;  %2930 = vst [vmem:[#allocation5 + $0x2d0] sm:$0xff] %v2674_v28  ;;  %v1745_v20 = vmul.f32 %v3558_v13, %v3205_v2  ;;  %3567 = vrcp.f32 %v1401_v18  ;;  %v3207_v43 = vadd.f32 -1.0, %v886_v58  ;;  %v890_v44 = vmul.f32 0.1, %v633_v39  ;;  %v126_v58 = vld [vmem:[#allocation2 + $0x338] sm:$0xff]  ;;  %v129_v13 = vld [vmem:[#allocation2 + $0x350] sm:$0xff] }
 0x105   :  { %v2419_v40 = vmul.f32 %v2163_v55, %v1743_v27  ;;  %v1747_v45 = vmul.f32 %v3560_v42, %v3206_v9  ;;  %v634_v32 = vmin.f32 %v378_v37, 40.0  ;;  %v635_v46 = vmin.f32 %v379_v11, 40.0 }
 0x106   :  { %v2420_v4 = vmul.f32 %v2164_v60, %v1745_v20  ;;  %v4137_v41 = vmin.f32 %v380_v38, 40.0  ;;  %v2167_v30 = vmul.f32 %v630_v61, %v630_v61  ;;  %v1402_v51 = vadd.f32 2.0, %v890_v44  ;;  %v127_v61 = vld [vmem:[#allocation2 + $0x340] sm:$0xff]  ;;  %v130_v20 = vld [vmem:[#allocation2 + $0x358] sm:$0xff] }
 0x107   :  { %v2675_v49 = vmul.f32 0.00125, %v2419_v40  ;;  %v2421_v33 = vmul.f32 %v2165_v26, %v1747_v45  ;;  %v2168_v31 = vmul.f32 %v631_v0, %v631_v0  ;;  %v891_v54 = vmul.f32 0.1, %v634_v32 }
 0x108   :  { %v2676_v53 = vmul.f32 0.00125, %v2420_v4  ;;  %v892_v48 = vmul.f32 0.1, %v635_v46  ;;  %v3208_v57 = vadd.f32 -1.0, %v887_v62  ;;  %3569 = vrcp.f32 %v1402_v51 }
 0x109   :  { %v3562_v56 = vpop.eup %3561  ;;  %2931 = vst [vmem:[#allocation5 + $0x2d8] sm:$0xff] %v2675_v49  ;;  %v2677_v29 = vmul.f32 0.00125, %v2421_v33  ;;  %v893_v34 = vmul.f32 0.1, %v4137_v41  ;;  %v3209_v59 = vadd.f32 -1.0, %v888_v10  ;;  %v2169_v50 = vmul.f32 %v4132_v63, %v4132_v63 }
 0x10a   :  { %2932 = vst [vmem:[#allocation5 + $0x2e0] sm:$0xff] %v2676_v53  ;;  %v1749_v47 = vmul.f32 %v3562_v56, %v3207_v43  ;;  %v1403_v55 = vadd.f32 2.0, %v891_v54  ;;  %v3210_v0 = vadd.f32 -1.0, %v889_v24  ;;  %v2170_v5 = vmul.f32 %v633_v39, %v633_v39 }
 0x10b   :  { %2933 = vst [vmem:[#allocation5 + $0x2e8] sm:$0xff] %v2677_v29  ;;  %v1404_v6 = vadd.f32 2.0, %v892_v48  ;;  %v1405_v60 = vadd.f32 2.0, %v893_v34  ;;  %v381_v14 = vmax.f32 %v125_v23, 10.0  ;;  %v382_v1 = vmax.f32 %v126_v58, 10.0 }
 0x10c   :  { %v3564_v7 = vpop.eup %3563  ;;  %v2422_v8 = vmul.f32 %v2166_v36, %v1749_v47  ;;  %3571 = vrcp.f32 %v1403_v55  ;;  %v383_v10 = vmax.f32 %v127_v61, 10.0  ;;  %v384_v17 = vmax.f32 %v128_v3, 10.0 }
 0x10d   :  { %v3566_v62 = vpop.eup %3565  ;;  %v1751_v52 = vmul.f32 %v3564_v7, %v3208_v57  ;;  %3573 = vrcp.f32 %v1404_v6  ;;  %v637_v22 = vmin.f32 %v381_v14, 40.0  ;;  %v638_v12 = vmin.f32 %v382_v1, 40.0 }
 0x10e   :  { %v3568_v19 = vpop.eup %3567  ;;  %v2678_v63 = vmul.f32 0.00125, %v2422_v8  ;;  %v1753_v2 = vmul.f32 %v3566_v62, %v3209_v59  ;;  %3575 = vrcp.f32 %v1405_v60  ;;  %v4142_v9 = vmin.f32 %v383_v10, 40.0  ;;  %v132_v60 = vld [vmem:[#allocation2 + $0x368] sm:$0xff]  ;;  %v133_v62 = vld [vmem:[#allocation2 + $0x370] sm:$0xff] }
 0x10f   :  { %v2423_v15 = vmul.f32 %v2167_v30, %v1751_v52  ;;  %v1755_v24 = vmul.f32 %v3568_v19, %v3210_v0  ;;  %v3211_v16 = vadd.f32 -1.0, %v890_v44  ;;  %v2171_v35 = vmul.f32 %v634_v32, %v634_v32  ;;  %v131_v44 = vld [vmem:[#allocation2 + $0x360] sm:$0xff] }
 0x110   :  { %2934 = vst [vmem:[#allocation5 + $0x2f0] sm:$0xff] %v2678_v63  ;;  %v2424_v26 = vmul.f32 %v2168_v31, %v1753_v2  ;;  %v894_v21 = vmul.f32 0.1, %v637_v22  ;;  %v895_v36 = vmul.f32 0.1, %v638_v12  ;;  %v4144_v18 = vmin.f32 %v384_v17, 40.0 }
 0x111   :  { %v2679_v25 = vmul.f32 0.00125, %v2423_v15  ;;  %v2425_v28 = vmul.f32 %v2169_v50, %v1755_v24  ;;  %v2172_v39 = vmul.f32 %v635_v46, %v635_v46  ;;  %v896_v42 = vmul.f32 0.1, %v4142_v9  ;;  %v134_v63 = vld [vmem:[#allocation2 + $0x378] sm:$0xff] }
 0x112   :  { %v2680_v27 = vmul.f32 0.00125, %v2424_v26  ;;  %v1406_v37 = vadd.f32 2.0, %v894_v21  ;;  %v3570_v11 = vpop.eup %3569  ;;  %v3212_v40 = vadd.f32 -1.0, %v891_v54  ;;  %v3213_v45 = vadd.f32 -1.0, %v892_v48 }
 0x113   :  { %2935 = vst [vmem:[#allocation5 + $0x2f8] sm:$0xff] %v2679_v25  ;;  %v2681_v38 = vmul.f32 0.00125, %v2425_v28  ;;  %v1407_v43 = vadd.f32 2.0, %v895_v36  ;;  %v1757_v4 = vmul.f32 %v3570_v11, %v3211_v16  ;;  %v3214_v32 = vadd.f32 -1.0, %v893_v34 }
 0x114   :  { %2936 = vst [vmem:[#allocation5 + $0x300] sm:$0xff] %v2680_v27  ;;  %3577 = vrcp.f32 %v1406_v37  ;;  %v1408_v49 = vadd.f32 2.0, %v896_v42  ;;  %v2173_v46 = vmul.f32 %v4137_v41, %v4137_v41  ;;  %v897_v33 = vmul.f32 0.1, %v4144_v18 }
 0x115   :  { %2937 = vst [vmem:[#allocation5 + $0x308] sm:$0xff] %v2681_v38  ;;  %3579 = vrcp.f32 %v1407_v43  ;;  %v385_v30 = vmax.f32 %v129_v13, 10.0  ;;  %v2426_v23 = vmul.f32 %v2170_v5, %v1757_v4  ;;  %v386_v53 = vmax.f32 %v130_v20, 10.0  ;;  %v136_v13 = vld [vmem:[#allocation2 + $0x388] sm:$0xff] }
 0x116   :  { %v3572_v51 = vpop.eup %3571  ;;  %3581 = vrcp.f32 %v1408_v49  ;;  %v387_v31 = vmax.f32 %v131_v44, 10.0  ;;  %v2174_v56 = vmul.f32 %v637_v22, %v637_v22  ;;  %v1409_v29 = vadd.f32 2.0, %v897_v33 }
 0x117   :  { %v3574_v54 = vpop.eup %3573  ;;  %v1759_v48 = vmul.f32 %v3572_v51, %v3212_v40  ;;  %v641_v57 = vmin.f32 %v385_v30, 40.0  ;;  %v2682_v58 = vmul.f32 0.00125, %v2426_v23  ;;  %v642_v59 = vmin.f32 %v386_v53, 40.0 }
 0x118   :  { %v3576_v34 = vpop.eup %3575  ;;  %v1761_v47 = vmul.f32 %v3574_v54, %v3213_v45  ;;  %v4150_v50 = vmin.f32 %v387_v31, 40.0  ;;  %3583 = vrcp.f32 %v1409_v29  ;;  %v3215_v0 = vadd.f32 -1.0, %v894_v21  ;;  %v137_v31 = vld [vmem:[#allocation2 + $0x390] sm:$0xff] }
 0x119   :  { %v2427_v41 = vmul.f32 %v2171_v35, %v1759_v48  ;;  %v1763_v55 = vmul.f32 %v3576_v34, %v3214_v32  ;;  %v898_v61 = vmul.f32 0.1, %v641_v57  ;;  %2938 = vst [vmem:[#allocation5 + $0x310] sm:$0xff] %v2682_v58  ;;  %v2175_v5 = vmul.f32 %v638_v12, %v638_v12  ;;  %v135_v35 = vld [vmem:[#allocation2 + $0x380] sm:$0xff]  ;;  %v138_v58 = vld [vmem:[#allocation2 + $0x398] sm:$0xff] }
 0x11a   :  { %v2428_v3 = vmul.f32 %v2172_v39, %v1761_v47  ;;  %v899_v6 = vmul.f32 0.1, %v642_v59  ;;  %v3216_v14 = vadd.f32 -1.0, %v895_v36  ;;  %v2176_v10 = vmul.f32 %v4142_v9, %v4142_v9 }
 0x11b   :  { %v2683_v7 = vmul.f32 0.00125, %v2427_v41  ;;  %v2429_v8 = vmul.f32 %v2173_v46, %v1763_v55  ;;  %v1410_v1 = vadd.f32 2.0, %v898_v61  ;;  %v900_v19 = vmul.f32 0.1, %v4150_v50 }
 0x11c   :  { %v2684_v52 = vmul.f32 0.00125, %v2428_v3  ;;  %v1411_v17 = vadd.f32 2.0, %v899_v6  ;;  %v3217_v22 = vadd.f32 -1.0, %v896_v42  ;;  %v388_v15 = vmax.f32 %v132_v60, 10.0 }
 0x11d   :  { %2939 = vst [vmem:[#allocation5 + $0x318] sm:$0xff] %v2683_v7  ;;  %v2685_v2 = vmul.f32 0.00125, %v2429_v8  ;;  %3585 = vrcp.f32 %v1410_v1  ;;  %v2177_v12 = vmul.f32 %v4144_v18, %v4144_v18  ;;  %v1412_v26 = vadd.f32 2.0, %v900_v19 }
 0x11e   :  { %v3578_v24 = vpop.eup %3577  ;;  %2940 = vst [vmem:[#allocation5 + $0x320] sm:$0xff] %v2684_v52  ;;  %3587 = vrcp.f32 %v1411_v17  ;;  %v389_v16 = vmax.f32 %v133_v62, 10.0  ;;  %v3218_v25 = vadd.f32 -1.0, %v897_v33  ;;  %v644_v28 = vmin.f32 %v388_v15, 40.0  ;;  %v140_v15 = vld [vmem:[#allocation2 + $0x3a8] sm:$0xff] }
 0x11f   :  { %v3580_v21 = vpop.eup %3579  ;;  %2941 = vst [vmem:[#allocation5 + $0x328] sm:$0xff] %v2685_v2  ;;  %v1765_v9 = vmul.f32 %v3578_v24, %v3215_v0  ;;  %v390_v36 = vmax.f32 %v134_v63, 10.0  ;;  %v2178_v37 = vmul.f32 %v641_v57, %v641_v57  ;;  %3589 = vrcp.f32 %v1412_v26 }
 0x120   :  { %v3582_v27 = vpop.eup %3581  ;;  %v1767_v39 = vmul.f32 %v3580_v21, %v3216_v14  ;;  %v645_v42 = vmin.f32 %v389_v16, 40.0  ;;  %v901_v38 = vmul.f32 0.1, %v644_v28  ;;  %v391_v18 = vmax.f32 %v135_v35, 10.0  ;;  %v141_v16 = vld [vmem:[#allocation2 + $0x3b0] sm:$0xff] }
 0x121   :  { %v2430_v20 = vmul.f32 %v2174_v56, %v1765_v9  ;;  %v1769_v11 = vmul.f32 %v3582_v27, %v3217_v22  ;;  %v646_v43 = vmin.f32 %v390_v36, 40.0  ;;  %v392_v44 = vmax.f32 %v136_v13, 10.0  ;;  %v139_v22 = vld [vmem:[#allocation2 + $0x3a0] sm:$0xff] }
 0x122   :  { %v2431_v40 = vmul.f32 %v2175_v5, %v1767_v39  ;;  %v902_v45 = vmul.f32 0.1, %v645_v42  ;;  %v3584_v4 = vpop.eup %3583  ;;  %v2179_v46 = vmul.f32 %v642_v59, %v642_v59  ;;  %v1413_v33 = vadd.f32 2.0, %v901_v38 }
 0x123   :  { %v2686_v32 = vmul.f32 0.00125, %v2430_v20  ;;  %v2432_v49 = vmul.f32 %v2176_v10, %v1769_v11  ;;  %v1771_v51 = vmul.f32 %v3584_v4, %v3218_v25  ;;  %v3219_v23 = vadd.f32 -1.0, %v898_v61 }
 0x124   :  { %v2687_v30 = vmul.f32 0.00125, %v2431_v40  ;;  %v1414_v53 = vadd.f32 2.0, %v902_v45  ;;  %v3220_v48 = vadd.f32 -1.0, %v899_v6  ;;  %3591 = vrcp.f32 %v1413_v33 }
 0x125   :  { %2942 = vst [vmem:[#allocation5 + $0x330] sm:$0xff] %v2686_v32  ;;  %v2688_v54 = vmul.f32 0.00125, %v2432_v49  ;;  %v903_v56 = vmul.f32 0.1, %v646_v43  ;;  %v2433_v29 = vmul.f32 %v2177_v12, %v1771_v51  ;;  %v647_v57 = vmin.f32 %v391_v18, 40.0 }
 0x126   :  { %2943 = vst [vmem:[#allocation5 + $0x338] sm:$0xff] %v2687_v30  ;;  %3593 = vrcp.f32 %v1414_v53  ;;  %v648_v34 = vmin.f32 %v392_v44, 40.0  ;;  %v3221_v59 = vadd.f32 -1.0, %v900_v19  ;;  %v2180_v41 = vmul.f32 %v4150_v50, %v4150_v50 }
 0x127   :  { %v3586_v47 = vpop.eup %3585  ;;  %2944 = vst [vmem:[#allocation5 + $0x340] sm:$0xff] %v2688_v54  ;;  %v1415_v55 = vadd.f32 2.0, %v903_v56  ;;  %v393_v61 = vmax.f32 %v137_v31, 10.0  ;;  %v2689_v0 = vmul.f32 0.00125, %v2433_v29  ;;  %v2181_v6 = vmul.f32 %v644_v28, %v644_v28  ;;  %v142_v29 = vld [vmem:[#allocation2 + $0x3b8] sm:$0xff] }
 0x128   :  { %v3588_v3 = vpop.eup %3587  ;;  %v1773_v5 = vmul.f32 %v3586_v47, %v3219_v23  ;;  %v904_v60 = vmul.f32 0.1, %v647_v57  ;;  %v905_v8 = vmul.f32 0.1, %v648_v34  ;;  %v394_v14 = vmax.f32 %v138_v58, 10.0 }
 0x129   :  { %v1775_v7 = vmul.f32 %v3588_v3, %v3220_v48  ;;  %3595 = vrcp.f32 %v1415_v55  ;;  %v3590_v1 = vpop.eup %3589  ;;  %2945 = vst [vmem:[#allocation5 + $0x348] sm:$0xff] %v2689_v0  ;;  %v2182_v52 = vmul.f32 %v645_v42, %v645_v42  ;;  %v649_v17 = vmin.f32 %v393_v61, 40.0 }
 0x12a   :  { %v2434_v62 = vmul.f32 %v2178_v37, %v1773_v5  ;;  %v1416_v10 = vadd.f32 2.0, %v904_v60  ;;  %v1777_v63 = vmul.f32 %v3590_v1, %v3221_v59  ;;  %v3222_v50 = vadd.f32 -1.0, %v901_v38 }
 0x12b   :  { %v2435_v19 = vmul.f32 %v2179_v46, %v1775_v7  ;;  %v1417_v2 = vadd.f32 2.0, %v905_v8  ;;  %v3223_v12 = vadd.f32 -1.0, %v902_v45  ;;  %v906_v26 = vmul.f32 0.1, %v649_v17 }
 0x12c   :  { %v2690_v24 = vmul.f32 0.00125, %v2434_v62  ;;  %3597 = vrcp.f32 %v1416_v10  ;;  %v2436_v21 = vmul.f32 %v2180_v41, %v1777_v63  ;;  %v650_v9 = vmin.f32 %v394_v14, 40.0  ;;  %v146_v14 = vld [vmem:[#allocation2 + $0x3d8] sm:$0xff]  ;;  %v147_v10 = vld [vmem:[#allocation2 + $0x3e0] sm:$0xff] }
 0x12d   :  { %v2691_v35 = vmul.f32 0.00125, %v2435_v19  ;;  %3599 = vrcp.f32 %v1417_v2  ;;  %v2183_v25 = vmul.f32 %v646_v43, %v646_v43  ;;  %v1418_v28 = vadd.f32 2.0, %v906_v26 }
 0x12e   :  { %2946 = vst [vmem:[#allocation5 + $0x350] sm:$0xff] %v2690_v24  ;;  %v395_v36 = vmax.f32 %v139_v22, 10.0  ;;  %v396_v13 = vmax.f32 %v140_v15, 10.0  ;;  %v3592_v27 = vpop.eup %3591  ;;  %v2692_v39 = vmul.f32 0.00125, %v2436_v21  ;;  %v3224_v37 = vadd.f32 -1.0, %v903_v56 }
 0x12f   :  { %2947 = vst [vmem:[#allocation5 + $0x358] sm:$0xff] %v2691_v35  ;;  %v907_v42 = vmul.f32 0.1, %v650_v9  ;;  %v397_v20 = vmax.f32 %v141_v16, 10.0  ;;  %v1779_v38 = vmul.f32 %v3592_v27, %v3222_v50  ;;  %3601 = vrcp.f32 %v1418_v28 }
 0x130   :  { %v3594_v11 = vpop.eup %3593  ;;  %v651_v18 = vmin.f32 %v395_v36, 40.0  ;;  %v4159_v40 = vmin.f32 %v396_v13, 40.0  ;;  %2948 = vst [vmem:[#allocation5 + $0x360] sm:$0xff] %v2692_v39  ;;  %v2184_v44 = vmul.f32 %v647_v57, %v647_v57  ;;  %v2185_v49 = vmul.f32 %v648_v34, %v648_v34  ;;  %v143_v57 = vld [vmem:[#allocation2 + $0x3c0] sm:$0xff]  ;;  %v144_v34 = vld [vmem:[#allocation2 + $0x3c8] sm:$0xff] }
 0x131   :  { %v1781_v45 = vmul.f32 %v3594_v11, %v3223_v12  ;;  %v1419_v4 = vadd.f32 2.0, %v907_v42  ;;  %v4161_v43 = vmin.f32 %v397_v20, 40.0  ;;  %v2437_v32 = vmul.f32 %v2181_v6, %v1779_v38 }
 0x132   :  { %v908_v46 = vmul.f32 0.1, %v651_v18  ;;  %v909_v33 = vmul.f32 0.1, %v4159_v40  ;;  %v3225_v23 = vadd.f32 -1.0, %v904_v60  ;;  %v3226_v48 = vadd.f32 -1.0, %v905_v8 }
 0x133   :  { %v3596_v30 = vpop.eup %3595  ;;  %v2438_v51 = vmul.f32 %v2182_v52, %v1781_v45  ;;  %3603 = vrcp.f32 %v1419_v4  ;;  %v910_v53 = vmul.f32 0.1, %v4161_v43  ;;  %v2693_v31 = vmul.f32 0.00125, %v2437_v32  ;;  %v145_v8 = vld [vmem:[#allocation2 + $0x3d0] sm:$0xff] }
 0x134   :  { %v1783_v54 = vmul.f32 %v3596_v30, %v3224_v37  ;;  %v1420_v56 = vadd.f32 2.0, %v908_v46  ;;  %v3227_v47 = vadd.f32 -1.0, %v906_v26  ;;  %v2186_v59 = vmul.f32 %v649_v17, %v649_v17 }
 0x135   :  { %v2694_v58 = vmul.f32 0.00125, %v2438_v51  ;;  %v1421_v41 = vadd.f32 2.0, %v909_v33  ;;  %2949 = vst [vmem:[#allocation5 + $0x368] sm:$0xff] %v2693_v31  ;;  %v2187_v3 = vmul.f32 %v650_v9, %v650_v9  ;;  %v1422_v0 = vadd.f32 2.0, %v910_v53 }
 0x136   :  { %v3598_v55 = vpop.eup %3597  ;;  %v2439_v61 = vmul.f32 %v2183_v25, %v1783_v54  ;;  %3605 = vrcp.f32 %v1420_v56  ;;  %v398_v60 = vmax.f32 %v142_v29, 10.0  ;;  %v399_v7 = vmax.f32 %v143_v57, 10.0 }
 0x137   :  { %v3600_v5 = vpop.eup %3599  ;;  %2950 = vst [vmem:[#allocation5 + $0x370] sm:$0xff] %v2694_v58  ;;  %v1785_v6 = vmul.f32 %v3598_v55, %v3225_v23  ;;  %3607 = vrcp.f32 %v1421_v41  ;;  %v400_v52 = vmax.f32 %v144_v34, 10.0  ;;  %v3228_v19 = vadd.f32 -1.0, %v907_v42 }
 0x138   :  { %v2695_v1 = vmul.f32 0.00125, %v2439_v61  ;;  %v1787_v62 = vmul.f32 %v3600_v5, %v3226_v48  ;;  %3609 = vrcp.f32 %v1422_v0  ;;  %v654_v63 = vmin.f32 %v398_v60, 40.0  ;;  %v151_v60 = vld [vmem:[#allocation2 + $0x400] sm:$0xff] }
 0x139   :  { %v2440_v17 = vmul.f32 %v2184_v44, %v1785_v6  ;;  %v655_v50 = vmin.f32 %v399_v7, 40.0  ;;  %v3602_v2 = vpop.eup %3601  ;;  %v656_v15 = vmin.f32 %v400_v52, 40.0  ;;  %v401_v24 = vmax.f32 %v145_v8, 10.0 }
 0x13a   :  { %2951 = vst [vmem:[#allocation5 + $0x378] sm:$0xff] %v2695_v1  ;;  %v2441_v22 = vmul.f32 %v2185_v49, %v1787_v62  ;;  %v402_v12 = vmax.f32 %v146_v14, 10.0  ;;  %v1789_v16 = vmul.f32 %v3602_v2, %v3227_v47  ;;  %v911_v35 = vmul.f32 0.1, %v654_v63  ;;  %v152_v1 = vld [vmem:[#allocation2 + $0x408] sm:$0xff]  ;;  %v153_v2 = vld [vmem:[#allocation2 + $0x410] sm:$0xff] }
 0x13b   :  { %v2696_v26 = vmul.f32 0.00125, %v2440_v17  ;;  %v403_v21 = vmax.f32 %v147_v10, 10.0  ;;  %v2188_v25 = vmul.f32 %v651_v18, %v651_v18  ;;  %v912_v28 = vmul.f32 0.1, %v655_v50 }
 0x13c   :  { %v2697_v9 = vmul.f32 0.00125, %v2441_v22  ;;  %v913_v36 = vmul.f32 0.1, %v656_v15  ;;  %v2442_v27 = vmul.f32 %v2186_v59, %v1789_v16  ;;  %v3229_v39 = vadd.f32 -1.0, %v908_v46  ;;  %v148_v59 = vld [vmem:[#allocation2 + $0x3e8] sm:$0xff] }
 0x13d   :  { %v3604_v13 = vpop.eup %3603  ;;  %2952 = vst [vmem:[#allocation5 + $0x380] sm:$0xff] %v2696_v26  ;;  %v2189_v37 = vmul.f32 %v4159_v40, %v4159_v40  ;;  %v1423_v42 = vadd.f32 2.0, %v911_v35  ;;  %v3230_v11 = vadd.f32 -1.0, %v909_v33  ;;  %v3231_v38 = vadd.f32 -1.0, %v910_v53 }
 0x13e   :  { %2953 = vst [vmem:[#allocation5 + $0x388] sm:$0xff] %v2697_v9  ;;  %v1791_v20 = vmul.f32 %v3604_v13, %v3228_v19  ;;  %v1424_v45 = vadd.f32 2.0, %v912_v28  ;;  %v2698_v44 = vmul.f32 0.00125, %v2442_v27  ;;  %v1425_v4 = vadd.f32 2.0, %v913_v36 }
 0x13f   :  { %3611 = vrcp.f32 %v1423_v42  ;;  %v657_v32 = vmin.f32 %v401_v24, 40.0  ;;  %v658_v30 = vmin.f32 %v402_v12, 40.0  ;;  %v4167_v51 = vmin.f32 %v403_v21, 40.0 }
 0x140   :  { %v3606_v18 = vpop.eup %3605  ;;  %v2443_v49 = vmul.f32 %v2187_v3, %v1791_v20  ;;  %3613 = vrcp.f32 %v1424_v45  ;;  %2954 = vst [vmem:[#allocation5 + $0x390] sm:$0xff] %v2698_v44  ;;  %v2190_v40 = vmul.f32 %v4161_v43, %v4161_v43  ;;  %v2191_v48 = vmul.f32 %v654_v63, %v654_v63  ;;  %v149_v3 = vld [vmem:[#allocation2 + $0x3f0] sm:$0xff]  ;;  %v150_v43 = vld [vmem:[#allocation2 + $0x3f8] sm:$0xff] }
 0x141   :  { %v3608_v46 = vpop.eup %3607  ;;  %v1793_v23 = vmul.f32 %v3606_v18, %v3229_v39  ;;  %3615 = vrcp.f32 %v1425_v4  ;;  %v914_v33 = vmul.f32 0.1, %v657_v32  ;;  %v915_v56 = vmul.f32 0.1, %v658_v30 }
 0x142   :  { %v3610_v53 = vpop.eup %3609  ;;  %v2699_v31 = vmul.f32 0.00125, %v2443_v49  ;;  %v1795_v54 = vmul.f32 %v3608_v46, %v3230_v11  ;;  %v2192_v58 = vmul.f32 %v655_v50, %v655_v50  ;;  %v3232_v34 = vadd.f32 -1.0, %v911_v35  ;;  %v154_v46 = vld [vmem:[#allocation2 + $0x418] sm:$0xff] }
 0x143   :  { %v2444_v29 = vmul.f32 %v2188_v25, %v1793_v23  ;;  %v1797_v57 = vmul.f32 %v3610_v53, %v3231_v38  ;;  %v1426_v47 = vadd.f32 2.0, %v914_v33  ;;  %v1427_v55 = vadd.f32 2.0, %v915_v56 }
 0x144   :  { %2955 = vst [vmem:[#allocation5 + $0x398] sm:$0xff] %v2699_v31  ;;  %v2445_v41 = vmul.f32 %v2189_v37, %v1795_v54  ;;  %v916_v61 = vmul.f32 0.1, %v4167_v51  ;;  %v2193_v6 = vmul.f32 %v656_v15, %v656_v15  ;;  %v3233_v8 = vadd.f32 -1.0, %v912_v28 }
 0x145   :  { %v2700_v0 = vmul.f32 0.00125, %v2444_v29  ;;  %v2446_v5 = vmul.f32 %v2190_v40, %v1797_v57  ;;  %3617 = vrcp.f32 %v1426_v47  ;;  %v404_v52 = vmax.f32 %v148_v59, 10.0 }
 0x146   :  { %v2701_v7 = vmul.f32 0.00125, %v2445_v41  ;;  %3619 = vrcp.f32 %v1427_v55  ;;  %v1428_v14 = vadd.f32 2.0, %v916_v61  ;;  %v405_v10 = vmax.f32 %v149_v3, 10.0 }
 0x147   :  { %2956 = vst [vmem:[#allocation5 + $0x3a0] sm:$0xff] %v2700_v0  ;;  %v2702_v62 = vmul.f32 0.00125, %v2446_v5  ;;  %v406_v17 = vmax.f32 %v150_v43, 10.0  ;;  %v3234_v19 = vadd.f32 -1.0, %v913_v36  ;;  %v2194_v63 = vmul.f32 %v657_v32, %v657_v32  ;;  %v155_v0 = vld [vmem:[#allocation2 + $0x420] sm:$0xff] }
 0x148   :  { %2957 = vst [vmem:[#allocation5 + $0x3a8] sm:$0xff] %v2701_v7  ;;  %3621 = vrcp.f32 %v1428_v14  ;;  %v407_v50 = vmax.f32 %v151_v60, 10.0  ;;  %v660_v15 = vmin.f32 %v404_v52, 40.0  ;;  %v661_v24 = vmin.f32 %v405_v10, 40.0  ;;  %v156_v5 = vld [vmem:[#allocation2 + $0x428] sm:$0xff] }
 0x149   :  { %v3612_v22 = vpop.eup %3611  ;;  %2958 = vst [vmem:[#allocation5 + $0x3b0] sm:$0xff] %v2702_v62  ;;  %v4172_v12 = vmin.f32 %v406_v17, 40.0  ;;  %v408_v26 = vmax.f32 %v152_v1, 10.0  ;;  %v3235_v21 = vadd.f32 -1.0, %v914_v33  ;;  %v3236_v9 = vadd.f32 -1.0, %v915_v56 }
 0x14a   :  { %v3614_v16 = vpop.eup %3613  ;;  %v1799_v35 = vmul.f32 %v3612_v22, %v3232_v34  ;;  %v2195_v25 = vmul.f32 %v658_v30, %v658_v30  ;;  %v917_v27 = vmul.f32 0.1, %v660_v15  ;;  %v918_v36 = vmul.f32 0.1, %v661_v24 }
 0x14b   :  { %v3616_v28 = vpop.eup %3615  ;;  %v1801_v13 = vmul.f32 %v3614_v16, %v3233_v8  ;;  %v409_v39 = vmax.f32 %v153_v2, 10.0  ;;  %v919_v20 = vmul.f32 0.1, %v4172_v12  ;;  %v663_v11 = vmin.f32 %v407_v50, 40.0  ;;  %v157_v8 = vld [vmem:[#allocation2 + $0x430] sm:$0xff] }
 0x14c   :  { %v2447_v37 = vmul.f32 %v2191_v48, %v1799_v35  ;;  %v1803_v42 = vmul.f32 %v3616_v28, %v3234_v19  ;;  %v2196_v45 = vmul.f32 %v4167_v51, %v4167_v51  ;;  %v1429_v44 = vadd.f32 2.0, %v917_v27  ;;  %v158_v28 = vld [vmem:[#allocation2 + $0x438] sm:$0xff] }
 0x14d   :  { %v2448_v38 = vmul.f32 %v2192_v58, %v1801_v13  ;;  %v664_v4 = vmin.f32 %v408_v26, 40.0  ;;  %v3237_v49 = vadd.f32 -1.0, %v916_v61  ;;  %v1430_v30 = vadd.f32 2.0, %v918_v36 }
 0x14e   :  { %v2703_v32 = vmul.f32 0.00125, %v2447_v37  ;;  %v2449_v18 = vmul.f32 %v2193_v6, %v1803_v42  ;;  %3623 = vrcp.f32 %v1429_v44  ;;  %v1431_v33 = vadd.f32 2.0, %v919_v20 }
 0x14f   :  { %v3618_v23 = vpop.eup %3617  ;;  %v2704_v40 = vmul.f32 0.00125, %v2448_v38  ;;  %v665_v53 = vmin.f32 %v409_v39, 40.0  ;;  %3625 = vrcp.f32 %v1430_v30  ;;  %v920_v56 = vmul.f32 0.1, %v663_v11 }
 0x150   :  { %v3620_v31 = vpop.eup %3619  ;;  %2959 = vst [vmem:[#allocation5 + $0x3b8] sm:$0xff] %v2703_v32  ;;  %v2705_v54 = vmul.f32 0.00125, %v2449_v18  ;;  %v1805_v48 = vmul.f32 %v3618_v23, %v3235_v21  ;;  %3627 = vrcp.f32 %v1431_v33  ;;  %v921_v29 = vmul.f32 0.1, %v664_v4 }
 0x151   :  { %2960 = vst [vmem:[#allocation5 + $0x3c0] sm:$0xff] %v2704_v40  ;;  %v1807_v51 = vmul.f32 %v3620_v31, %v3236_v9  ;;  %v410_v57 = vmax.f32 %v154_v46, 10.0  ;;  %v2197_v59 = vmul.f32 %v660_v15, %v660_v15  ;;  %v2198_v41 = vmul.f32 %v661_v24, %v661_v24 }
 0x152   :  { %v3622_v58 = vpop.eup %3621  ;;  %2961 = vst [vmem:[#allocation5 + $0x3c8] sm:$0xff] %v2705_v54  ;;  %v2450_v47 = vmul.f32 %v2194_v63, %v1805_v48  ;;  %v1432_v34 = vadd.f32 2.0, %v920_v56  ;;  %v3238_v3 = vadd.f32 -1.0, %v917_v27  ;;  %v1433_v43 = vadd.f32 2.0, %v921_v29  ;;  %v160_v54 = vld [vmem:[#allocation2 + $0x448] sm:$0xff]  ;;  %v161_v48 = vld [vmem:[#allocation2 + $0x450] sm:$0xff] }
 0x153   :  { %v2451_v55 = vmul.f32 %v2195_v25, %v1807_v51  ;;  %v1809_v61 = vmul.f32 %v3622_v58, %v3237_v49  ;;  %v3239_v60 = vadd.f32 -1.0, %v918_v36  ;;  %v922_v7 = vmul.f32 0.1, %v665_v53 }
 0x154   :  { %v2706_v6 = vmul.f32 0.00125, %v2450_v47  ;;  %3629 = vrcp.f32 %v1432_v34  ;;  %v666_v62 = vmin.f32 %v410_v57, 40.0  ;;  %v3240_v52 = vadd.f32 -1.0, %v919_v20 }
 0x155   :  { %v2707_v14 = vmul.f32 0.00125, %v2451_v55  ;;  %v2452_v1 = vmul.f32 %v2196_v45, %v1809_v61  ;;  %3631 = vrcp.f32 %v1433_v43  ;;  %v1434_v10 = vadd.f32 2.0, %v922_v7  ;;  %v162_v61 = vld [vmem:[#allocation2 + $0x458] sm:$0xff] }
 0x156   :  { %2962 = vst [vmem:[#allocation5 + $0x3d0] sm:$0xff] %v2706_v6  ;;  %v411_v17 = vmax.f32 %v155_v0, 10.0  ;;  %v412_v19 = vmax.f32 %v156_v5, 10.0  ;;  %v2199_v50 = vmul.f32 %v4172_v12, %v4172_v12  ;;  %v923_v2 = vmul.f32 0.1, %v666_v62  ;;  %v159_v12 = vld [vmem:[#allocation2 + $0x440] sm:$0xff] }
 0x157   :  { %2963 = vst [vmem:[#allocation5 + $0x3d8] sm:$0xff] %v2707_v14  ;;  %v2708_v63 = vmul.f32 0.00125, %v2452_v1  ;;  %v413_v22 = vmax.f32 %v157_v8, 10.0  ;;  %v2200_v15 = vmul.f32 %v663_v11, %v663_v11  ;;  %3633 = vrcp.f32 %v1434_v10 }
 0x158   :  { %v667_v24 = vmin.f32 %v411_v17, 40.0  ;;  %v668_v26 = vmin.f32 %v412_v19, 40.0  ;;  %v3624_v16 = vpop.eup %3623  ;;  %v3241_v35 = vadd.f32 -1.0, %v920_v56  ;;  %v2201_v21 = vmul.f32 %v664_v4, %v664_v4 }
 0x159   :  { %2964 = vst [vmem:[#allocation5 + $0x3e0] sm:$0xff] %v2708_v63  ;;  %v1435_v9 = vadd.f32 2.0, %v923_v2  ;;  %v4179_v25 = vmin.f32 %v413_v22, 40.0  ;;  %v3626_v13 = vpop.eup %3625  ;;  %v1811_v27 = vmul.f32 %v3624_v16, %v3238_v3  ;;  %v3242_v36 = vadd.f32 -1.0, %v921_v29 }
 0x15a   :  { %v924_v39 = vmul.f32 0.1, %v667_v24  ;;  %v925_v37 = vmul.f32 0.1, %v668_v26  ;;  %v3628_v42 = vpop.eup %3627  ;;  %v1813_v20 = vmul.f32 %v3626_v13, %v3239_v60  ;;  %v2202_v11 = vmul.f32 %v665_v53, %v665_v53 }
 0x15b   :  { %3635 = vrcp.f32 %v1435_v9  ;;  %v926_v38 = vmul.f32 0.1, %v4179_v25  ;;  %v2453_v45 = vmul.f32 %v2197_v59, %v1811_v27  ;;  %v1815_v44 = vmul.f32 %v3628_v42, %v3240_v52 }
 0x15c   :  { %v1436_v32 = vadd.f32 2.0, %v924_v39  ;;  %v414_v4 = vmax.f32 %v158_v28, 10.0  ;;  %v2454_v18 = vmul.f32 %v2198_v41, %v1813_v20  ;;  %v3243_v49 = vadd.f32 -1.0, %v922_v7 }
 0x15d   :  { %v1437_v30 = vadd.f32 2.0, %v925_v37  ;;  %v415_v46 = vmax.f32 %v159_v12, 10.0  ;;  %v2709_v40 = vmul.f32 0.00125, %v2453_v45  ;;  %v2455_v33 = vmul.f32 %v2199_v50, %v1815_v44 }
 0x15e   :  { %v3630_v23 = vpop.eup %3629  ;;  %3637 = vrcp.f32 %v1436_v32  ;;  %v1438_v31 = vadd.f32 2.0, %v926_v38  ;;  %v2710_v53 = vmul.f32 0.00125, %v2454_v18  ;;  %v2203_v29 = vmul.f32 %v666_v62, %v666_v62  ;;  %v164_v32 = vld [vmem:[#allocation2 + $0x468] sm:$0xff] }
 0x15f   :  { %v3632_v56 = vpop.eup %3631  ;;  %v1817_v51 = vmul.f32 %v3630_v23, %v3241_v35  ;;  %3639 = vrcp.f32 %v1437_v30  ;;  %2965 = vst [vmem:[#allocation5 + $0x3e8] sm:$0xff] %v2709_v40  ;;  %v2711_v57 = vmul.f32 0.00125, %v2455_v33  ;;  %v670_v47 = vmin.f32 %v414_v4, 40.0  ;;  %v165_v4 = vld [vmem:[#allocation2 + $0x470] sm:$0xff]  ;;  %v166_v33 = vld [vmem:[#allocation2 + $0x478] sm:$0xff] }
 0x160   :  { %v1819_v58 = vmul.f32 %v3632_v56, %v3242_v36  ;;  %3641 = vrcp.f32 %v1438_v31  ;;  %2966 = vst [vmem:[#allocation5 + $0x3f0] sm:$0xff] %v2710_v53  ;;  %v671_v41 = vmin.f32 %v415_v46, 40.0  ;;  %v416_v34 = vmax.f32 %v160_v54, 10.0 }
 0x161   :  { %v2456_v59 = vmul.f32 %v2200_v15, %v1817_v51  ;;  %v417_v55 = vmax.f32 %v161_v48, 10.0  ;;  %v3634_v3 = vpop.eup %3633  ;;  %2967 = vst [vmem:[#allocation5 + $0x3f8] sm:$0xff] %v2711_v57  ;;  %v3244_v0 = vadd.f32 -1.0, %v923_v2  ;;  %v2204_v5 = vmul.f32 %v667_v24, %v667_v24  ;;  %v163_v24 = vld [vmem:[#allocation2 + $0x460] sm:$0xff] }
 0x162   :  { %v2457_v43 = vmul.f32 %v2201_v21, %v1819_v58  ;;  %v927_v6 = vmul.f32 0.1, %v670_v47  ;;  %v1821_v7 = vmul.f32 %v3634_v3, %v3243_v49  ;;  %v2205_v8 = vmul.f32 %v668_v26, %v668_v26  ;;  %v167_v57 = vld [vmem:[#allocation2 + $0x480] sm:$0xff] }
 0x163   :  { %v2712_v60 = vmul.f32 0.00125, %v2456_v59  ;;  %v928_v14 = vmul.f32 0.1, %v671_v41  ;;  %v672_v52 = vmin.f32 %v416_v34, 40.0  ;;  %v418_v10 = vmax.f32 %v162_v61, 10.0 }
 0x164   :  { %v2713_v1 = vmul.f32 0.00125, %v2457_v43  ;;  %v1439_v62 = vadd.f32 2.0, %v927_v6  ;;  %v2458_v19 = vmul.f32 %v2202_v11, %v1821_v7  ;;  %v3245_v63 = vadd.f32 -1.0, %v924_v39 }
 0x165   :  { %v3636_v17 = vpop.eup %3635  ;;  %2968 = vst [vmem:[#allocation5 + $0x400] sm:$0xff] %v2712_v60  ;;  %v1440_v50 = vadd.f32 2.0, %v928_v14  ;;  %v673_v22 = vmin.f32 %v417_v55, 40.0  ;;  %v3246_v16 = vadd.f32 -1.0, %v925_v37  ;;  %v929_v2 = vmul.f32 0.1, %v672_v52 }
 0x166   :  { %2969 = vst [vmem:[#allocation5 + $0x408] sm:$0xff] %v2713_v1  ;;  %v1823_v15 = vmul.f32 %v3636_v17, %v3244_v0  ;;  %3643 = vrcp.f32 %v1439_v62  ;;  %v2714_v35 = vmul.f32 0.00125, %v2458_v19  ;;  %v3247_v21 = vadd.f32 -1.0, %v926_v38 }
 0x167   :  { %3645 = vrcp.f32 %v1440_v50  ;;  %v930_v26 = vmul.f32 0.1, %v673_v22  ;;  %v2206_v13 = vmul.f32 %v4179_v25, %v4179_v25  ;;  %v1441_v27 = vadd.f32 2.0, %v929_v2 }
 0x168   :  { %v3638_v9 = vpop.eup %3637  ;;  %v2459_v28 = vmul.f32 %v2203_v29, %v1823_v15  ;;  %v674_v36 = vmin.f32 %v418_v10, 40.0  ;;  %2970 = vst [vmem:[#allocation5 + $0x410] sm:$0xff] %v2714_v35  ;;  %v2207_v42 = vmul.f32 %v670_v47, %v670_v47  ;;  %v419_v37 = vmax.f32 %v163_v24, 10.0 }
 0x169   :  { %v3640_v39 = vpop.eup %3639  ;;  %v1825_v12 = vmul.f32 %v3638_v9, %v3245_v63  ;;  %v1442_v20 = vadd.f32 2.0, %v930_v26  ;;  %3647 = vrcp.f32 %v1441_v27  ;;  %v2208_v30 = vmul.f32 %v671_v41, %v671_v41  ;;  %v169_v9 = vld [vmem:[#allocation2 + $0x490] sm:$0xff] }
 0x16a   :  { %v3642_v11 = vpop.eup %3641  ;;  %v2715_v45 = vmul.f32 0.00125, %v2459_v28  ;;  %v1827_v44 = vmul.f32 %v3640_v39, %v3246_v16  ;;  %v931_v38 = vmul.f32 0.1, %v674_v36  ;;  %v3248_v46 = vadd.f32 -1.0, %v927_v6  ;;  %v170_v28 = vld [vmem:[#allocation2 + $0x498] sm:$0xff] }
 0x16b   :  { %v2460_v18 = vmul.f32 %v2204_v5, %v1825_v12  ;;  %v1829_v49 = vmul.f32 %v3642_v11, %v3247_v21  ;;  %3649 = vrcp.f32 %v1442_v20  ;;  %v675_v40 = vmin.f32 %v419_v37, 40.0 }
 0x16c   :  { %2971 = vst [vmem:[#allocation5 + $0x418] sm:$0xff] %v2715_v45  ;;  %v2461_v25 = vmul.f32 %v2205_v8, %v1827_v44  ;;  %v1443_v23 = vadd.f32 2.0, %v931_v38  ;;  %v420_v48 = vmax.f32 %v164_v32, 10.0  ;;  %v421_v56 = vmax.f32 %v165_v4, 10.0  ;;  %v168_v8 = vld [vmem:[#allocation2 + $0x488] sm:$0xff] }
 0x16d   :  { %v2716_v31 = vmul.f32 0.00125, %v2460_v18  ;;  %v2462_v54 = vmul.f32 %v2206_v13, %v1829_v49  ;;  %v3249_v51 = vadd.f32 -1.0, %v928_v14  ;;  %v932_v29 = vmul.f32 0.1, %v675_v40  ;;  %v172_v49 = vld [vmem:[#allocation2 + $0x4a8] sm:$0xff] }
 0x16e   :  { %v2717_v53 = vmul.f32 0.00125, %v2461_v25  ;;  %3651 = vrcp.f32 %v1443_v23  ;;  %v676_v47 = vmin.f32 %v420_v48, 40.0  ;;  %v677_v59 = vmin.f32 %v421_v56, 40.0 }
 0x16f   :  { %2972 = vst [vmem:[#allocation5 + $0x420] sm:$0xff] %v2716_v31  ;;  %v2718_v58 = vmul.f32 0.00125, %v2462_v54  ;;  %v422_v41 = vmax.f32 %v166_v33, 10.0  ;;  %v3250_v55 = vadd.f32 -1.0, %v929_v2  ;;  %v2209_v61 = vmul.f32 %v672_v52, %v672_v52 }
 0x170   :  { %v3644_v34 = vpop.eup %3643  ;;  %2973 = vst [vmem:[#allocation5 + $0x428] sm:$0xff] %v2717_v53  ;;  %v2210_v3 = vmul.f32 %v673_v22, %v673_v22  ;;  %v1444_v43 = vadd.f32 2.0, %v932_v29  ;;  %v933_v6 = vmul.f32 0.1, %v676_v47  ;;  %v934_v60 = vmul.f32 0.1, %v677_v59 }
 0x171   :  { %v3646_v0 = vpop.eup %3645  ;;  %2974 = vst [vmem:[#allocation5 + $0x430] sm:$0xff] %v2718_v58  ;;  %v1831_v5 = vmul.f32 %v3644_v34, %v3248_v46  ;;  %v423_v7 = vmax.f32 %v167_v57, 10.0  ;;  %v3251_v1 = vadd.f32 -1.0, %v930_v26  ;;  %v678_v62 = vmin.f32 %v422_v41, 40.0 }
 0x172   :  { %v1833_v14 = vmul.f32 %v3646_v0, %v3249_v51  ;;  %3653 = vrcp.f32 %v1444_v43  ;;  %v3252_v17 = vadd.f32 -1.0, %v931_v38  ;;  %v2211_v19 = vmul.f32 %v674_v36, %v674_v36  ;;  %v171_v38 = vld [vmem:[#allocation2 + $0x4a0] sm:$0xff] }
 0x173   :  { %v2463_v10 = vmul.f32 %v2207_v42, %v1831_v5  ;;  %v1445_v63 = vadd.f32 2.0, %v933_v6  ;;  %v3648_v50 = vpop.eup %3647  ;;  %v1446_v52 = vadd.f32 2.0, %v934_v60  ;;  %v935_v22 = vmul.f32 0.1, %v678_v62 }
 0x174   :  { %v2464_v15 = vmul.f32 %v2208_v30, %v1833_v14  ;;  %v424_v16 = vmax.f32 %v168_v8, 10.0  ;;  %v1835_v35 = vmul.f32 %v3648_v50, %v3250_v55  ;;  %v679_v21 = vmin.f32 %v423_v7, 40.0 }
 0x175   :  { %v3650_v2 = vpop.eup %3649  ;;  %v2719_v24 = vmul.f32 0.00125, %v2463_v10  ;;  %3655 = vrcp.f32 %v1445_v63  ;;  %v2212_v27 = vmul.f32 %v675_v40, %v675_v40  ;;  %v3253_v36 = vadd.f32 -1.0, %v932_v29 }
 0x176   :  { %v2720_v13 = vmul.f32 0.00125, %v2464_v15  ;;  %v1837_v26 = vmul.f32 %v3650_v2, %v3251_v1  ;;  %3657 = vrcp.f32 %v1446_v52  ;;  %v2465_v39 = vmul.f32 %v2209_v61, %v1835_v35  ;;  %v173_v1 = vld [vmem:[#allocation2 + $0x4b0] sm:$0xff] }
 0x177   :  { %2975 = vst [vmem:[#allocation5 + $0x438] sm:$0xff] %v2719_v24  ;;  %v1447_v12 = vadd.f32 2.0, %v935_v22  ;;  %v936_v42 = vmul.f32 0.1, %v679_v21  ;;  %v680_v11 = vmin.f32 %v424_v16, 40.0  ;;  %v425_v45 = vmax.f32 %v169_v9, 10.0 }
 0x178   :  { %v3652_v20 = vpop.eup %3651  ;;  %2976 = vst [vmem:[#allocation5 + $0x440] sm:$0xff] %v2720_v13  ;;  %v2466_v37 = vmul.f32 %v2210_v3, %v1837_v26  ;;  %v426_v44 = vmax.f32 %v170_v28, 10.0  ;;  %v2721_v32 = vmul.f32 0.00125, %v2465_v39  ;;  %v2213_v18 = vmul.f32 %v676_v47, %v676_v47  ;;  %v175_v24 = vld [vmem:[#allocation2 + $0x4c0] sm:$0xff]  ;;  %v176_v28 = vld [vmem:[#allocation2 + $0x4c8] sm:$0xff] }
 0x179   :  { %v1839_v4 = vmul.f32 %v3652_v20, %v3252_v17  ;;  %3659 = vrcp.f32 %v1447_v12  ;;  %v2214_v25 = vmul.f32 %v677_v59, %v677_v59  ;;  %v1448_v46 = vadd.f32 2.0, %v936_v42 }
 0x17a   :  { %v2722_v30 = vmul.f32 0.00125, %v2466_v37  ;;  %v937_v23 = vmul.f32 0.1, %v680_v11  ;;  %2977 = vst [vmem:[#allocation5 + $0x448] sm:$0xff] %v2721_v32  ;;  %v681_v33 = vmin.f32 %v425_v45, 40.0  ;;  %v2215_v41 = vmul.f32 %v678_v62, %v678_v62 }
 0x17b   :  { %v2467_v40 = vmul.f32 %v2211_v19, %v1839_v4  ;;  %v682_v31 = vmin.f32 %v426_v44, 40.0  ;;  %v427_v54 = vmax.f32 %v171_v38, 10.0  ;;  %v3254_v56 = vadd.f32 -1.0, %v933_v6  ;;  %v174_v62 = vld [vmem:[#allocation2 + $0x4b8] sm:$0xff] }
 0x17c   :  { %v3654_v48 = vpop.eup %3653  ;;  %2978 = vst [vmem:[#allocation5 + $0x450] sm:$0xff] %v2722_v30  ;;  %3661 = vrcp.f32 %v1448_v46  ;;  %v1449_v53 = vadd.f32 2.0, %v937_v23  ;;  %v428_v51 = vmax.f32 %v172_v49, 10.0  ;;  %v3255_v58 = vadd.f32 -1.0, %v934_v60 }
 0x17d   :  { %v2723_v29 = vmul.f32 0.00125, %v2467_v40  ;;  %v1841_v57 = vmul.f32 %v3654_v48, %v3253_v36  ;;  %v938_v47 = vmul.f32 0.1, %v681_v33  ;;  %v939_v59 = vmul.f32 0.1, %v682_v31 }
 0x17e   :  { %3663 = vrcp.f32 %v1449_v53  ;;  %v683_v34 = vmin.f32 %v427_v54, 40.0  ;;  %v3256_v3 = vadd.f32 -1.0, %v935_v22  ;;  %v4184_v0 = vmin.f32 %v428_v51, 40.0 }
 0x17f   :  { %v3656_v55 = vpop.eup %3655  ;;  %2979 = vst [vmem:[#allocation5 + $0x458] sm:$0xff] %v2723_v29  ;;  %v2468_v61 = vmul.f32 %v2212_v27, %v1841_v57  ;;  %v1450_v43 = vadd.f32 2.0, %v938_v47  ;;  %v2216_v7 = vmul.f32 %v679_v21, %v679_v21  ;;  %v1451_v8 = vadd.f32 2.0, %v939_v59  ;;  %v177_v29 = vld [vmem:[#allocation2 + $0x4d0] sm:$0xff]  ;;  %v178_v57 = vld [vmem:[#allocation2 + $0x4d8] sm:$0xff] }
 0x180   :  { %v3658_v5 = vpop.eup %3657  ;;  %v1843_v6 = vmul.f32 %v3656_v55, %v3254_v56  ;;  %v940_v14 = vmul.f32 0.1, %v683_v34  ;;  %v3257_v17 = vadd.f32 -1.0, %v936_v42  ;;  %v2217_v63 = vmul.f32 %v680_v11, %v680_v11 }
 0x181   :  { %v2724_v10 = vmul.f32 0.00125, %v2468_v61  ;;  %v1845_v60 = vmul.f32 %v3658_v5, %v3255_v58  ;;  %3665 = vrcp.f32 %v1450_v43  ;;  %v3258_v22 = vadd.f32 -1.0, %v937_v23  ;;  %v179_v43 = vld [vmem:[#allocation2 + $0x4e0] sm:$0xff] }
 0x182   :  { %v2469_v19 = vmul.f32 %v2213_v18, %v1843_v6  ;;  %3667 = vrcp.f32 %v1451_v8  ;;  %v1452_v50 = vadd.f32 2.0, %v940_v14  ;;  %v941_v16 = vmul.f32 0.1, %v4184_v0 }
 0x183   :  { %v3660_v15 = vpop.eup %3659  ;;  %2980 = vst [vmem:[#allocation5 + $0x460] sm:$0xff] %v2724_v10  ;;  %v2470_v52 = vmul.f32 %v2214_v25, %v1845_v60  ;;  %v429_v2 = vmax.f32 %v173_v1, 10.0  ;;  %v430_v9 = vmax.f32 %v174_v62, 10.0  ;;  %v2218_v26 = vmul.f32 %v681_v33, %v681_v33 }
 0x184   :  { %v2725_v35 = vmul.f32 0.00125, %v2469_v19  ;;  %v1847_v21 = vmul.f32 %v3660_v15, %v3256_v3  ;;  %3669 = vrcp.f32 %v1452_v50  ;;  %v1453_v27 = vadd.f32 2.0, %v941_v16 }
 0x185   :  { %v2726_v13 = vmul.f32 0.00125, %v2470_v52  ;;  %v685_v39 = vmin.f32 %v429_v2, 40.0  ;;  %v2219_v42 = vmul.f32 %v682_v31, %v682_v31  ;;  %v4187_v20 = vmin.f32 %v430_v9, 40.0 }
 0x186   :  { %v3662_v36 = vpop.eup %3661  ;;  %2981 = vst [vmem:[#allocation5 + $0x468] sm:$0xff] %v2725_v35  ;;  %v2471_v12 = vmul.f32 %v2215_v41, %v1847_v21  ;;  %v431_v37 = vmax.f32 %v175_v24, 10.0  ;;  %3671 = vrcp.f32 %v1453_v27  ;;  %v432_v44 = vmax.f32 %v176_v28, 10.0 }
 0x187   :  { %2982 = vst [vmem:[#allocation5 + $0x470] sm:$0xff] %v2726_v13  ;;  %v1849_v11 = vmul.f32 %v3662_v36, %v3257_v17  ;;  %v942_v45 = vmul.f32 0.1, %v685_v39  ;;  %v3259_v4 = vadd.f32 -1.0, %v938_v47  ;;  %v943_v18 = vmul.f32 0.1, %v4187_v20 }
 0x188   :  { %v3664_v38 = vpop.eup %3663  ;;  %v2727_v32 = vmul.f32 0.00125, %v2471_v12  ;;  %v687_v49 = vmin.f32 %v431_v37, 40.0  ;;  %v3260_v46 = vadd.f32 -1.0, %v939_v59  ;;  %v3261_v40 = vadd.f32 -1.0, %v940_v14  ;;  %v180_v14 = vld [vmem:[#allocation2 + $0x4e8] sm:$0xff] }
 0x189   :  { %v2472_v30 = vmul.f32 %v2216_v7, %v1849_v11  ;;  %v1851_v25 = vmul.f32 %v3664_v38, %v3258_v22  ;;  %v1454_v23 = vadd.f32 2.0, %v942_v45  ;;  %v2220_v33 = vmul.f32 %v683_v34, %v683_v34  ;;  %v181_v12 = vld [vmem:[#allocation2 + $0x4f0] sm:$0xff] }
 0x18a   :  { %2983 = vst [vmem:[#allocation5 + $0x478] sm:$0xff] %v2727_v32  ;;  %v1455_v31 = vadd.f32 2.0, %v943_v18  ;;  %v944_v54 = vmul.f32 0.1, %v687_v49  ;;  %v688_v51 = vmin.f32 %v432_v44, 40.0  ;;  %v2221_v41 = vmul.f32 %v4184_v0, %v4184_v0 }
 0x18b   :  { %v3666_v48 = vpop.eup %3665  ;;  %v2728_v56 = vmul.f32 0.00125, %v2472_v30  ;;  %v2473_v53 = vmul.f32 %v2217_v63, %v1851_v25  ;;  %3673 = vrcp.f32 %v1454_v23  ;;  %v3262_v34 = vadd.f32 -1.0, %v941_v16 }
 0x18c   :  { %v3668_v58 = vpop.eup %3667  ;;  %v1853_v47 = vmul.f32 %v3666_v48, %v3259_v4  ;;  %3675 = vrcp.f32 %v1455_v31  ;;  %v1456_v59 = vadd.f32 2.0, %v944_v54  ;;  %v945_v3 = vmul.f32 0.1, %v688_v51  ;;  %v184_v48 = vld [vmem:[#allocation2 + $0x508] sm:$0xff] }
 0x18d   :  { %2984 = vst [vmem:[#allocation5 + $0x480] sm:$0xff] %v2728_v56  ;;  %v2729_v55 = vmul.f32 0.00125, %v2473_v53  ;;  %v1855_v61 = vmul.f32 %v3668_v58, %v3260_v46  ;;  %v433_v7 = vmax.f32 %v177_v29, 10.0  ;;  %v434_v8 = vmax.f32 %v178_v57, 10.0 }
 0x18e   :  { %v3670_v5 = vpop.eup %3669  ;;  %v2474_v6 = vmul.f32 %v2218_v26, %v1853_v47  ;;  %3677 = vrcp.f32 %v1456_v59  ;;  %v2222_v60 = vmul.f32 %v685_v39, %v685_v39  ;;  %v1457_v17 = vadd.f32 2.0, %v945_v3 }
 0x18f   :  { %2985 = vst [vmem:[#allocation5 + $0x488] sm:$0xff] %v2729_v55  ;;  %v2475_v1 = vmul.f32 %v2219_v42, %v1855_v61  ;;  %v1857_v10 = vmul.f32 %v3670_v5, %v3261_v40  ;;  %v689_v62 = vmin.f32 %v433_v7, 40.0  ;;  %v690_v19 = vmin.f32 %v434_v8, 40.0 }
 0x190   :  { %v2730_v0 = vmul.f32 0.00125, %v2474_v6  ;;  %v435_v63 = vmax.f32 %v179_v43, 10.0  ;;  %v3672_v50 = vpop.eup %3671  ;;  %3679 = vrcp.f32 %v1457_v17  ;;  %v436_v22 = vmax.f32 %v180_v14, 10.0 }
 0x191   :  { %v2731_v15 = vmul.f32 0.00125, %v2475_v1  ;;  %v2476_v52 = vmul.f32 %v2220_v33, %v1857_v10  ;;  %v1859_v16 = vmul.f32 %v3672_v50, %v3262_v34  ;;  %v3263_v2 = vadd.f32 -1.0, %v942_v45 }
 0x192   :  { %2986 = vst [vmem:[#allocation5 + $0x490] sm:$0xff] %v2730_v0  ;;  %v946_v24 = vmul.f32 0.1, %v689_v62  ;;  %v947_v35 = vmul.f32 0.1, %v690_v19  ;;  %v3264_v9 = vadd.f32 -1.0, %v943_v18  ;;  %v2223_v27 = vmul.f32 %v4187_v20, %v4187_v20 }
 0x193   :  { %2987 = vst [vmem:[#allocation5 + $0x498] sm:$0xff] %v2731_v15  ;;  %v2732_v21 = vmul.f32 0.00125, %v2476_v52  ;;  %v691_v28 = vmin.f32 %v435_v63, 40.0  ;;  %v692_v13 = vmin.f32 %v436_v22, 40.0  ;;  %v2477_v26 = vmul.f32 %v2221_v41, %v1859_v16  ;;  %v182_v18 = vld [vmem:[#allocation2 + $0x4f8] sm:$0xff] }
 0x194   :  { %v2224_v39 = vmul.f32 %v687_v49, %v687_v49  ;;  %v1458_v36 = vadd.f32 2.0, %v946_v24  ;;  %v3265_v37 = vadd.f32 -1.0, %v944_v54  ;;  %v1459_v11 = vadd.f32 2.0, %v947_v35  ;;  %v183_v20 = vld [vmem:[#allocation2 + $0x500] sm:$0xff]  ;;  %v185_v15 = vld [vmem:[#allocation2 + $0x510] sm:$0xff] }
 0x195   :  { %v3674_v42 = vpop.eup %3673  ;;  %2988 = vst [vmem:[#allocation5 + $0x4a0] sm:$0xff] %v2732_v21  ;;  %v948_v44 = vmul.f32 0.1, %v691_v28  ;;  %v949_v45 = vmul.f32 0.1, %v692_v13  ;;  %v2225_v30 = vmul.f32 %v688_v51, %v688_v51  ;;  %v3266_v46 = vadd.f32 -1.0, %v945_v3 }
 0x196   :  { %v3676_v38 = vpop.eup %3675  ;;  %v2733_v32 = vmul.f32 0.00125, %v2477_v26  ;;  %v1861_v4 = vmul.f32 %v3674_v42, %v3263_v2  ;;  %3681 = vrcp.f32 %v1458_v36  ;;  %v2226_v33 = vmul.f32 %v689_v62, %v689_v62  ;;  %v186_v2 = vld [vmem:[#allocation2 + $0x518] sm:$0xff] }
 0x197   :  { %v1863_v25 = vmul.f32 %v3676_v38, %v3264_v9  ;;  %3683 = vrcp.f32 %v1459_v11  ;;  %v1460_v23 = vadd.f32 2.0, %v948_v44  ;;  %v1461_v31 = vadd.f32 2.0, %v949_v45 }
 0x198   :  { %v3678_v49 = vpop.eup %3677  ;;  %2989 = vst [vmem:[#allocation5 + $0x4a8] sm:$0xff] %v2733_v32  ;;  %v2478_v40 = vmul.f32 %v2222_v60, %v1861_v4  ;;  %v437_v54 = vmax.f32 %v181_v12, 10.0  ;;  %v438_v29 = vmax.f32 %v182_v18, 10.0  ;;  %v439_v58 = vmax.f32 %v183_v20, 10.0 }
 0x199   :  { %v2479_v56 = vmul.f32 %v2223_v27, %v1863_v25  ;;  %v1865_v53 = vmul.f32 %v3678_v49, %v3265_v37  ;;  %3685 = vrcp.f32 %v1460_v23  ;;  %v440_v61 = vmax.f32 %v184_v48, 10.0  ;;  %v188_v37 = vld [vmem:[#allocation2 + $0x528] sm:$0xff]  ;;  %v189_v48 = vld [vmem:[#allocation2 + $0x530] sm:$0xff] }
 0x19a   :  { %v2734_v57 = vmul.f32 0.00125, %v2478_v40  ;;  %3687 = vrcp.f32 %v1461_v31  ;;  %v693_v51 = vmin.f32 %v437_v54, 40.0  ;;  %v3680_v47 = vpop.eup %3679  ;;  %v694_v55 = vmin.f32 %v438_v29, 40.0 }
 0x19b   :  { %v2735_v41 = vmul.f32 0.00125, %v2479_v56  ;;  %v2480_v59 = vmul.f32 %v2224_v39, %v1865_v53  ;;  %v1867_v34 = vmul.f32 %v3680_v47, %v3266_v46  ;;  %v2227_v3 = vmul.f32 %v690_v19, %v690_v19 }
 0x19c   :  { %2990 = vst [vmem:[#allocation5 + $0x4b0] sm:$0xff] %v2734_v57  ;;  %v950_v43 = vmul.f32 0.1, %v693_v51  ;;  %v695_v5 = vmin.f32 %v439_v58, 40.0  ;;  %v3267_v7 = vadd.f32 -1.0, %v946_v24  ;;  %v4194_v14 = vmin.f32 %v440_v61, 40.0 }
 0x19d   :  { %2991 = vst [vmem:[#allocation5 + $0x4b8] sm:$0xff] %v2735_v41  ;;  %v2736_v6 = vmul.f32 0.00125, %v2480_v59  ;;  %v951_v8 = vmul.f32 0.1, %v694_v55  ;;  %v2481_v1 = vmul.f32 %v2225_v30, %v1867_v34  ;;  %v3268_v10 = vadd.f32 -1.0, %v947_v35 }
 0x19e   :  { %v1462_v60 = vadd.f32 2.0, %v950_v43  ;;  %v952_v17 = vmul.f32 0.1, %v695_v5  ;;  %v2228_v0 = vmul.f32 %v691_v28, %v691_v28  ;;  %v2229_v62 = vmul.f32 %v692_v13, %v692_v13  ;;  %v187_v24 = vld [vmem:[#allocation2 + $0x520] sm:$0xff] }
 0x19f   :  { %2992 = vst [vmem:[#allocation5 + $0x4c0] sm:$0xff] %v2736_v6  ;;  %v1463_v63 = vadd.f32 2.0, %v951_v8  ;;  %v953_v50 = vmul.f32 0.1, %v4194_v14  ;;  %v2737_v52 = vmul.f32 0.00125, %v2481_v1  ;;  %v2230_v28 = vmul.f32 %v693_v51, %v693_v51 }
 0x1a0   :  { %v3682_v19 = vpop.eup %3681  ;;  %v3269_v22 = vadd.f32 -1.0, %v948_v44  ;;  %3689 = vrcp.f32 %v1462_v60  ;;  %v1464_v16 = vadd.f32 2.0, %v952_v17  ;;  %v3270_v26 = vadd.f32 -1.0, %v949_v45  ;;  %v190_v51 = vld [vmem:[#allocation2 + $0x538] sm:$0xff] }
 0x1a1   :  { %v3684_v21 = vpop.eup %3683  ;;  %v1869_v9 = vmul.f32 %v3682_v19, %v3267_v7  ;;  %3691 = vrcp.f32 %v1463_v63  ;;  %v1465_v35 = vadd.f32 2.0, %v953_v50  ;;  %2993 = vst [vmem:[#allocation5 + $0x4c8] sm:$0xff] %v2737_v52  ;;  %v441_v13 = vmax.f32 %v185_v15, 10.0 }
 0x1a2   :  { %v1871_v27 = vmul.f32 %v3684_v21, %v3268_v10  ;;  %3693 = vrcp.f32 %v1464_v16  ;;  %v442_v12 = vmax.f32 %v186_v2, 10.0  ;;  %v443_v42 = vmax.f32 %v187_v24, 10.0 }
 0x1a3   :  { %v3686_v39 = vpop.eup %3685  ;;  %v2482_v36 = vmul.f32 %v2226_v33, %v1869_v9  ;;  %3695 = vrcp.f32 %v1465_v35  ;;  %v2231_v32 = vmul.f32 %v694_v55, %v694_v55  ;;  %v697_v4 = vmin.f32 %v441_v13, 40.0  ;;  %v192_v9 = vld [vmem:[#allocation2 + $0x548] sm:$0xff]  ;;  %v193_v13 = vld [vmem:[#allocation2 + $0x550] sm:$0xff] }
 0x1a4   :  { %v3688_v11 = vpop.eup %3687  ;;  %v2483_v44 = vmul.f32 %v2227_v3, %v1871_v27  ;;  %v1873_v38 = vmul.f32 %v3686_v39, %v3269_v22  ;;  %v698_v18 = vmin.f32 %v442_v12, 40.0  ;;  %v4197_v25 = vmin.f32 %v443_v42, 40.0  ;;  %v194_v39 = vld [vmem:[#allocation2 + $0x558] sm:$0xff] }
 0x1a5   :  { %v2738_v30 = vmul.f32 0.00125, %v2482_v36  ;;  %v1875_v45 = vmul.f32 %v3688_v11, %v3270_v26  ;;  %v954_v20 = vmul.f32 0.1, %v697_v4  ;;  %v444_v49 = vmax.f32 %v188_v37, 10.0  ;;  %v195_v37 = vld [vmem:[#allocation2 + $0x560] sm:$0xff] }
 0x1a6   :  { %v2739_v46 = vmul.f32 0.00125, %v2483_v44  ;;  %v2484_v23 = vmul.f32 %v2228_v0, %v1873_v38  ;;  %v3271_v33 = vadd.f32 -1.0, %v950_v43  ;;  %v955_v31 = vmul.f32 0.1, %v698_v18 }
 0x1a7   :  { %2994 = vst [vmem:[#allocation5 + $0x4d0] sm:$0xff] %v2738_v30  ;;  %v2485_v40 = vmul.f32 %v2229_v62, %v1875_v45  ;;  %v956_v54 = vmul.f32 0.1, %v4197_v25  ;;  %v3272_v53 = vadd.f32 -1.0, %v951_v8  ;;  %v2232_v29 = vmul.f32 %v695_v5, %v695_v5  ;;  %v191_v8 = vld [vmem:[#allocation2 + $0x540] sm:$0xff] }
 0x1a8   :  { %2995 = vst [vmem:[#allocation5 + $0x4d8] sm:$0xff] %v2739_v46  ;;  %v2740_v56 = vmul.f32 0.00125, %v2484_v23  ;;  %v1466_v57 = vadd.f32 2.0, %v954_v20  ;;  %v3273_v47 = vadd.f32 -1.0, %v952_v17  ;;  %v3274_v41 = vadd.f32 -1.0, %v953_v50 }
 0x1a9   :  { %v2741_v58 = vmul.f32 0.00125, %v2485_v40  ;;  %v1467_v59 = vadd.f32 2.0, %v955_v31  ;;  %v1468_v61 = vadd.f32 2.0, %v956_v54  ;;  %v700_v34 = vmin.f32 %v444_v49, 40.0 }
 0x1aa   :  { %v3690_v55 = vpop.eup %3689  ;;  %2996 = vst [vmem:[#allocation5 + $0x4e0] sm:$0xff] %v2740_v56  ;;  %3697 = vrcp.f32 %v1466_v57  ;;  %v445_v3 = vmax.f32 %v189_v48, 10.0  ;;  %v2233_v7 = vmul.f32 %v4194_v14, %v4194_v14  ;;  %v446_v5 = vmax.f32 %v190_v51, 10.0 }
 0x1ab   :  { %v3692_v43 = vpop.eup %3691  ;;  %2997 = vst [vmem:[#allocation5 + $0x4e8] sm:$0xff] %v2741_v58  ;;  %v1877_v6 = vmul.f32 %v3690_v55, %v3271_v33  ;;  %3699 = vrcp.f32 %v1467_v59  ;;  %v2234_v60 = vmul.f32 %v697_v4, %v697_v4  ;;  %v957_v17 = vmul.f32 0.1, %v700_v34 }
 0x1ac   :  { %v3694_v1 = vpop.eup %3693  ;;  %v1879_v10 = vmul.f32 %v3692_v43, %v3272_v53  ;;  %3701 = vrcp.f32 %v1468_v61  ;;  %v701_v50 = vmin.f32 %v445_v3, 40.0  ;;  %v702_v15 = vmin.f32 %v446_v5, 40.0 }
 0x1ad   :  { %v3696_v0 = vpop.eup %3695  ;;  %v2486_v62 = vmul.f32 %v2230_v28, %v1877_v6  ;;  %v1881_v63 = vmul.f32 %v3694_v1, %v3273_v47  ;;  %v1469_v22 = vadd.f32 2.0, %v957_v17  ;;  %v447_v16 = vmax.f32 %v191_v8, 10.0  ;;  %v196_v6 = vld [vmem:[#allocation2 + $0x568] sm:$0xff] }
 0x1ae   :  { %v2487_v19 = vmul.f32 %v2231_v32, %v1879_v10  ;;  %v1883_v52 = vmul.f32 %v3696_v0, %v3274_v41  ;;  %v2235_v14 = vmul.f32 %v698_v18, %v698_v18  ;;  %v958_v21 = vmul.f32 0.1, %v701_v50 }
 0x1af   :  { %v2742_v2 = vmul.f32 0.00125, %v2486_v62  ;;  %v2488_v24 = vmul.f32 %v2232_v29, %v1881_v63  ;;  %3703 = vrcp.f32 %v1469_v22  ;;  %v959_v27 = vmul.f32 0.1, %v702_v15 }
 0x1b0   :  { %v2743_v26 = vmul.f32 0.00125, %v2487_v19  ;;  %v2489_v35 = vmul.f32 %v2233_v7, %v1883_v52  ;;  %v3275_v36 = vadd.f32 -1.0, %v954_v20  ;;  %v3276_v12 = vadd.f32 -1.0, %v955_v31 }
 0x1b1   :  { %2998 = vst [vmem:[#allocation5 + $0x4f0] sm:$0xff] %v2742_v2  ;;  %v2744_v28 = vmul.f32 0.00125, %v2488_v24  ;;  %v1470_v42 = vadd.f32 2.0, %v958_v21  ;;  %v3277_v44 = vadd.f32 -1.0, %v956_v54  ;;  %v1471_v38 = vadd.f32 2.0, %v959_v27 }
 0x1b2   :  { %2999 = vst [vmem:[#allocation5 + $0x4f8] sm:$0xff] %v2743_v26  ;;  %v2745_v11 = vmul.f32 0.00125, %v2489_v35  ;;  %v703_v32 = vmin.f32 %v447_v16, 40.0  ;;  %v448_v4 = vmax.f32 %v192_v9, 10.0  ;;  %v449_v30 = vmax.f32 %v193_v13, 10.0 }
 0x1b3   :  { %3000 = vst [vmem:[#allocation5 + $0x500] sm:$0xff] %v2744_v28  ;;  %3705 = vrcp.f32 %v1470_v42  ;;  %v450_v45 = vmax.f32 %v194_v39, 10.0  ;;  %v2236_v46 = vmul.f32 %v4197_v25, %v4197_v25  ;;  %v451_v20 = vmax.f32 %v195_v37, 10.0  ;;  %v198_v24 = vld [vmem:[#allocation2 + $0x578] sm:$0xff] }
 0x1b4   :  { %v3698_v18 = vpop.eup %3697  ;;  %3001 = vst [vmem:[#allocation5 + $0x508] sm:$0xff] %v2745_v11  ;;  %3707 = vrcp.f32 %v1471_v38  ;;  %v960_v23 = vmul.f32 0.1, %v703_v32  ;;  %v2237_v33 = vmul.f32 %v700_v34, %v700_v34  ;;  %v704_v31 = vmin.f32 %v448_v4, 40.0 }
 0x1b5   :  { %v3700_v49 = vpop.eup %3699  ;;  %v1885_v40 = vmul.f32 %v3698_v18, %v3275_v36  ;;  %v705_v54 = vmin.f32 %v449_v30, 40.0  ;;  %v3278_v53 = vadd.f32 -1.0, %v957_v17  ;;  %v4204_v57 = vmin.f32 %v450_v45, 40.0 }
 0x1b6   :  { %v3702_v48 = vpop.eup %3701  ;;  %v1887_v56 = vmul.f32 %v3700_v49, %v3276_v12  ;;  %v1472_v29 = vadd.f32 2.0, %v960_v23  ;;  %v2238_v47 = vmul.f32 %v701_v50, %v701_v50  ;;  %v961_v41 = vmul.f32 0.1, %v704_v31 }
 0x1b7   :  { %v2490_v51 = vmul.f32 %v2234_v60, %v1885_v40  ;;  %v1889_v58 = vmul.f32 %v3702_v48, %v3277_v44  ;;  %v962_v25 = vmul.f32 0.1, %v705_v54  ;;  %v4206_v55 = vmin.f32 %v451_v20, 40.0  ;;  %v197_v60 = vld [vmem:[#allocation2 + $0x570] sm:$0xff] }
 0x1b8   :  { %v2491_v59 = vmul.f32 %v2235_v14, %v1887_v56  ;;  %3709 = vrcp.f32 %v1472_v29  ;;  %v3279_v34 = vadd.f32 -1.0, %v958_v21  ;;  %v1473_v43 = vadd.f32 2.0, %v961_v41  ;;  %v199_v14 = vld [vmem:[#allocation2 + $0x580] sm:$0xff] }
 0x1b9   :  { %v2746_v61 = vmul.f32 0.00125, %v2490_v51  ;;  %v2492_v3 = vmul.f32 %v2236_v46, %v1889_v58  ;;  %v3704_v7 = vpop.eup %3703  ;;  %v2239_v8 = vmul.f32 %v702_v15, %v702_v15  ;;  %v1474_v1 = vadd.f32 2.0, %v962_v25  ;;  %v200_v51 = vld [vmem:[#allocation2 + $0x588] sm:$0xff]  ;;  %v201_v58 = vld [vmem:[#allocation2 + $0x590] sm:$0xff] }
 0x1ba   :  { %v2747_v5 = vmul.f32 0.00125, %v2491_v59  ;;  %v963_v10 = vmul.f32 0.1, %v4204_v57  ;;  %v1891_v0 = vmul.f32 %v3704_v7, %v3278_v53  ;;  %v3280_v62 = vadd.f32 -1.0, %v959_v27 }
 0x1bb   :  { %3002 = vst [vmem:[#allocation5 + $0x510] sm:$0xff] %v2746_v61  ;;  %v2748_v17 = vmul.f32 0.00125, %v2492_v3  ;;  %3711 = vrcp.f32 %v1473_v43  ;;  %v2240_v63 = vmul.f32 %v703_v32, %v703_v32  ;;  %v964_v19 = vmul.f32 0.1, %v4206_v55  ;;  %v202_v61 = vld [vmem:[#allocation2 + $0x598] sm:$0xff] }
 0x1bc   :  { %3003 = vst [vmem:[#allocation5 + $0x518] sm:$0xff] %v2747_v5  ;;  %3713 = vrcp.f32 %v1474_v1  ;;  %v1475_v50 = vadd.f32 2.0, %v963_v10  ;;  %v2493_v22 = vmul.f32 %v2237_v33, %v1891_v0  ;;  %v3281_v16 = vadd.f32 -1.0, %v960_v23 }
 0x1bd   :  { %v3706_v52 = vpop.eup %3705  ;;  %3004 = vst [vmem:[#allocation5 + $0x520] sm:$0xff] %v2748_v17  ;;  %v452_v15 = vmax.f32 %v196_v6, 10.0  ;;  %v453_v2 = vmax.f32 %v197_v60, 10.0  ;;  %v2241_v26 = vmul.f32 %v704_v31, %v704_v31  ;;  %v1476_v35 = vadd.f32 2.0, %v964_v19  ;;  %v203_v6 = vld [vmem:[#allocation2 + $0x5a0] sm:$0xff] }
 0x1be   :  { %v3708_v21 = vpop.eup %3707  ;;  %v1893_v9 = vmul.f32 %v3706_v52, %v3279_v34  ;;  %3715 = vrcp.f32 %v1475_v50  ;;  %v2749_v27 = vmul.f32 0.00125, %v2493_v22  ;;  %v454_v12 = vmax.f32 %v198_v24, 10.0 }
 0x1bf   :  { %v1895_v13 = vmul.f32 %v3708_v21, %v3280_v62  ;;  %v708_v39 = vmin.f32 %v452_v15, 40.0  ;;  %v4210_v28 = vmin.f32 %v453_v2, 40.0  ;;  %3717 = vrcp.f32 %v1476_v35  ;;  %v204_v21 = vld [vmem:[#allocation2 + $0x5a8] sm:$0xff] }
 0x1c0   :  { %v2494_v36 = vmul.f32 %v2238_v47, %v1893_v9  ;;  %v455_v42 = vmax.f32 %v199_v14, 10.0  ;;  %3005 = vst [vmem:[#allocation5 + $0x528] sm:$0xff] %v2749_v27  ;;  %v2242_v11 = vmul.f32 %v705_v54, %v705_v54  ;;  %v3282_v30 = vadd.f32 -1.0, %v961_v41 }
 0x1c1   :  { %v2495_v37 = vmul.f32 %v2239_v8, %v1895_v13  ;;  %v965_v44 = vmul.f32 0.1, %v708_v39  ;;  %v966_v38 = vmul.f32 0.1, %v4210_v28  ;;  %v710_v45 = vmin.f32 %v454_v12, 40.0  ;;  %v205_v13 = vld [vmem:[#allocation2 + $0x5b0] sm:$0xff] }
 0x1c2   :  { %v3710_v32 = vpop.eup %3709  ;;  %v2750_v4 = vmul.f32 0.00125, %v2494_v36  ;;  %v4213_v18 = vmin.f32 %v455_v42, 40.0  ;;  %v3283_v20 = vadd.f32 -1.0, %v962_v25  ;;  %v3284_v40 = vadd.f32 -1.0, %v963_v10 }
 0x1c3   :  { %v2751_v46 = vmul.f32 0.00125, %v2495_v37  ;;  %v1897_v23 = vmul.f32 %v3710_v32, %v3281_v16  ;;  %v1477_v49 = vadd.f32 2.0, %v965_v44  ;;  %v2243_v33 = vmul.f32 %v4204_v57, %v4204_v57 }
 0x1c4   :  { %3006 = vst [vmem:[#allocation5 + $0x530] sm:$0xff] %v2750_v4  ;;  %v1478_v31 = vadd.f32 2.0, %v966_v38  ;;  %v967_v54 = vmul.f32 0.1, %v710_v45  ;;  %v2244_v53 = vmul.f32 %v4206_v55, %v4206_v55  ;;  %v968_v29 = vmul.f32 0.1, %v4213_v18 }
 0x1c5   :  { %v3712_v48 = vpop.eup %3711  ;;  %3007 = vst [vmem:[#allocation5 + $0x538] sm:$0xff] %v2751_v46  ;;  %v2496_v56 = vmul.f32 %v2240_v63, %v1897_v23  ;;  %3719 = vrcp.f32 %v1477_v49  ;;  %v3285_v59 = vadd.f32 -1.0, %v964_v19  ;;  %v2245_v34 = vmul.f32 %v708_v39, %v708_v39 }
 0x1c6   :  { %v3714_v47 = vpop.eup %3713  ;;  %v1899_v41 = vmul.f32 %v3712_v48, %v3282_v30  ;;  %3721 = vrcp.f32 %v1478_v31  ;;  %v1479_v25 = vadd.f32 2.0, %v967_v54  ;;  %v1480_v43 = vadd.f32 2.0, %v968_v29 }
 0x1c7   :  { %v2752_v57 = vmul.f32 0.00125, %v2496_v56  ;;  %v1901_v3 = vmul.f32 %v3714_v47, %v3283_v20  ;;  %v456_v55 = vmax.f32 %v200_v51, 10.0  ;;  %v457_v8 = vmax.f32 %v201_v58, 10.0 }
 0x1c8   :  { %v3716_v7 = vpop.eup %3715  ;;  %v2497_v5 = vmul.f32 %v2241_v26, %v1899_v41  ;;  %3723 = vrcp.f32 %v1479_v25  ;;  %v458_v60 = vmax.f32 %v202_v61, 10.0  ;;  %v459_v50 = vmax.f32 %v203_v6, 10.0 }
 0x1c9   :  { %3008 = vst [vmem:[#allocation5 + $0x540] sm:$0xff] %v2752_v57  ;;  %v2498_v1 = vmul.f32 %v2242_v11, %v1901_v3  ;;  %v1903_v10 = vmul.f32 %v3716_v7, %v3284_v40  ;;  %3725 = vrcp.f32 %v1480_v43  ;;  %v3718_v17 = vpop.eup %3717  ;;  %v712_v62 = vmin.f32 %v456_v55, 40.0  ;;  %v207_v57 = vld [vmem:[#allocation2 + $0x5c0] sm:$0xff]  ;;  %v208_v3 = vld [vmem:[#allocation2 + $0x5c8] sm:$0xff] }
 0x1ca   :  { %v2753_v0 = vmul.f32 0.00125, %v2497_v5  ;;  %v713_v63 = vmin.f32 %v457_v8, 40.0  ;;  %v1905_v22 = vmul.f32 %v3718_v17, %v3285_v59  ;;  %v714_v16 = vmin.f32 %v458_v60, 40.0  ;;  %v206_v59 = vld [vmem:[#allocation2 + $0x5b8] sm:$0xff]  ;;  %v209_v5 = vld [vmem:[#allocation2 + $0x5d0] sm:$0xff] }
 0x1cb   :  { %v2754_v19 = vmul.f32 0.00125, %v2498_v1  ;;  %v2499_v52 = vmul.f32 %v2243_v33, %v1903_v10  ;;  %v3286_v15 = vadd.f32 -1.0, %v965_v44  ;;  %v2246_v2 = vmul.f32 %v4210_v28, %v4210_v28 }
 0x1cc   :  { %3009 = vst [vmem:[#allocation5 + $0x548] sm:$0xff] %v2753_v0  ;;  %v969_v24 = vmul.f32 0.1, %v712_v62  ;;  %v970_v14 = vmul.f32 0.1, %v713_v63  ;;  %v2500_v26 = vmul.f32 %v2244_v53, %v1905_v22  ;;  %v3287_v35 = vadd.f32 -1.0, %v966_v38 }
 0x1cd   :  { %3010 = vst [vmem:[#allocation5 + $0x550] sm:$0xff] %v2754_v19  ;;  %v2755_v9 = vmul.f32 0.00125, %v2499_v52  ;;  %v971_v27 = vmul.f32 0.1, %v714_v16  ;;  %v3288_v39 = vadd.f32 -1.0, %v967_v54  ;;  %v2247_v36 = vmul.f32 %v710_v45, %v710_v45 }
 0x1ce   :  { %v1481_v12 = vadd.f32 2.0, %v969_v24  ;;  %v1482_v42 = vadd.f32 2.0, %v970_v14  ;;  %v2756_v11 = vmul.f32 0.00125, %v2500_v26  ;;  %v3289_v44 = vadd.f32 -1.0, %v968_v29  ;;  %v210_v19 = vld [vmem:[#allocation2 + $0x5d8] sm:$0xff] }
 0x1cf   :  { %v3720_v37 = vpop.eup %3719  ;;  %3011 = vst [vmem:[#allocation5 + $0x558] sm:$0xff] %v2755_v9  ;;  %v1483_v32 = vadd.f32 2.0, %v971_v27  ;;  %v715_v4 = vmin.f32 %v459_v50, 40.0  ;;  %v460_v46 = vmax.f32 %v204_v21, 10.0  ;;  %v461_v23 = vmax.f32 %v205_v13, 10.0  ;;  %v212_v13 = vld [vmem:[#allocation2 + $0x5e8] sm:$0xff] }
 0x1d0   :  { %v3722_v28 = vpop.eup %3721  ;;  %v1907_v30 = vmul.f32 %v3720_v37, %v3286_v15  ;;  %3727 = vrcp.f32 %v1481_v12  ;;  %3012 = vst [vmem:[#allocation5 + $0x560] sm:$0xff] %v2756_v11  ;;  %v2248_v38 = vmul.f32 %v4213_v18, %v4213_v18  ;;  %v2249_v53 = vmul.f32 %v712_v62, %v712_v62 }
 0x1d1   :  { %v1909_v20 = vmul.f32 %v3722_v28, %v3287_v35  ;;  %3729 = vrcp.f32 %v1482_v42  ;;  %v972_v45 = vmul.f32 0.1, %v715_v4  ;;  %v716_v33 = vmin.f32 %v460_v46, 40.0  ;;  %v211_v35 = vld [vmem:[#allocation2 + $0x5e0] sm:$0xff] }
 0x1d2   :  { %v3724_v49 = vpop.eup %3723  ;;  %v2501_v40 = vmul.f32 %v2245_v34, %v1907_v30  ;;  %3731 = vrcp.f32 %v1483_v32  ;;  %v4224_v31 = vmin.f32 %v461_v23, 40.0  ;;  %v2250_v47 = vmul.f32 %v713_v63, %v713_v63 }
 0x1d3   :  { %v3726_v54 = vpop.eup %3725  ;;  %v2502_v48 = vmul.f32 %v2246_v2, %v1909_v20  ;;  %v1911_v56 = vmul.f32 %v3724_v49, %v3288_v39  ;;  %v1484_v29 = vadd.f32 2.0, %v972_v45  ;;  %v973_v41 = vmul.f32 0.1, %v716_v33 }
 0x1d4   :  { %v2757_v51 = vmul.f32 0.00125, %v2501_v40  ;;  %v1913_v58 = vmul.f32 %v3726_v54, %v3289_v44  ;;  %v974_v61 = vmul.f32 0.1, %v4224_v31  ;;  %v3290_v43 = vadd.f32 -1.0, %v969_v24 }
 0x1d5   :  { %v2758_v25 = vmul.f32 0.00125, %v2502_v48  ;;  %v2503_v18 = vmul.f32 %v2247_v36, %v1911_v56  ;;  %3733 = vrcp.f32 %v1484_v29  ;;  %v2251_v6 = vmul.f32 %v714_v16, %v714_v16 }
 0x1d6   :  { %3013 = vst [vmem:[#allocation5 + $0x568] sm:$0xff] %v2757_v51  ;;  %v2504_v34 = vmul.f32 %v2248_v38, %v1913_v58  ;;  %v1485_v7 = vadd.f32 2.0, %v973_v41  ;;  %v3291_v8 = vadd.f32 -1.0, %v970_v14  ;;  %v1486_v1 = vadd.f32 2.0, %v974_v61 }
 0x1d7   :  { %3014 = vst [vmem:[#allocation5 + $0x570] sm:$0xff] %v2758_v25  ;;  %v2759_v55 = vmul.f32 0.00125, %v2503_v18  ;;  %v462_v10 = vmax.f32 %v206_v59, 10.0  ;;  %v463_v17 = vmax.f32 %v207_v57, 10.0  ;;  %v464_v0 = vmax.f32 %v208_v3, 10.0 }
 0x1d8   :  { %v2760_v60 = vmul.f32 0.00125, %v2504_v34  ;;  %3735 = vrcp.f32 %v1485_v7  ;;  %v3292_v62 = vadd.f32 -1.0, %v971_v27  ;;  %v465_v50 = vmax.f32 %v209_v5, 10.0 }
 0x1d9   :  { %3015 = vst [vmem:[#allocation5 + $0x578] sm:$0xff] %v2759_v55  ;;  %3737 = vrcp.f32 %v1486_v1  ;;  %v718_v63 = vmin.f32 %v462_v10, 40.0  ;;  %v3293_v22 = vadd.f32 -1.0, %v972_v45  ;;  %v2252_v16 = vmul.f32 %v715_v4, %v715_v4 }
 0x1da   :  { %v3728_v52 = vpop.eup %3727  ;;  %3016 = vst [vmem:[#allocation5 + $0x580] sm:$0xff] %v2760_v60  ;;  %v719_v15 = vmin.f32 %v463_v17, 40.0  ;;  %v4227_v2 = vmin.f32 %v464_v0, 40.0  ;;  %v3294_v21 = vadd.f32 -1.0, %v973_v41  ;;  %v2253_v9 = vmul.f32 %v716_v33, %v716_v33  ;;  %v213_v41 = vld [vmem:[#allocation2 + $0x5f0] sm:$0xff]  ;;  %v214_v60 = vld [vmem:[#allocation2 + $0x5f8] sm:$0xff] }
 0x1db   :  { %v3730_v24 = vpop.eup %3729  ;;  %v1915_v14 = vmul.f32 %v3728_v52, %v3290_v43  ;;  %v975_v26 = vmul.f32 0.1, %v718_v63  ;;  %v466_v42 = vmax.f32 %v210_v19, 10.0  ;;  %v721_v32 = vmin.f32 %v465_v50, 40.0  ;;  %v215_v17 = vld [vmem:[#allocation2 + $0x600] sm:$0xff]  ;;  %v216_v19 = vld [vmem:[#allocation2 + $0x608] sm:$0xff] }
 0x1dc   :  { %v3732_v39 = vpop.eup %3731  ;;  %v1917_v27 = vmul.f32 %v3730_v24, %v3291_v8  ;;  %v976_v36 = vmul.f32 0.1, %v719_v15  ;;  %v977_v12 = vmul.f32 0.1, %v4227_v2  ;;  %v467_v30 = vmax.f32 %v211_v35, 10.0 }
 0x1dd   :  { %v2505_v37 = vmul.f32 %v2249_v53, %v1915_v14  ;;  %v1919_v11 = vmul.f32 %v3732_v39, %v3292_v62  ;;  %v1487_v44 = vadd.f32 2.0, %v975_v26  ;;  %v468_v46 = vmax.f32 %v212_v13, 10.0 }
 0x1de   :  { %v2506_v4 = vmul.f32 %v2250_v47, %v1917_v27  ;;  %v1488_v28 = vadd.f32 2.0, %v976_v36  ;;  %v1489_v45 = vadd.f32 2.0, %v977_v12  ;;  %v3295_v33 = vadd.f32 -1.0, %v974_v61 }
 0x1df   :  { %v3734_v23 = vpop.eup %3733  ;;  %v2761_v20 = vmul.f32 0.00125, %v2505_v37  ;;  %v2507_v38 = vmul.f32 %v2251_v6, %v1919_v11  ;;  %3739 = vrcp.f32 %v1487_v44  ;;  %v2254_v48 = vmul.f32 %v4224_v31, %v4224_v31 }
 0x1e0   :  { %v2762_v49 = vmul.f32 0.00125, %v2506_v4  ;;  %v1921_v40 = vmul.f32 %v3734_v23, %v3293_v22  ;;  %3741 = vrcp.f32 %v1488_v28  ;;  %v978_v56 = vmul.f32 0.1, %v721_v32 }
 0x1e1   :  { %3017 = vst [vmem:[#allocation5 + $0x588] sm:$0xff] %v2761_v20  ;;  %v2763_v54 = vmul.f32 0.00125, %v2507_v38  ;;  %3743 = vrcp.f32 %v1489_v45  ;;  %v722_v51 = vmin.f32 %v466_v42, 40.0  ;;  %v723_v58 = vmin.f32 %v467_v30, 40.0  ;;  %v217_v42 = vld [vmem:[#allocation2 + $0x610] sm:$0xff] }
 0x1e2   :  { %v3736_v53 = vpop.eup %3735  ;;  %3018 = vst [vmem:[#allocation5 + $0x590] sm:$0xff] %v2762_v49  ;;  %v2508_v29 = vmul.f32 %v2252_v16, %v1921_v40  ;;  %v4232_v47 = vmin.f32 %v468_v46, 40.0  ;;  %v2255_v18 = vmul.f32 %v718_v63, %v718_v63  ;;  %v2256_v61 = vmul.f32 %v719_v15, %v719_v15 }
 0x1e3   :  { %v3738_v59 = vpop.eup %3737  ;;  %3019 = vst [vmem:[#allocation5 + $0x598] sm:$0xff] %v2763_v54  ;;  %v1923_v25 = vmul.f32 %v3736_v53, %v3294_v21  ;;  %v1490_v57 = vadd.f32 2.0, %v978_v56  ;;  %v3296_v43 = vadd.f32 -1.0, %v975_v26  ;;  %v979_v31 = vmul.f32 0.1, %v722_v51 }
 0x1e4   :  { %v2764_v3 = vmul.f32 0.00125, %v2508_v29  ;;  %v1925_v34 = vmul.f32 %v3738_v59, %v3295_v33  ;;  %v980_v7 = vmul.f32 0.1, %v723_v58  ;;  %v469_v5 = vmax.f32 %v213_v41, 10.0 }
 0x1e5   :  { %v2509_v6 = vmul.f32 %v2253_v9, %v1923_v25  ;;  %3745 = vrcp.f32 %v1490_v57  ;;  %v3297_v8 = vadd.f32 -1.0, %v976_v36  ;;  %v1491_v1 = vadd.f32 2.0, %v979_v31 }
 0x1e6   :  { %3020 = vst [vmem:[#allocation5 + $0x5a0] sm:$0xff] %v2764_v3  ;;  %v2510_v55 = vmul.f32 %v2254_v48, %v1925_v34  ;;  %v981_v10 = vmul.f32 0.1, %v4232_v47  ;;  %v3298_v62 = vadd.f32 -1.0, %v977_v12  ;;  %v2257_v63 = vmul.f32 %v4227_v2, %v4227_v2  ;;  %v218_v48 = vld [vmem:[#allocation2 + $0x618] sm:$0xff] }
 0x1e7   :  { %v2765_v0 = vmul.f32 0.00125, %v2509_v6  ;;  %v1492_v50 = vadd.f32 2.0, %v980_v7  ;;  %v2258_v22 = vmul.f32 %v721_v32, %v721_v32  ;;  %3747 = vrcp.f32 %v1491_v1 }
 0x1e8   :  { %v2766_v52 = vmul.f32 0.00125, %v2510_v55  ;;  %v1493_v16 = vadd.f32 2.0, %v981_v10  ;;  %v725_v24 = vmin.f32 %v469_v5, 40.0  ;;  %v470_v14 = vmax.f32 %v214_v60, 10.0 }
 0x1e9   :  { %v3740_v15 = vpop.eup %3739  ;;  %3021 = vst [vmem:[#allocation5 + $0x5a8] sm:$0xff] %v2765_v0  ;;  %3749 = vrcp.f32 %v1492_v50  ;;  %v471_v21 = vmax.f32 %v215_v17, 10.0  ;;  %v3299_v35 = vadd.f32 -1.0, %v978_v56  ;;  %v472_v13 = vmax.f32 %v216_v19, 10.0  ;;  %v220_v19 = vld [vmem:[#allocation2 + $0x628] sm:$0xff] }
 0x1ea   :  { %v3742_v9 = vpop.eup %3741  ;;  %3022 = vst [vmem:[#allocation5 + $0x5b0] sm:$0xff] %v2766_v52  ;;  %v1927_v26 = vmul.f32 %v3740_v15, %v3296_v43  ;;  %3751 = vrcp.f32 %v1493_v16  ;;  %v2259_v27 = vmul.f32 %v722_v51, %v722_v51  ;;  %v982_v36 = vmul.f32 0.1, %v725_v24 }
 0x1eb   :  { %v3744_v39 = vpop.eup %3743  ;;  %v1929_v2 = vmul.f32 %v3742_v9, %v3297_v8  ;;  %v726_v12 = vmin.f32 %v470_v14, 40.0  ;;  %v2260_v44 = vmul.f32 %v723_v58, %v723_v58  ;;  %v4237_v32 = vmin.f32 %v471_v21, 40.0  ;;  %v219_v58 = vld [vmem:[#allocation2 + $0x620] sm:$0xff] }
 0x1ec   :  { %v2511_v37 = vmul.f32 %v2255_v18, %v1927_v26  ;;  %v1931_v11 = vmul.f32 %v3744_v39, %v3298_v62  ;;  %v1494_v28 = vadd.f32 2.0, %v982_v36  ;;  %v4239_v46 = vmin.f32 %v472_v13, 40.0  ;;  %v222_v26 = vld [vmem:[#allocation2 + $0x638] sm:$0xff] }
 0x1ed   :  { %v2512_v4 = vmul.f32 %v2256_v61, %v1929_v2  ;;  %v983_v30 = vmul.f32 0.1, %v726_v12  ;;  %v984_v38 = vmul.f32 0.1, %v4237_v32  ;;  %v473_v45 = vmax.f32 %v217_v42, 10.0 }
 0x1ee   :  { %v2767_v23 = vmul.f32 0.00125, %v2511_v37  ;;  %v2513_v20 = vmul.f32 %v2257_v63, %v1931_v11  ;;  %v3300_v33 = vadd.f32 -1.0, %v979_v31  ;;  %3753 = vrcp.f32 %v1494_v28 }
 0x1ef   :  { %v3746_v49 = vpop.eup %3745  ;;  %v2768_v40 = vmul.f32 0.00125, %v2512_v4  ;;  %v1495_v54 = vadd.f32 2.0, %v983_v30  ;;  %v3301_v29 = vadd.f32 -1.0, %v980_v7  ;;  %v1496_v51 = vadd.f32 2.0, %v984_v38 }
 0x1f0   :  { %3023 = vst [vmem:[#allocation5 + $0x5b8] sm:$0xff] %v2767_v23  ;;  %v2769_v56 = vmul.f32 0.00125, %v2513_v20  ;;  %v1933_v53 = vmul.f32 %v3746_v49, %v3299_v35  ;;  %v3302_v41 = vadd.f32 -1.0, %v981_v10  ;;  %v2261_v59 = vmul.f32 %v4232_v47, %v4232_v47 }
 0x1f1   :  { %3024 = vst [vmem:[#allocation5 + $0x5c0] sm:$0xff] %v2768_v40  ;;  %3755 = vrcp.f32 %v1495_v54  ;;  %v985_v25 = vmul.f32 0.1, %v4239_v46  ;;  %v3748_v18 = vpop.eup %3747  ;;  %v729_v57 = vmin.f32 %v473_v45, 40.0  ;;  %v474_v3 = vmax.f32 %v218_v48, 10.0 }
 0x1f2   :  { %3025 = vst [vmem:[#allocation5 + $0x5c8] sm:$0xff] %v2769_v56  ;;  %v2514_v61 = vmul.f32 %v2258_v22, %v1933_v53  ;;  %3757 = vrcp.f32 %v1496_v51  ;;  %v1935_v43 = vmul.f32 %v3748_v18, %v3300_v33  ;;  %v2262_v31 = vmul.f32 %v725_v24, %v725_v24  ;;  %v221_v24 = vld [vmem:[#allocation2 + $0x630] sm:$0xff] }
 0x1f3   :  { %v3750_v34 = vpop.eup %3749  ;;  %v1497_v6 = vadd.f32 2.0, %v985_v25  ;;  %v475_v7 = vmax.f32 %v219_v58, 10.0  ;;  %v3303_v1 = vadd.f32 -1.0, %v982_v36  ;;  %v986_v10 = vmul.f32 0.1, %v729_v57 }
 0x1f4   :  { %v3752_v5 = vpop.eup %3751  ;;  %v2770_v55 = vmul.f32 0.00125, %v2514_v61  ;;  %v1937_v8 = vmul.f32 %v3750_v34, %v3301_v29  ;;  %v2515_v47 = vmul.f32 %v2259_v27, %v1935_v43  ;;  %v730_v17 = vmin.f32 %v474_v3, 40.0  ;;  %v224_v3 = vld [vmem:[#allocation2 + $0x648] sm:$0xff] }
 0x1f5   :  { %v1939_v60 = vmul.f32 %v3752_v5, %v3302_v41  ;;  %3759 = vrcp.f32 %v1497_v6  ;;  %v2263_v62 = vmul.f32 %v726_v12, %v726_v12  ;;  %v1498_v63 = vadd.f32 2.0, %v986_v10  ;;  %v226_v6 = vld [vmem:[#allocation2 + $0x658] sm:$0xff] }
 0x1f6   :  { %3026 = vst [vmem:[#allocation5 + $0x5d0] sm:$0xff] %v2770_v55  ;;  %v2516_v0 = vmul.f32 %v2260_v44, %v1937_v8  ;;  %v4245_v50 = vmin.f32 %v475_v7, 40.0  ;;  %v2771_v52 = vmul.f32 0.00125, %v2515_v47  ;;  %v3304_v16 = vadd.f32 -1.0, %v983_v30  ;;  %v223_v30 = vld [vmem:[#allocation2 + $0x640] sm:$0xff] }
 0x1f7   :  { %v2517_v22 = vmul.f32 %v2261_v59, %v1939_v60  ;;  %v987_v15 = vmul.f32 0.1, %v730_v17  ;;  %v3305_v21 = vadd.f32 -1.0, %v984_v38  ;;  %3761 = vrcp.f32 %v1498_v63 }
 0x1f8   :  { %v2772_v14 = vmul.f32 0.00125, %v2516_v0  ;;  %v988_v9 = vmul.f32 0.1, %v4245_v50  ;;  %v3754_v35 = vpop.eup %3753  ;;  %3027 = vst [vmem:[#allocation5 + $0x5d8] sm:$0xff] %v2771_v52  ;;  %v2264_v39 = vmul.f32 %v4237_v32, %v4237_v32  ;;  %v476_v27 = vmax.f32 %v220_v19, 10.0 }
 0x1f9   :  { %v2773_v13 = vmul.f32 0.00125, %v2517_v22  ;;  %v1499_v2 = vadd.f32 2.0, %v987_v15  ;;  %v1941_v36 = vmul.f32 %v3754_v35, %v3303_v1  ;;  %v2265_v12 = vmul.f32 %v4239_v46, %v4239_v46 }
 0x1fa   :  { %3028 = vst [vmem:[#allocation5 + $0x5e0] sm:$0xff] %v2772_v14  ;;  %v1500_v42 = vadd.f32 2.0, %v988_v9  ;;  %v477_v37 = vmax.f32 %v221_v24, 10.0  ;;  %v3306_v44 = vadd.f32 -1.0, %v985_v25  ;;  %v732_v4 = vmin.f32 %v476_v27, 40.0 }
 0x1fb   :  { %v3756_v11 = vpop.eup %3755  ;;  %3029 = vst [vmem:[#allocation5 + $0x5e8] sm:$0xff] %v2773_v13  ;;  %3763 = vrcp.f32 %v1499_v2  ;;  %v478_v28 = vmax.f32 %v222_v26, 10.0  ;;  %v2518_v20 = vmul.f32 %v2262_v31, %v1941_v36  ;;  %v2266_v49 = vmul.f32 %v729_v57, %v729_v57  ;;  %v225_v57 = vld [vmem:[#allocation2 + $0x650] sm:$0xff] }
 0x1fc   :  { %v3758_v23 = vpop.eup %3757  ;;  %v1943_v38 = vmul.f32 %v3756_v11, %v3304_v16  ;;  %3765 = vrcp.f32 %v1500_v42  ;;  %v733_v32 = vmin.f32 %v477_v37, 40.0  ;;  %v989_v40 = vmul.f32 0.1, %v732_v4 }
 0x1fd   :  { %v1945_v45 = vmul.f32 %v3758_v23, %v3305_v21  ;;  %v4252_v33 = vmin.f32 %v478_v28, 40.0  ;;  %v2774_v46 = vmul.f32 0.00125, %v2518_v20  ;;  %v479_v56 = vmax.f32 %v223_v30, 10.0  ;;  %v229_v20 = vld [vmem:[#allocation2 + $0x670] sm:$0xff] }
 0x1fe   :  { %v2519_v54 = vmul.f32 %v2263_v62, %v1943_v38  ;;  %v990_v48 = vmul.f32 0.1, %v733_v32  ;;  %v3307_v51 = vadd.f32 -1.0, %v986_v10  ;;  %v1501_v58 = vadd.f32 2.0, %v989_v40  ;;  %v230_v38 = vld [vmem:[#allocation2 + $0x678] sm:$0xff] }
 0x1ff   :  { %v3760_v53 = vpop.eup %3759  ;;  %v2520_v29 = vmul.f32 %v2264_v39, %v1945_v45  ;;  %v991_v41 = vmul.f32 0.1, %v4252_v33  ;;  %3030 = vst [vmem:[#allocation5 + $0x5f0] sm:$0xff] %v2774_v46  ;;  %v2267_v18 = vmul.f32 %v730_v17, %v730_v17  ;;  %v3308_v43 = vadd.f32 -1.0, %v987_v15  ;;  %v227_v15 = vld [vmem:[#allocation2 + $0x660] sm:$0xff] }
 0x200   :  { %v2775_v59 = vmul.f32 0.00125, %v2519_v54  ;;  %v1947_v25 = vmul.f32 %v3760_v53, %v3306_v44  ;;  %v1502_v61 = vadd.f32 2.0, %v990_v48  ;;  %3767 = vrcp.f32 %v1501_v58  ;;  %v228_v44 = vld [vmem:[#allocation2 + $0x668] sm:$0xff] }
 0x201   :  { %v2776_v34 = vmul.f32 0.00125, %v2520_v29  ;;  %v1503_v31 = vadd.f32 2.0, %v991_v41  ;;  %v3762_v7 = vpop.eup %3761  ;;  %v3309_v55 = vadd.f32 -1.0, %v988_v9  ;;  %v735_v8 = vmin.f32 %v479_v56, 40.0 }
 0x202   :  { %3031 = vst [vmem:[#allocation5 + $0x5f8] sm:$0xff] %v2775_v59  ;;  %v2521_v5 = vmul.f32 %v2265_v12, %v1947_v25  ;;  %3769 = vrcp.f32 %v1502_v61  ;;  %v1949_v1 = vmul.f32 %v3762_v7, %v3307_v51  ;;  %v480_v10 = vmax.f32 %v224_v3, 10.0  ;;  %v231_v7 = vld [vmem:[#allocation2 + $0x680] sm:$0xff] }
 0x203   :  { %3032 = vst [vmem:[#allocation5 + $0x600] sm:$0xff] %v2776_v34  ;;  %3771 = vrcp.f32 %v1503_v31  ;;  %v481_v47 = vmax.f32 %v225_v57, 10.0  ;;  %v2268_v17 = vmul.f32 %v4245_v50, %v4245_v50  ;;  %v992_v0 = vmul.f32 0.1, %v735_v8 }
 0x204   :  { %v2777_v60 = vmul.f32 0.00125, %v2521_v5  ;;  %v482_v62 = vmax.f32 %v226_v6, 10.0  ;;  %v2522_v19 = vmul.f32 %v2266_v49, %v1949_v1  ;;  %v2269_v52 = vmul.f32 %v732_v4, %v732_v4 }
 0x205   :  { %v3764_v63 = vpop.eup %3763  ;;  %v736_v22 = vmin.f32 %v480_v10, 40.0  ;;  %v737_v16 = vmin.f32 %v481_v47, 40.0  ;;  %v2270_v21 = vmul.f32 %v733_v32, %v733_v32  ;;  %v1504_v9 = vadd.f32 2.0, %v992_v0 }
 0x206   :  { %v3766_v24 = vpop.eup %3765  ;;  %3033 = vst [vmem:[#allocation5 + $0x608] sm:$0xff] %v2777_v60  ;;  %v1951_v14 = vmul.f32 %v3764_v63, %v3308_v43  ;;  %v4257_v26 = vmin.f32 %v482_v62, 40.0  ;;  %v2778_v35 = vmul.f32 0.00125, %v2522_v19  ;;  %v3310_v39 = vadd.f32 -1.0, %v989_v40 }
 0x207   :  { %v1953_v13 = vmul.f32 %v3766_v24, %v3309_v55  ;;  %v993_v2 = vmul.f32 0.1, %v736_v22  ;;  %3773 = vrcp.f32 %v1504_v9  ;;  %v994_v27 = vmul.f32 0.1, %v737_v16 }
 0x208   :  { %v2523_v50 = vmul.f32 %v2267_v18, %v1951_v14  ;;  %v483_v36 = vmax.f32 %v227_v15, 10.0  ;;  %3034 = vst [vmem:[#allocation5 + $0x610] sm:$0xff] %v2778_v35  ;;  %v3311_v42 = vadd.f32 -1.0, %v990_v48  ;;  %v995_v11 = vmul.f32 0.1, %v4257_v26  ;;  %v234_v15 = vld [vmem:[#allocation2 + $0x698] sm:$0xff] }
 0x209   :  { %v2524_v12 = vmul.f32 %v2268_v17, %v1953_v13  ;;  %v1505_v37 = vadd.f32 2.0, %v993_v2  ;;  %v3312_v28 = vadd.f32 -1.0, %v991_v41  ;;  %v2271_v30 = vmul.f32 %v4252_v33, %v4252_v33 }
 0x20a   :  { %v2779_v4 = vmul.f32 0.00125, %v2523_v50  ;;  %v1506_v23 = vadd.f32 2.0, %v994_v27  ;;  %v3768_v32 = vpop.eup %3767  ;;  %v2272_v49 = vmul.f32 %v735_v8, %v735_v8  ;;  %v1507_v40 = vadd.f32 2.0, %v995_v11 }
 0x20b   :  { %v2780_v45 = vmul.f32 0.00125, %v2524_v12  ;;  %3775 = vrcp.f32 %v1505_v37  ;;  %v1955_v54 = vmul.f32 %v3768_v32, %v3310_v39  ;;  %v739_v48 = vmin.f32 %v483_v36, 40.0 }
 0x20c   :  { %v3770_v46 = vpop.eup %3769  ;;  %3035 = vst [vmem:[#allocation5 + $0x618] sm:$0xff] %v2779_v4  ;;  %3777 = vrcp.f32 %v1506_v23  ;;  %v484_v56 = vmax.f32 %v228_v44, 10.0  ;;  %v485_v51 = vmax.f32 %v229_v20, 10.0  ;;  %v486_v33 = vmax.f32 %v230_v38, 10.0 }
 0x20d   :  { %v3772_v53 = vpop.eup %3771  ;;  %3036 = vst [vmem:[#allocation5 + $0x620] sm:$0xff] %v2780_v45  ;;  %v1957_v29 = vmul.f32 %v3770_v46, %v3311_v42  ;;  %3779 = vrcp.f32 %v1507_v40  ;;  %v2525_v58 = vmul.f32 %v2269_v52, %v1955_v54  ;;  %v3313_v59 = vadd.f32 -1.0, %v992_v0  ;;  %v232_v0 = vld [vmem:[#allocation2 + $0x688] sm:$0xff]  ;;  %v235_v46 = vld [vmem:[#allocation2 + $0x6a0] sm:$0xff] }
 0x20e   :  { %v1959_v41 = vmul.f32 %v3772_v53, %v3312_v28  ;;  %v996_v25 = vmul.f32 0.1, %v739_v48  ;;  %v740_v61 = vmin.f32 %v484_v56, 40.0  ;;  %v741_v3 = vmin.f32 %v485_v51, 40.0 }
 0x20f   :  { %v2526_v18 = vmul.f32 %v2270_v21, %v1957_v29  ;;  %v4262_v57 = vmin.f32 %v486_v33, 40.0  ;;  %v2781_v34 = vmul.f32 0.00125, %v2525_v58  ;;  %v2273_v31 = vmul.f32 %v736_v22, %v736_v22  ;;  %v233_v22 = vld [vmem:[#allocation2 + $0x690] sm:$0xff]  ;;  %v236_v29 = vld [vmem:[#allocation2 + $0x6a8] sm:$0xff] }
 0x210   :  { %v2527_v43 = vmul.f32 %v2271_v30, %v1959_v41  ;;  %v1508_v6 = vadd.f32 2.0, %v996_v25  ;;  %v2274_v55 = vmul.f32 %v737_v16, %v737_v16  ;;  %v997_v8 = vmul.f32 0.1, %v740_v61 }
 0x211   :  { %v2782_v5 = vmul.f32 0.00125, %v2526_v18  ;;  %v998_v1 = vmul.f32 0.1, %v741_v3  ;;  %v3774_v10 = vpop.eup %3773  ;;  %3037 = vst [vmem:[#allocation5 + $0x628] sm:$0xff] %v2781_v34  ;;  %v3314_v60 = vadd.f32 -1.0, %v993_v2  ;;  %v2275_v19 = vmul.f32 %v4257_v26, %v4257_v26 }
 0x212   :  { %v2783_v47 = vmul.f32 0.00125, %v2527_v43  ;;  %3781 = vrcp.f32 %v1508_v6  ;;  %v999_v17 = vmul.f32 0.1, %v4262_v57  ;;  %v1961_v62 = vmul.f32 %v3774_v10, %v3313_v59 }
 0x213   :  { %3038 = vst [vmem:[#allocation5 + $0x630] sm:$0xff] %v2782_v5  ;;  %v3315_v63 = vadd.f32 -1.0, %v994_v27  ;;  %v1509_v52 = vadd.f32 2.0, %v997_v8  ;;  %v3316_v16 = vadd.f32 -1.0, %v995_v11  ;;  %v2276_v24 = vmul.f32 %v739_v48, %v739_v48 }
 0x214   :  { %3039 = vst [vmem:[#allocation5 + $0x638] sm:$0xff] %v2783_v47  ;;  %v1510_v14 = vadd.f32 2.0, %v998_v1  ;;  %v1511_v21 = vadd.f32 2.0, %v999_v17  ;;  %v2528_v35 = vmul.f32 %v2272_v49, %v1961_v62  ;;  %v487_v13 = vmax.f32 %v231_v7, 10.0 }
 0x215   :  { %v3776_v9 = vpop.eup %3775  ;;  %3783 = vrcp.f32 %v1509_v52  ;;  %v488_v39 = vmax.f32 %v232_v0, 10.0  ;;  %v489_v27 = vmax.f32 %v233_v22, 10.0  ;;  %v490_v36 = vmax.f32 %v234_v15, 10.0 }
 0x216   :  { %v3778_v2 = vpop.eup %3777  ;;  %v1963_v50 = vmul.f32 %v3776_v9, %v3314_v60  ;;  %3785 = vrcp.f32 %v1510_v14  ;;  %v2784_v26 = vmul.f32 0.00125, %v2528_v35  ;;  %v743_v37 = vmin.f32 %v487_v13, 40.0 }
 0x217   :  { %v3780_v12 = vpop.eup %3779  ;;  %v1965_v42 = vmul.f32 %v3778_v2, %v3315_v63  ;;  %3787 = vrcp.f32 %v1511_v21  ;;  %v744_v4 = vmin.f32 %v488_v39, 40.0  ;;  %v4267_v28 = vmin.f32 %v489_v27, 40.0  ;;  %v238_v21 = vld [vmem:[#allocation2 + $0x6b8] sm:$0xff]  ;;  %v239_v2 = vld [vmem:[#allocation2 + $0x6c0] sm:$0xff] }
 0x218   :  { %v2529_v44 = vmul.f32 %v2273_v31, %v1963_v50  ;;  %v1967_v11 = vmul.f32 %v3780_v12, %v3316_v16  ;;  %3040 = vst [vmem:[#allocation5 + $0x640] sm:$0xff] %v2784_v26  ;;  %v3317_v23 = vadd.f32 -1.0, %v996_v25  ;;  %v2277_v20 = vmul.f32 %v740_v61, %v740_v61  ;;  %v237_v25 = vld [vmem:[#allocation2 + $0x6b0] sm:$0xff]  ;;  %v240_v26 = vld [vmem:[#allocation2 + $0x6c8] sm:$0xff] }
 0x219   :  { %v2530_v30 = vmul.f32 %v2274_v55, %v1965_v42  ;;  %v1000_v38 = vmul.f32 0.1, %v743_v37  ;;  %v1001_v49 = vmul.f32 0.1, %v744_v4  ;;  %v4269_v40 = vmin.f32 %v490_v36, 40.0 }
 0x21a   :  { %v2785_v32 = vmul.f32 0.00125, %v2529_v44  ;;  %v2531_v45 = vmul.f32 %v2275_v19, %v1967_v11  ;;  %v2278_v48 = vmul.f32 %v741_v3, %v741_v3  ;;  %v1002_v53 = vmul.f32 0.1, %v4267_v28 }
 0x21b   :  { %v2786_v54 = vmul.f32 0.00125, %v2530_v30  ;;  %v1512_v56 = vadd.f32 2.0, %v1000_v38  ;;  %v3318_v58 = vadd.f32 -1.0, %v997_v8  ;;  %v3319_v41 = vadd.f32 -1.0, %v998_v1 }
 0x21c   :  { %v3782_v51 = vpop.eup %3781  ;;  %3041 = vst [vmem:[#allocation5 + $0x648] sm:$0xff] %v2785_v32  ;;  %v2787_v33 = vmul.f32 0.00125, %v2531_v45  ;;  %v1513_v59 = vadd.f32 2.0, %v1001_v49  ;;  %v3320_v61 = vadd.f32 -1.0, %v999_v17  ;;  %v1514_v34 = vadd.f32 2.0, %v1002_v53 }
 0x21d   :  { %3042 = vst [vmem:[#allocation5 + $0x650] sm:$0xff] %v2786_v54  ;;  %v1969_v18 = vmul.f32 %v3782_v51, %v3317_v23  ;;  %3789 = vrcp.f32 %v1512_v56  ;;  %v2279_v3 = vmul.f32 %v4262_v57, %v4262_v57  ;;  %v1003_v43 = vmul.f32 0.1, %v4269_v40 }
 0x21e   :  { %3043 = vst [vmem:[#allocation5 + $0x658] sm:$0xff] %v2787_v33  ;;  %3791 = vrcp.f32 %v1513_v59  ;;  %v491_v31 = vmax.f32 %v235_v46, 10.0  ;;  %v492_v5 = vmax.f32 %v236_v29, 10.0  ;;  %v493_v55 = vmax.f32 %v237_v25, 10.0  ;;  %v242_v46 = vld [vmem:[#allocation2 + $0x6d8] sm:$0xff] }
 0x21f   :  { %v3784_v6 = vpop.eup %3783  ;;  %v2532_v7 = vmul.f32 %v2276_v24, %v1969_v18  ;;  %3793 = vrcp.f32 %v1514_v34  ;;  %v2280_v10 = vmul.f32 %v743_v37, %v743_v37  ;;  %v1515_v47 = vadd.f32 2.0, %v1003_v43 }
 0x220   :  { %v3786_v8 = vpop.eup %3785  ;;  %v1971_v1 = vmul.f32 %v3784_v6, %v3318_v58  ;;  %v747_v60 = vmin.f32 %v491_v31, 40.0  ;;  %v748_v63 = vmin.f32 %v492_v5, 40.0  ;;  %v4275_v19 = vmin.f32 %v493_v55, 40.0  ;;  %v243_v55 = vld [vmem:[#allocation2 + $0x6e0] sm:$0xff] }
 0x221   :  { %v3788_v17 = vpop.eup %3787  ;;  %v2788_v0 = vmul.f32 0.00125, %v2532_v7  ;;  %v1973_v62 = vmul.f32 %v3786_v8, %v3319_v41  ;;  %3795 = vrcp.f32 %v1515_v47  ;;  %v3321_v16 = vadd.f32 -1.0, %v1000_v38 }
 0x222   :  { %v2533_v57 = vmul.f32 %v2277_v20, %v1971_v1  ;;  %v1975_v52 = vmul.f32 %v3788_v17, %v3320_v61  ;;  %v1004_v22 = vmul.f32 0.1, %v747_v60  ;;  %v2281_v24 = vmul.f32 %v744_v4, %v744_v4  ;;  %v241_v20 = vld [vmem:[#allocation2 + $0x6d0] sm:$0xff] }
 0x223   :  { %3044 = vst [vmem:[#allocation5 + $0x660] sm:$0xff] %v2788_v0  ;;  %v2534_v15 = vmul.f32 %v2278_v48, %v1973_v62  ;;  %v1005_v14 = vmul.f32 0.1, %v748_v63  ;;  %v3322_v13 = vadd.f32 -1.0, %v1001_v49  ;;  %v2282_v27 = vmul.f32 %v4267_v28, %v4267_v28  ;;  %v244_v0 = vld [vmem:[#allocation2 + $0x6e8] sm:$0xff] }
 0x224   :  { %v2789_v9 = vmul.f32 0.00125, %v2533_v57  ;;  %v2535_v35 = vmul.f32 %v2279_v3, %v1975_v52  ;;  %v1516_v39 = vadd.f32 2.0, %v1004_v22  ;;  %v1006_v12 = vmul.f32 0.1, %v4275_v19 }
 0x225   :  { %v2790_v50 = vmul.f32 0.00125, %v2534_v15  ;;  %v1517_v36 = vadd.f32 2.0, %v1005_v14  ;;  %v3323_v37 = vadd.f32 -1.0, %v1002_v53  ;;  %v494_v44 = vmax.f32 %v238_v21, 10.0 }
 0x226   :  { %3045 = vst [vmem:[#allocation5 + $0x668] sm:$0xff] %v2789_v9  ;;  %v2791_v42 = vmul.f32 0.00125, %v2535_v35  ;;  %3797 = vrcp.f32 %v1516_v39  ;;  %v2283_v4 = vmul.f32 %v4269_v40, %v4269_v40  ;;  %v1518_v30 = vadd.f32 2.0, %v1006_v12 }
 0x227   :  { %v3790_v11 = vpop.eup %3789  ;;  %3046 = vst [vmem:[#allocation5 + $0x670] sm:$0xff] %v2790_v50  ;;  %3799 = vrcp.f32 %v1517_v36  ;;  %v495_v23 = vmax.f32 %v239_v2, 10.0  ;;  %v3324_v32 = vadd.f32 -1.0, %v1003_v43  ;;  %v750_v45 = vmin.f32 %v494_v44, 40.0  ;;  %v246_v44 = vld [vmem:[#allocation2 + $0x6f8] sm:$0xff] }
 0x228   :  { %v3792_v38 = vpop.eup %3791  ;;  %3047 = vst [vmem:[#allocation5 + $0x678] sm:$0xff] %v2791_v42  ;;  %v1977_v28 = vmul.f32 %v3790_v11, %v3321_v16  ;;  %v496_v49 = vmax.f32 %v240_v26, 10.0  ;;  %v2284_v56 = vmul.f32 %v747_v60, %v747_v60  ;;  %3801 = vrcp.f32 %v1518_v30 }
 0x229   :  { %v3794_v54 = vpop.eup %3793  ;;  %v1979_v48 = vmul.f32 %v3792_v38, %v3322_v13  ;;  %v751_v53 = vmin.f32 %v495_v23, 40.0  ;;  %v1007_v33 = vmul.f32 0.1, %v750_v45  ;;  %v497_v40 = vmax.f32 %v241_v20, 10.0  ;;  %v247_v23 = vld [vmem:[#allocation2 + $0x700] sm:$0xff] }
 0x22a   :  { %v2536_v29 = vmul.f32 %v2280_v10, %v1977_v28  ;;  %v1981_v51 = vmul.f32 %v3794_v54, %v3323_v37  ;;  %v752_v59 = vmin.f32 %v496_v49, 40.0  ;;  %v498_v25 = vmax.f32 %v242_v46, 10.0  ;;  %v245_v37 = vld [vmem:[#allocation2 + $0x6f0] sm:$0xff] }
 0x22b   :  { %v2537_v58 = vmul.f32 %v2281_v24, %v1979_v48  ;;  %v1008_v41 = vmul.f32 0.1, %v751_v53  ;;  %v3796_v18 = vpop.eup %3795  ;;  %v2285_v3 = vmul.f32 %v748_v63, %v748_v63  ;;  %v1519_v43 = vadd.f32 2.0, %v1007_v33 }
 0x22c   :  { %v2792_v61 = vmul.f32 0.00125, %v2536_v29  ;;  %v2538_v34 = vmul.f32 %v2282_v27, %v1981_v51  ;;  %v1983_v6 = vmul.f32 %v3796_v18, %v3324_v32  ;;  %v3325_v7 = vadd.f32 -1.0, %v1004_v22 }
 0x22d   :  { %v2793_v31 = vmul.f32 0.00125, %v2537_v58  ;;  %v1520_v5 = vadd.f32 2.0, %v1008_v41  ;;  %v3326_v1 = vadd.f32 -1.0, %v1005_v14  ;;  %3803 = vrcp.f32 %v1519_v43 }
 0x22e   :  { %3048 = vst [vmem:[#allocation5 + $0x680] sm:$0xff] %v2792_v61  ;;  %v2794_v8 = vmul.f32 0.00125, %v2538_v34  ;;  %v1009_v10 = vmul.f32 0.1, %v752_v59  ;;  %v2539_v47 = vmul.f32 %v2283_v4, %v1983_v6  ;;  %v753_v60 = vmin.f32 %v497_v40, 40.0 }
 0x22f   :  { %3049 = vst [vmem:[#allocation5 + $0x688] sm:$0xff] %v2793_v31  ;;  %3805 = vrcp.f32 %v1520_v5  ;;  %v754_v17 = vmin.f32 %v498_v25, 40.0  ;;  %v3327_v63 = vadd.f32 -1.0, %v1006_v12  ;;  %v2286_v57 = vmul.f32 %v4275_v19, %v4275_v19 }
 0x230   :  { %v3798_v62 = vpop.eup %3797  ;;  %3050 = vst [vmem:[#allocation5 + $0x690] sm:$0xff] %v2794_v8  ;;  %v1521_v52 = vadd.f32 2.0, %v1009_v10  ;;  %v499_v22 = vmax.f32 %v243_v55, 10.0  ;;  %v2795_v16 = vmul.f32 0.00125, %v2539_v47  ;;  %v2287_v14 = vmul.f32 %v750_v45, %v750_v45  ;;  %v248_v47 = vld [vmem:[#allocation2 + $0x708] sm:$0xff] }
 0x231   :  { %v3800_v15 = vpop.eup %3799  ;;  %v1985_v24 = vmul.f32 %v3798_v62, %v3325_v7  ;;  %v1010_v21 = vmul.f32 0.1, %v753_v60  ;;  %v1011_v35 = vmul.f32 0.1, %v754_v17  ;;  %v500_v13 = vmax.f32 %v244_v0, 10.0 }
 0x232   :  { %v1987_v9 = vmul.f32 %v3800_v15, %v3326_v1  ;;  %3807 = vrcp.f32 %v1521_v52  ;;  %v3802_v39 = vpop.eup %3801  ;;  %3051 = vst [vmem:[#allocation5 + $0x698] sm:$0xff] %v2795_v16  ;;  %v2288_v50 = vmul.f32 %v751_v53, %v751_v53  ;;  %v755_v36 = vmin.f32 %v499_v22, 40.0 }
 0x233   :  { %v2540_v2 = vmul.f32 %v2284_v56, %v1985_v24  ;;  %v1522_v27 = vadd.f32 2.0, %v1010_v21  ;;  %v1989_v26 = vmul.f32 %v3802_v39, %v3327_v63  ;;  %v3328_v19 = vadd.f32 -1.0, %v1007_v33 }
 0x234   :  { %v2541_v12 = vmul.f32 %v2285_v3, %v1987_v9  ;;  %v1523_v42 = vadd.f32 2.0, %v1011_v35  ;;  %v3329_v4 = vadd.f32 -1.0, %v1008_v41  ;;  %v1012_v30 = vmul.f32 0.1, %v755_v36 }
 0x235   :  { %v2796_v11 = vmul.f32 0.00125, %v2540_v2  ;;  %3809 = vrcp.f32 %v1522_v27  ;;  %v2542_v38 = vmul.f32 %v2286_v57, %v1989_v26  ;;  %v756_v28 = vmin.f32 %v500_v13, 40.0  ;;  %v252_v13 = vld [vmem:[#allocation2 + $0x728] sm:$0xff]  ;;  %v253_v27 = vld [vmem:[#allocation2 + $0x730] sm:$0xff] }
 0x236   :  { %v2797_v20 = vmul.f32 0.00125, %v2541_v12  ;;  %3811 = vrcp.f32 %v1523_v42  ;;  %v2289_v32 = vmul.f32 %v752_v59, %v752_v59  ;;  %v1524_v45 = vadd.f32 2.0, %v1012_v30 }
 0x237   :  { %3052 = vst [vmem:[#allocation5 + $0x6a0] sm:$0xff] %v2796_v11  ;;  %v501_v49 = vmax.f32 %v245_v37, 10.0  ;;  %v502_v46 = vmax.f32 %v246_v44, 10.0  ;;  %v3804_v54 = vpop.eup %3803  ;;  %v2798_v48 = vmul.f32 0.00125, %v2542_v38  ;;  %v3330_v56 = vadd.f32 -1.0, %v1009_v10 }
 0x238   :  { %3053 = vst [vmem:[#allocation5 + $0x6a8] sm:$0xff] %v2797_v20  ;;  %v1013_v53 = vmul.f32 0.1, %v756_v28  ;;  %v503_v29 = vmax.f32 %v247_v23, 10.0  ;;  %v1991_v33 = vmul.f32 %v3804_v54, %v3328_v19  ;;  %3813 = vrcp.f32 %v1524_v45 }
 0x239   :  { %v3806_v51 = vpop.eup %3805  ;;  %v757_v40 = vmin.f32 %v501_v49, 40.0  ;;  %v4284_v58 = vmin.f32 %v502_v46, 40.0  ;;  %3054 = vst [vmem:[#allocation5 + $0x6b0] sm:$0xff] %v2798_v48  ;;  %v2290_v25 = vmul.f32 %v753_v60, %v753_v60  ;;  %v2291_v34 = vmul.f32 %v754_v17, %v754_v17  ;;  %v249_v60 = vld [vmem:[#allocation2 + $0x710] sm:$0xff]  ;;  %v250_v17 = vld [vmem:[#allocation2 + $0x718] sm:$0xff] }
 0x23a   :  { %v1993_v41 = vmul.f32 %v3806_v51, %v3329_v4  ;;  %v1525_v18 = vadd.f32 2.0, %v1013_v53  ;;  %v4286_v59 = vmin.f32 %v503_v29, 40.0  ;;  %v2543_v61 = vmul.f32 %v2287_v14, %v1991_v33 }
 0x23b   :  { %v1014_v3 = vmul.f32 0.1, %v757_v40  ;;  %v1015_v43 = vmul.f32 0.1, %v4284_v58  ;;  %v3331_v7 = vadd.f32 -1.0, %v1010_v21  ;;  %v3332_v1 = vadd.f32 -1.0, %v1011_v35 }
 0x23c   :  { %v3808_v31 = vpop.eup %3807  ;;  %v2544_v6 = vmul.f32 %v2288_v50, %v1993_v41  ;;  %3815 = vrcp.f32 %v1525_v18  ;;  %v1016_v5 = vmul.f32 0.1, %v4286_v59  ;;  %v2799_v55 = vmul.f32 0.00125, %v2543_v61  ;;  %v251_v35 = vld [vmem:[#allocation2 + $0x720] sm:$0xff] }
 0x23d   :  { %v1995_v8 = vmul.f32 %v3808_v31, %v3330_v56  ;;  %v1526_v10 = vadd.f32 2.0, %v1014_v3  ;;  %v3333_v62 = vadd.f32 -1.0, %v1012_v30  ;;  %v2292_v63 = vmul.f32 %v755_v36, %v755_v36 }
 0x23e   :  { %v2800_v0 = vmul.f32 0.00125, %v2544_v6  ;;  %v1527_v57 = vadd.f32 2.0, %v1015_v43  ;;  %3055 = vst [vmem:[#allocation5 + $0x6b8] sm:$0xff] %v2799_v55  ;;  %v2293_v15 = vmul.f32 %v756_v28, %v756_v28  ;;  %v1528_v16 = vadd.f32 2.0, %v1016_v5 }
 0x23f   :  { %v3810_v52 = vpop.eup %3809  ;;  %v2545_v22 = vmul.f32 %v2289_v32, %v1995_v8  ;;  %3817 = vrcp.f32 %v1526_v10  ;;  %v504_v21 = vmax.f32 %v248_v47, 10.0  ;;  %v505_v9 = vmax.f32 %v249_v60, 10.0 }
 0x240   :  { %v3812_v24 = vpop.eup %3811  ;;  %3056 = vst [vmem:[#allocation5 + $0x6c0] sm:$0xff] %v2800_v0  ;;  %v1997_v14 = vmul.f32 %v3810_v52, %v3331_v7  ;;  %3819 = vrcp.f32 %v1527_v57  ;;  %v506_v50 = vmax.f32 %v250_v17, 10.0  ;;  %v3334_v12 = vadd.f32 -1.0, %v1013_v53 }
 0x241   :  { %v2801_v39 = vmul.f32 0.00125, %v2545_v22  ;;  %v1999_v2 = vmul.f32 %v3812_v24, %v3332_v1  ;;  %3821 = vrcp.f32 %v1528_v16  ;;  %v760_v26 = vmin.f32 %v504_v21, 40.0  ;;  %v257_v21 = vld [vmem:[#allocation2 + $0x750] sm:$0xff] }
 0x242   :  { %v2546_v36 = vmul.f32 %v2290_v25, %v1997_v14  ;;  %v761_v19 = vmin.f32 %v505_v9, 40.0  ;;  %v3814_v42 = vpop.eup %3813  ;;  %v762_v44 = vmin.f32 %v506_v50, 40.0  ;;  %v507_v11 = vmax.f32 %v251_v35, 10.0 }
 0x243   :  { %3057 = vst [vmem:[#allocation5 + $0x6c8] sm:$0xff] %v2801_v39  ;;  %v2547_v37 = vmul.f32 %v2291_v34, %v1999_v2  ;;  %v508_v4 = vmax.f32 %v252_v13, 10.0  ;;  %v2001_v23 = vmul.f32 %v3814_v42, %v3333_v62  ;;  %v1017_v20 = vmul.f32 0.1, %v760_v26  ;;  %v258_v39 = vld [vmem:[#allocation2 + $0x758] sm:$0xff]  ;;  %v259_v42 = vld [vmem:[#allocation2 + $0x760] sm:$0xff] }
 0x244   :  { %v2802_v30 = vmul.f32 0.00125, %v2546_v36  ;;  %v509_v38 = vmax.f32 %v253_v27, 10.0  ;;  %v2294_v32 = vmul.f32 %v757_v40, %v757_v40  ;;  %v1018_v45 = vmul.f32 0.1, %v761_v19 }
 0x245   :  { %v2803_v28 = vmul.f32 0.00125, %v2547_v37  ;;  %v1019_v49 = vmul.f32 0.1, %v762_v44  ;;  %v2548_v54 = vmul.f32 %v2292_v63, %v2001_v23  ;;  %v3335_v48 = vadd.f32 -1.0, %v1014_v3  ;;  %v254_v63 = vld [vmem:[#allocation2 + $0x738] sm:$0xff] }
 0x246   :  { %v3816_v46 = vpop.eup %3815  ;;  %3058 = vst [vmem:[#allocation5 + $0x6d0] sm:$0xff] %v2802_v30  ;;  %v2295_v56 = vmul.f32 %v4284_v58, %v4284_v58  ;;  %v1529_v53 = vadd.f32 2.0, %v1017_v20  ;;  %v3336_v51 = vadd.f32 -1.0, %v1015_v43  ;;  %v3337_v33 = vadd.f32 -1.0, %v1016_v5 }
 0x247   :  { %3059 = vst [vmem:[#allocation5 + $0x6d8] sm:$0xff] %v2803_v28  ;;  %v2003_v29 = vmul.f32 %v3816_v46, %v3334_v12  ;;  %v1530_v41 = vadd.f32 2.0, %v1018_v45  ;;  %v2804_v25 = vmul.f32 0.00125, %v2548_v54  ;;  %v1531_v18 = vadd.f32 2.0, %v1019_v49 }
 0x248   :  { %3823 = vrcp.f32 %v1529_v53  ;;  %v763_v61 = vmin.f32 %v507_v11, 40.0  ;;  %v764_v31 = vmin.f32 %v508_v4, 40.0  ;;  %v4292_v6 = vmin.f32 %v509_v38, 40.0 }
 0x249   :  { %v3818_v40 = vpop.eup %3817  ;;  %v2549_v34 = vmul.f32 %v2293_v15, %v2003_v29  ;;  %3825 = vrcp.f32 %v1530_v41  ;;  %3060 = vst [vmem:[#allocation5 + $0x6e0] sm:$0xff] %v2804_v25  ;;  %v2296_v58 = vmul.f32 %v4286_v59, %v4286_v59  ;;  %v2297_v1 = vmul.f32 %v760_v26, %v760_v26  ;;  %v255_v15 = vld [vmem:[#allocation2 + $0x740] sm:$0xff]  ;;  %v256_v59 = vld [vmem:[#allocation2 + $0x748] sm:$0xff] }
 0x24a   :  { %v3820_v3 = vpop.eup %3819  ;;  %v2005_v7 = vmul.f32 %v3818_v40, %v3335_v48  ;;  %3827 = vrcp.f32 %v1531_v18  ;;  %v1020_v43 = vmul.f32 0.1, %v763_v61  ;;  %v1021_v10 = vmul.f32 0.1, %v764_v31 }
 0x24b   :  { %v3822_v5 = vpop.eup %3821  ;;  %v2805_v55 = vmul.f32 0.00125, %v2549_v34  ;;  %v2007_v8 = vmul.f32 %v3820_v3, %v3336_v51  ;;  %v2298_v0 = vmul.f32 %v761_v19, %v761_v19  ;;  %v3338_v17 = vadd.f32 -1.0, %v1017_v20  ;;  %v260_v3 = vld [vmem:[#allocation2 + $0x768] sm:$0xff] }
 0x24c   :  { %v2550_v47 = vmul.f32 %v2294_v32, %v2005_v7  ;;  %v2009_v60 = vmul.f32 %v3822_v5, %v3337_v33  ;;  %v1532_v62 = vadd.f32 2.0, %v1020_v43  ;;  %v1533_v52 = vadd.f32 2.0, %v1021_v10 }
 0x24d   :  { %3061 = vst [vmem:[#allocation5 + $0x6e8] sm:$0xff] %v2805_v55  ;;  %v2551_v57 = vmul.f32 %v2295_v56, %v2007_v8  ;;  %v1022_v22 = vmul.f32 0.1, %v4292_v6  ;;  %v2299_v14 = vmul.f32 %v762_v44, %v762_v44  ;;  %v3339_v35 = vadd.f32 -1.0, %v1018_v45 }
 0x24e   :  { %v2806_v16 = vmul.f32 0.00125, %v2550_v47  ;;  %v2552_v24 = vmul.f32 %v2296_v58, %v2009_v60  ;;  %3829 = vrcp.f32 %v1532_v62  ;;  %v510_v50 = vmax.f32 %v254_v63, 10.0 }
 0x24f   :  { %v2807_v9 = vmul.f32 0.00125, %v2551_v57  ;;  %3831 = vrcp.f32 %v1533_v52  ;;  %v1534_v13 = vadd.f32 2.0, %v1022_v22  ;;  %v511_v27 = vmax.f32 %v255_v15, 10.0 }
 0x250   :  { %3062 = vst [vmem:[#allocation5 + $0x6f0] sm:$0xff] %v2806_v16  ;;  %v2808_v2 = vmul.f32 0.00125, %v2552_v24  ;;  %v512_v36 = vmax.f32 %v256_v59, 10.0  ;;  %v3340_v12 = vadd.f32 -1.0, %v1019_v49  ;;  %v2300_v26 = vmul.f32 %v763_v61, %v763_v61  ;;  %v261_v59 = vld [vmem:[#allocation2 + $0x770] sm:$0xff] }
 0x251   :  { %3063 = vst [vmem:[#allocation5 + $0x6f8] sm:$0xff] %v2807_v9  ;;  %3833 = vrcp.f32 %v1534_v13  ;;  %v513_v19 = vmax.f32 %v257_v21, 10.0  ;;  %v766_v44 = vmin.f32 %v510_v50, 40.0  ;;  %v767_v11 = vmin.f32 %v511_v27, 40.0  ;;  %v262_v16 = vld [vmem:[#allocation2 + $0x778] sm:$0xff]  ;;  %v263_v9 = vld [vmem:[#allocation2 + $0x780] sm:$0xff] }
 0x252   :  { %v3824_v37 = vpop.eup %3823  ;;  %3064 = vst [vmem:[#allocation5 + $0x700] sm:$0xff] %v2808_v2  ;;  %v4297_v4 = vmin.f32 %v512_v36, 40.0  ;;  %v514_v30 = vmax.f32 %v258_v39, 10.0  ;;  %v3341_v38 = vadd.f32 -1.0, %v1020_v43  ;;  %v3342_v28 = vadd.f32 -1.0, %v1021_v10 }
 0x253   :  { %v3826_v23 = vpop.eup %3825  ;;  %v2011_v20 = vmul.f32 %v3824_v37, %v3338_v17  ;;  %v2301_v32 = vmul.f32 %v764_v31, %v764_v31  ;;  %v1023_v54 = vmul.f32 0.1, %v766_v44  ;;  %v1024_v49 = vmul.f32 0.1, %v767_v11 }
 0x254   :  { %v3828_v45 = vpop.eup %3827  ;;  %v2013_v46 = vmul.f32 %v3826_v23, %v3339_v35  ;;  %v515_v48 = vmax.f32 %v259_v42, 10.0  ;;  %v1025_v29 = vmul.f32 0.1, %v4297_v4  ;;  %v769_v51 = vmin.f32 %v513_v19, 40.0 }
 0x255   :  { %v2553_v56 = vmul.f32 %v2297_v1, %v2011_v20  ;;  %v2015_v53 = vmul.f32 %v3828_v45, %v3340_v12  ;;  %v2302_v41 = vmul.f32 %v4292_v6, %v4292_v6  ;;  %v1535_v25 = vadd.f32 2.0, %v1023_v54 }
 0x256   :  { %v2554_v33 = vmul.f32 %v2298_v0, %v2013_v46  ;;  %v4302_v18 = vmin.f32 %v514_v30, 40.0  ;;  %v3343_v34 = vadd.f32 -1.0, %v1022_v22  ;;  %v1536_v31 = vadd.f32 2.0, %v1024_v49 }
 0x257   :  { %v2809_v61 = vmul.f32 0.00125, %v2553_v56  ;;  %v2555_v40 = vmul.f32 %v2299_v14, %v2015_v53  ;;  %3835 = vrcp.f32 %v1535_v25  ;;  %v1537_v43 = vadd.f32 2.0, %v1025_v29 }
 0x258   :  { %v3830_v7 = vpop.eup %3829  ;;  %v2810_v58 = vmul.f32 0.00125, %v2554_v33  ;;  %v4304_v5 = vmin.f32 %v515_v48, 40.0  ;;  %3837 = vrcp.f32 %v1536_v31  ;;  %v1026_v6 = vmul.f32 0.1, %v769_v51  ;;  %v265_v48 = vld [vmem:[#allocation2 + $0x790] sm:$0xff] }
 0x259   :  { %v3832_v55 = vpop.eup %3831  ;;  %3065 = vst [vmem:[#allocation5 + $0x708] sm:$0xff] %v2809_v61  ;;  %v2811_v8 = vmul.f32 0.00125, %v2555_v40  ;;  %v2017_v1 = vmul.f32 %v3830_v7, %v3341_v38  ;;  %3839 = vrcp.f32 %v1537_v43  ;;  %v1027_v47 = vmul.f32 0.1, %v4302_v18 }
 0x25a   :  { %3066 = vst [vmem:[#allocation5 + $0x710] sm:$0xff] %v2810_v58  ;;  %v2019_v10 = vmul.f32 %v3832_v55, %v3342_v28  ;;  %v516_v60 = vmax.f32 %v260_v3, 10.0  ;;  %v2303_v63 = vmul.f32 %v766_v44, %v766_v44  ;;  %v1538_v57 = vadd.f32 2.0, %v1026_v6  ;;  %v266_v55 = vld [vmem:[#allocation2 + $0x798] sm:$0xff] }
 0x25b   :  { %v3834_v0 = vpop.eup %3833  ;;  %3067 = vst [vmem:[#allocation5 + $0x718] sm:$0xff] %v2811_v8  ;;  %v2556_v62 = vmul.f32 %v2300_v26, %v2017_v1  ;;  %v2304_v22 = vmul.f32 %v767_v11, %v767_v11  ;;  %v1539_v15 = vadd.f32 2.0, %v1027_v47  ;;  %v3344_v14 = vadd.f32 -1.0, %v1023_v54  ;;  %v267_v8 = vld [vmem:[#allocation2 + $0x7a0] sm:$0xff] }
 0x25c   :  { %v2557_v17 = vmul.f32 %v2301_v32, %v2019_v10  ;;  %v2021_v52 = vmul.f32 %v3834_v0, %v3343_v34  ;;  %3841 = vrcp.f32 %v1538_v57  ;;  %v1028_v21 = vmul.f32 0.1, %v4304_v5  ;;  %v264_v32 = vld [vmem:[#allocation2 + $0x788] sm:$0xff] }
 0x25d   :  { %v2812_v24 = vmul.f32 0.00125, %v2556_v62  ;;  %3843 = vrcp.f32 %v1539_v15  ;;  %v4308_v39 = vmin.f32 %v516_v60, 40.0  ;;  %v3345_v2 = vadd.f32 -1.0, %v1024_v49 }
 0x25e   :  { %v2813_v35 = vmul.f32 0.00125, %v2557_v17  ;;  %v2558_v13 = vmul.f32 %v2302_v41, %v2021_v52  ;;  %v1540_v50 = vadd.f32 2.0, %v1028_v21  ;;  %v517_v27 = vmax.f32 %v261_v59, 10.0  ;;  %v268_v52 = vld [vmem:[#allocation2 + $0x7a8] sm:$0xff] }
 0x25f   :  { %3068 = vst [vmem:[#allocation5 + $0x720] sm:$0xff] %v2812_v24  ;;  %v518_v36 = vmax.f32 %v262_v16, 10.0  ;;  %v3346_v26 = vadd.f32 -1.0, %v1025_v29  ;;  %v1029_v19 = vmul.f32 0.1, %v4308_v39  ;;  %v519_v42 = vmax.f32 %v263_v9, 10.0 }
 0x260   :  { %3069 = vst [vmem:[#allocation5 + $0x728] sm:$0xff] %v2813_v35  ;;  %v2814_v12 = vmul.f32 0.00125, %v2558_v13  ;;  %v2305_v37 = vmul.f32 %v4297_v4, %v4297_v4  ;;  %3845 = vrcp.f32 %v1540_v50  ;;  %v773_v44 = vmin.f32 %v517_v27, 40.0 }
 0x261   :  { %v4313_v11 = vmin.f32 %v518_v36, 40.0  ;;  %v3836_v30 = vpop.eup %3835  ;;  %v3347_v23 = vadd.f32 -1.0, %v1026_v6  ;;  %v2306_v20 = vmul.f32 %v769_v51, %v769_v51  ;;  %v1541_v38 = vadd.f32 2.0, %v1029_v19 }
 0x262   :  { %3070 = vst [vmem:[#allocation5 + $0x730] sm:$0xff] %v2814_v12  ;;  %v4315_v28 = vmin.f32 %v519_v42, 40.0  ;;  %v3838_v45 = vpop.eup %3837  ;;  %v2023_v46 = vmul.f32 %v3836_v30, %v3344_v14  ;;  %v2307_v54 = vmul.f32 %v4302_v18, %v4302_v18  ;;  %v1030_v49 = vmul.f32 0.1, %v773_v44  ;;  %v269_v30 = vld [vmem:[#allocation2 + $0x7b0] sm:$0xff] }
 0x263   :  { %v1031_v4 = vmul.f32 0.1, %v4313_v11  ;;  %v3840_v56 = vpop.eup %3839  ;;  %v2025_v53 = vmul.f32 %v3838_v45, %v3345_v2  ;;  %v3348_v29 = vadd.f32 -1.0, %v1027_v47  ;;  %3847 = vrcp.f32 %v1541_v38 }
 0x264   :  { %v1032_v33 = vmul.f32 0.1, %v4315_v28  ;;  %v2559_v51 = vmul.f32 %v2303_v63, %v2023_v46  ;;  %v2027_v41 = vmul.f32 %v3840_v56, %v3346_v26  ;;  %v1542_v25 = vadd.f32 2.0, %v1030_v49 }
 0x265   :  { %v520_v61 = vmax.f32 %v264_v32, 10.0  ;;  %v2560_v40 = vmul.f32 %v2304_v22, %v2025_v53  ;;  %v2308_v34 = vmul.f32 %v4304_v5, %v4304_v5  ;;  %v1543_v31 = vadd.f32 2.0, %v1031_v4 }
 0x266   :  { %v521_v18 = vmax.f32 %v265_v48, 10.0  ;;  %v3842_v3 = vpop.eup %3841  ;;  %v2815_v7 = vmul.f32 0.00125, %v2559_v51  ;;  %v2561_v58 = vmul.f32 %v2305_v37, %v2027_v41  ;;  %3849 = vrcp.f32 %v1542_v25 }
 0x267   :  { %v1544_v43 = vadd.f32 2.0, %v1032_v33  ;;  %v3844_v1 = vpop.eup %3843  ;;  %v2816_v6 = vmul.f32 0.00125, %v2560_v40  ;;  %v2029_v10 = vmul.f32 %v3842_v3, %v3347_v23  ;;  %v3349_v47 = vadd.f32 -1.0, %v1028_v21  ;;  %v271_v40 = vld [vmem:[#allocation2 + $0x7c0] sm:$0xff] }
 0x268   :  { %3851 = vrcp.f32 %v1543_v31  ;;  %3071 = vst [vmem:[#allocation5 + $0x738] sm:$0xff] %v2815_v7  ;;  %v2817_v60 = vmul.f32 0.00125, %v2561_v58  ;;  %v2031_v0 = vmul.f32 %v3844_v1, %v3348_v29  ;;  %v776_v62 = vmin.f32 %v520_v61, 40.0  ;;  %v270_v61 = vld [vmem:[#allocation2 + $0x7b8] sm:$0xff] }
 0x269   :  { %3853 = vrcp.f32 %v1544_v43  ;;  %3072 = vst [vmem:[#allocation5 + $0x740] sm:$0xff] %v2816_v6  ;;  %v2562_v5 = vmul.f32 %v2306_v20, %v2029_v10  ;;  %v4323_v63 = vmin.f32 %v521_v18, 40.0  ;;  %v522_v57 = vmax.f32 %v266_v55, 10.0 }
 0x26a   :  { %v523_v17 = vmax.f32 %v267_v8, 10.0  ;;  %v3846_v22 = vpop.eup %3845  ;;  %3073 = vst [vmem:[#allocation5 + $0x748] sm:$0xff] %v2817_v60  ;;  %v2563_v15 = vmul.f32 %v2307_v54, %v2031_v0  ;;  %v3350_v59 = vadd.f32 -1.0, %v1029_v19  ;;  %v2309_v16 = vmul.f32 %v4308_v39, %v4308_v39  ;;  %v273_v60 = vld [vmem:[#allocation2 + $0x7d0] sm:$0xff] }
 0x26b   :  { %v1033_v24 = vmul.f32 0.1, %v776_v62  ;;  %v2818_v14 = vmul.f32 0.00125, %v2562_v5  ;;  %v2033_v21 = vmul.f32 %v3846_v22, %v3349_v47  ;;  %v2310_v9 = vmul.f32 %v773_v44, %v773_v44 }
 0x26c   :  { %v1034_v35 = vmul.f32 0.1, %v4323_v63  ;;  %v2819_v13 = vmul.f32 0.00125, %v2563_v15  ;;  %v4328_v50 = vmin.f32 %v522_v57, 40.0  ;;  %v524_v27 = vmax.f32 %v268_v52, 10.0 }
 0x26d   :  { %v1545_v2 = vadd.f32 2.0, %v1033_v24  ;;  %v3848_v36 = vpop.eup %3847  ;;  %3074 = vst [vmem:[#allocation5 + $0x750] sm:$0xff] %v2818_v14  ;;  %v2564_v12 = vmul.f32 %v2308_v34, %v2033_v21  ;;  %v3351_v26 = vadd.f32 -1.0, %v1030_v49  ;;  %v4330_v19 = vmin.f32 %v523_v17, 40.0 }
 0x26e   :  { %v1546_v42 = vadd.f32 2.0, %v1034_v35  ;;  %3075 = vst [vmem:[#allocation5 + $0x758] sm:$0xff] %v2819_v13  ;;  %v2035_v39 = vmul.f32 %v3848_v36, %v3350_v59  ;;  %v3352_v37 = vadd.f32 -1.0, %v1031_v4  ;;  %v1035_v44 = vmul.f32 0.1, %v4328_v50 }
 0x26f   :  { %3855 = vrcp.f32 %v1545_v2  ;;  %v2820_v23 = vmul.f32 0.00125, %v2564_v12  ;;  %v3353_v20 = vadd.f32 -1.0, %v1032_v33  ;;  %v1036_v38 = vmul.f32 0.1, %v4330_v19 }
 0x270   :  { %3857 = vrcp.f32 %v1546_v42  ;;  %v3850_v32 = vpop.eup %3849  ;;  %v2565_v45 = vmul.f32 %v2309_v16, %v2035_v39  ;;  %v2311_v46 = vmul.f32 %v4313_v11, %v4313_v11  ;;  %v1547_v54 = vadd.f32 2.0, %v1035_v44 }
 0x271   :  { %v4336_v49 = vmin.f32 %v524_v27, 40.0  ;;  %3076 = vst [vmem:[#allocation5 + $0x760] sm:$0xff] %v2820_v23  ;;  %v2037_v4 = vmul.f32 %v3850_v32, %v3351_v26  ;;  %v2312_v56 = vmul.f32 %v4315_v28, %v4315_v28  ;;  %v1548_v53 = vadd.f32 2.0, %v1036_v38  ;;  %v272_v28 = vld [vmem:[#allocation2 + $0x7c8] sm:$0xff]  ;;  %v275_v32 = vld [vmem:[#allocation2 + $0x7e0] sm:$0xff] }
 0x272   :  { %v3852_v48 = vpop.eup %3851  ;;  %v525_v29 = vmax.f32 %v269_v30, 10.0  ;;  %v2821_v51 = vmul.f32 0.00125, %v2565_v45  ;;  %3859 = vrcp.f32 %v1547_v54  ;;  %v2313_v31 = vmul.f32 %v776_v62, %v776_v62  ;;  %v276_v45 = vld [vmem:[#allocation2 + $0x7e8] sm:$0xff] }
 0x273   :  { %v3854_v33 = vpop.eup %3853  ;;  %v2039_v41 = vmul.f32 %v3852_v48, %v3352_v37  ;;  %v1037_v25 = vmul.f32 0.1, %v4336_v49  ;;  %v2566_v11 = vmul.f32 %v2310_v9, %v2037_v4  ;;  %3861 = vrcp.f32 %v1548_v53 }
 0x274   :  { %v2041_v34 = vmul.f32 %v3854_v33, %v3353_v20  ;;  %3077 = vst [vmem:[#allocation5 + $0x768] sm:$0xff] %v2821_v51  ;;  %v3354_v3 = vadd.f32 -1.0, %v1033_v24  ;;  %v4341_v58 = vmin.f32 %v525_v29, 40.0  ;;  %v526_v8 = vmax.f32 %v270_v61, 10.0 }
 0x275   :  { %v2567_v18 = vmul.f32 %v2311_v46, %v2039_v41  ;;  %v1549_v7 = vadd.f32 2.0, %v1037_v25  ;;  %v2822_v43 = vmul.f32 0.00125, %v2566_v11  ;;  %v527_v1 = vmax.f32 %v271_v40, 10.0 }
 0x276   :  { %v2568_v55 = vmul.f32 %v2312_v56, %v2041_v34  ;;  %v3355_v10 = vadd.f32 -1.0, %v1034_v35  ;;  %v1038_v47 = vmul.f32 0.1, %v4341_v58  ;;  %v4344_v62 = vmin.f32 %v526_v8, 40.0  ;;  %v274_v35 = vld [vmem:[#allocation2 + $0x7d8] sm:$0xff] }
 0x277   :  { %v2823_v6 = vmul.f32 0.00125, %v2567_v18  ;;  %3863 = vrcp.f32 %v1549_v7  ;;  %3078 = vst [vmem:[#allocation5 + $0x770] sm:$0xff] %v2822_v43  ;;  %v4346_v5 = vmin.f32 %v527_v1, 40.0  ;;  %v528_v57 = vmax.f32 %v272_v28, 10.0  ;;  %v278_v34 = vld [vmem:[#allocation2 + $0x7f8] sm:$0xff] }
 0x278   :  { %v2824_v0 = vmul.f32 0.00125, %v2568_v55  ;;  %v2314_v52 = vmul.f32 %v4323_v63, %v4323_v63  ;;  %v3356_v22 = vadd.f32 -1.0, %v1035_v44  ;;  %v2315_v15 = vmul.f32 %v4328_v50, %v4328_v50 }
 0x279   :  { %v3856_v17 = vpop.eup %3855  ;;  %3079 = vst [vmem:[#allocation5 + $0x778] sm:$0xff] %v2823_v6  ;;  %v1550_v59 = vadd.f32 2.0, %v1038_v47  ;;  %v1039_v14 = vmul.f32 0.1, %v4344_v62  ;;  %v1040_v21 = vmul.f32 0.1, %v4346_v5  ;;  %v2316_v36 = vmul.f32 %v4330_v19, %v4330_v19 }
 0x27a   :  { %v3858_v16 = vpop.eup %3857  ;;  %3080 = vst [vmem:[#allocation5 + $0x780] sm:$0xff] %v2824_v0  ;;  %v2043_v24 = vmul.f32 %v3856_v17, %v3354_v3  ;;  %v529_v9 = vmax.f32 %v273_v60, 10.0  ;;  %v3357_v2 = vadd.f32 -1.0, %v1036_v38  ;;  %v4354_v27 = vmin.f32 %v528_v57, 40.0 }
 0x27b   :  { %v2045_v13 = vmul.f32 %v3858_v16, %v3355_v10  ;;  %3865 = vrcp.f32 %v1550_v59  ;;  %v3358_v50 = vadd.f32 -1.0, %v1037_v25  ;;  %v1551_v12 = vadd.f32 2.0, %v1039_v14  ;;  %v277_v25 = vld [vmem:[#allocation2 + $0x7f0] sm:$0xff] }
 0x27c   :  { %v2569_v63 = vmul.f32 %v2313_v31, %v2043_v24  ;;  %v3860_v26 = vpop.eup %3859  ;;  %v1552_v39 = vadd.f32 2.0, %v1040_v21  ;;  %v1041_v37 = vmul.f32 0.1, %v4354_v27  ;;  %v530_v44 = vmax.f32 %v274_v35, 10.0 }
 0x27d   :  { %v2570_v42 = vmul.f32 %v2314_v52, %v2045_v13  ;;  %v3862_v30 = vpop.eup %3861  ;;  %v2047_v20 = vmul.f32 %v3860_v26, %v3356_v22  ;;  %3867 = vrcp.f32 %v1551_v12  ;;  %v4359_v38 = vmin.f32 %v529_v9, 40.0 }
 0x27e   :  { %v2825_v23 = vmul.f32 0.00125, %v2569_v63  ;;  %v2049_v54 = vmul.f32 %v3862_v30, %v3357_v2  ;;  %3869 = vrcp.f32 %v1552_v39  ;;  %v2317_v48 = vmul.f32 %v4336_v49, %v4336_v49 }
 0x27f   :  { %v2826_v46 = vmul.f32 0.00125, %v2570_v42  ;;  %v2571_v19 = vmul.f32 %v2315_v15, %v2047_v20  ;;  %v1553_v4 = vadd.f32 2.0, %v1041_v37  ;;  %v1042_v56 = vmul.f32 0.1, %v4359_v38 }
 0x280   :  { %3081 = vst [vmem:[#allocation5 + $0x788] sm:$0xff] %v2825_v23  ;;  %v2572_v29 = vmul.f32 %v2316_v36, %v2049_v54  ;;  %v4364_v33 = vmin.f32 %v530_v44, 40.0  ;;  %v531_v51 = vmax.f32 %v275_v32, 10.0  ;;  %v532_v41 = vmax.f32 %v276_v45, 10.0 }
 0x281   :  { %v3864_v53 = vpop.eup %3863  ;;  %3082 = vst [vmem:[#allocation5 + $0x790] sm:$0xff] %v2826_v46  ;;  %v2827_v61 = vmul.f32 0.00125, %v2571_v19  ;;  %v3359_v11 = vadd.f32 -1.0, %v1038_v47  ;;  %3871 = vrcp.f32 %v1553_v4  ;;  %v2318_v49 = vmul.f32 %v4341_v58, %v4341_v58 }
 0x282   :  { %v2051_v40 = vmul.f32 %v3864_v53, %v3358_v50  ;;  %v2828_v31 = vmul.f32 0.00125, %v2572_v29  ;;  %v1554_v18 = vadd.f32 2.0, %v1042_v56  ;;  %v1043_v3 = vmul.f32 0.1, %v4364_v33 }
 0x283   :  { %3083 = vst [vmem:[#allocation5 + $0x798] sm:$0xff] %v2827_v61  ;;  %v787_v28 = vmin.f32 %v531_v51, 40.0  ;;  %v4369_v43 = vmin.f32 %v532_v41, 40.0  ;;  %v533_v55 = vmax.f32 %v277_v25, 10.0  ;;  %v3360_v1 = vadd.f32 -1.0, %v1039_v14 }
 0x284   :  { %v2573_v7 = vmul.f32 %v2317_v48, %v2051_v40  ;;  %3084 = vst [vmem:[#allocation5 + $0x7a0] sm:$0xff] %v2828_v31  ;;  %3873 = vrcp.f32 %v1554_v18  ;;  %v1555_v6 = vadd.f32 2.0, %v1043_v3  ;;  %v534_v10 = vmax.f32 %v278_v34, 10.0 }
 0x285   :  { %v3866_v8 = vpop.eup %3865  ;;  %v3361_v0 = vadd.f32 -1.0, %v1040_v21  ;;  %v1044_v57 = vmul.f32 0.1, %v787_v28  ;;  %v2319_v58 = vmul.f32 %v4344_v62, %v4344_v62  ;;  %v1045_v17 = vmul.f32 0.1, %v4369_v43 }
 0x286   :  { %v2829_v47 = vmul.f32 0.00125, %v2573_v7  ;;  %v2053_v60 = vmul.f32 %v3866_v8, %v3359_v11  ;;  %3875 = vrcp.f32 %v1555_v6  ;;  %v789_v52 = vmin.f32 %v533_v55, 40.0 }
 0x287   :  { %v3868_v22 = vpop.eup %3867  ;;  %v2320_v59 = vmul.f32 %v4346_v5, %v4346_v5  ;;  %v1556_v16 = vadd.f32 2.0, %v1044_v57  ;;  %v790_v24 = vmin.f32 %v534_v10, 40.0  ;;  %v3362_v35 = vadd.f32 -1.0, %v1041_v37 }
 0x288   :  { %3085 = vst [vmem:[#allocation5 + $0x7a8] sm:$0xff] %v2829_v47  ;;  %v2574_v15 = vmul.f32 %v2318_v49, %v2053_v60  ;;  %v3870_v14 = vpop.eup %3869  ;;  %v2055_v9 = vmul.f32 %v3868_v22, %v3360_v1  ;;  %v1557_v21 = vadd.f32 2.0, %v1045_v17  ;;  %v1046_v13 = vmul.f32 0.1, %v789_v52 }
 0x289   :  { %v2057_v63 = vmul.f32 %v3870_v14, %v3361_v0  ;;  %3877 = vrcp.f32 %v1556_v16  ;;  %v2321_v36 = vmul.f32 %v4354_v27, %v4354_v27  ;;  %v3363_v5 = vadd.f32 -1.0, %v1042_v56 }
 0x28a   :  { %v2830_v2 = vmul.f32 0.00125, %v2574_v15  ;;  %v2575_v62 = vmul.f32 %v2319_v58, %v2055_v9  ;;  %3879 = vrcp.f32 %v1557_v21  ;;  %v1558_v50 = vadd.f32 2.0, %v1046_v13 }
 0x28b   :  { %v3872_v12 = vpop.eup %3871  ;;  %v2576_v26 = vmul.f32 %v2320_v59, %v2057_v63  ;;  %v1047_v42 = vmul.f32 0.1, %v790_v24  ;;  %v2322_v30 = vmul.f32 %v4359_v38, %v4359_v38  ;;  %v3364_v23 = vadd.f32 -1.0, %v1043_v3 }
 0x28c   :  { %3086 = vst [vmem:[#allocation5 + $0x7b0] sm:$0xff] %v2830_v2  ;;  %v2831_v39 = vmul.f32 0.00125, %v2575_v62  ;;  %v2059_v44 = vmul.f32 %v3872_v12, %v3362_v35  ;;  %3881 = vrcp.f32 %v1558_v50  ;;  %v2323_v46 = vmul.f32 %v4364_v33, %v4364_v33 }
 0x28d   :  { %v2832_v37 = vmul.f32 0.00125, %v2576_v26  ;;  %v1559_v20 = vadd.f32 2.0, %v1047_v42  ;;  %v3365_v48 = vadd.f32 -1.0, %v1044_v57  ;;  %v3366_v53 = vadd.f32 -1.0, %v1045_v17 }
 0x28e   :  { %v3874_v32 = vpop.eup %3873  ;;  %3087 = vst [vmem:[#allocation5 + $0x7b8] sm:$0xff] %v2831_v39  ;;  %v2577_v45 = vmul.f32 %v2321_v36, %v2059_v44  ;;  %v2324_v29 = vmul.f32 %v787_v28, %v787_v28  ;;  %v2325_v25 = vmul.f32 %v4369_v43, %v4369_v43  ;;  %v3367_v61 = vadd.f32 -1.0, %v1046_v13 }
 0x28f   :  { %3088 = vst [vmem:[#allocation5 + $0x7c0] sm:$0xff] %v2832_v37  ;;  %v2061_v27 = vmul.f32 %v3874_v32, %v3363_v5  ;;  %3883 = vrcp.f32 %v1559_v20  ;;  %v2326_v31 = vmul.f32 %v789_v52, %v789_v52  ;;  %v3368_v3 = vadd.f32 -1.0, %v1047_v42 }
 0x290   :  { %v3876_v54 = vpop.eup %3875  ;;  %v2833_v19 = vmul.f32 0.00125, %v2577_v45  ;;  %v2327_v8 = vmul.f32 %v790_v24, %v790_v24 }
 0x291   :  { %v2578_v4 = vmul.f32 %v2322_v30, %v2061_v27  ;;  %v2063_v56 = vmul.f32 %v3876_v54, %v3364_v23 }
 0x292   :  { %3089 = vst [vmem:[#allocation5 + $0x7c8] sm:$0xff] %v2833_v19 }
 0x293   :  { %v3878_v38 = vpop.eup %3877  ;;  %v2834_v51 = vmul.f32 0.00125, %v2578_v4  ;;  %v2579_v41 = vmul.f32 %v2323_v46, %v2063_v56 }
 0x294   :  { %v3880_v40 = vpop.eup %3879  ;;  %v2065_v11 = vmul.f32 %v3878_v38, %v3365_v48 }
 0x295   :  { %3090 = vst [vmem:[#allocation5 + $0x7d0] sm:$0xff] %v2834_v51  ;;  %v2835_v33 = vmul.f32 0.00125, %v2579_v41  ;;  %v2067_v34 = vmul.f32 %v3880_v40, %v3366_v53 }
 0x296   :  { %v3882_v49 = vpop.eup %3881  ;;  %v2580_v18 = vmul.f32 %v2324_v29, %v2065_v11 }
 0x297   :  { %3091 = vst [vmem:[#allocation5 + $0x7d8] sm:$0xff] %v2835_v33  ;;  %v2581_v7 = vmul.f32 %v2325_v25, %v2067_v34  ;;  %v2069_v55 = vmul.f32 %v3882_v49, %v3367_v61 }
 0x298   :  { %v2836_v28 = vmul.f32 0.00125, %v2580_v18 }
 0x299   :  { %v3884_v1 = vpop.eup %3883  ;;  %v2837_v6 = vmul.f32 0.00125, %v2581_v7  ;;  %v2582_v10 = vmul.f32 %v2326_v31, %v2069_v55 }
 0x29a   :  { %3092 = vst [vmem:[#allocation5 + $0x7e0] sm:$0xff] %v2836_v28  ;;  %v2071_v43 = vmul.f32 %v3884_v1, %v3368_v3 }
 0x29b   :  { %3093 = vst [vmem:[#allocation5 + $0x7e8] sm:$0xff] %v2837_v6  ;;  %v2838_v47 = vmul.f32 0.00125, %v2582_v10 }
 0x29c   :  { %v2583_v60 = vmul.f32 %v2327_v8, %v2071_v43 }
 0x29d   :  { %3094 = vst [vmem:[#allocation5 + $0x7f0] sm:$0xff] %v2838_v47 }
 0x29e   :  { %v2839_v0 = vmul.f32 0.00125, %v2583_v60 }
 0x2a0   :  { %3095 = vst [vmem:[#allocation5 + $0x7f8] sm:$0xff] %v2839_v0 }
 0x2a1   :  { %3918 = shalt.err (!%p3915_p12)
}
 0x2a2   :  { %s3919_s24 = scalar_lea.hbm %s4400_s1, 32768 }
 0x2a3   :  { %p3920_p13 = scmp.ne.s32.totalorder %s4400_s1, %s3919_s24  ;;  %p3923_p0 = scmp.lt.u32.totalorder %s3919_s24, %s4400_s1 }
 0x2a5   :  { %p3925_p1 = pnand %p3923_p0, %p3920_p13 }
 0x2a7   :  { %3928 = shalt.err (!%p3925_p1)
}
 0x2a8   :  { %3107 = dma.vmem_to_hbm [thread:$0]  %s3102_s20, 32768, %s4400_s1, [#allocation4], %s3934_s16, %s3934_s16, %s3935_s17  }
 0x2a9   :  { %3931 = dma.done.wait [#allocation4], 32768  }
 0x2aa   :  { %3932 = vsyncadd [#allocation4], 4294934528 }
 0x2ab   :  { %3111 = vsyncpa [#allocation3], 1 }
 0x2ac   :  { %3112 = vsyncpa [#allocation4], 1 }

</bundles_post_ra>
